<compile_context>
chip_gen: v7x
topology: tpu7x:2x2x1
jax: 0.10.0
libtpu: 0.0.40
codegen_flags: <defaults>
</compile_context>

<pallas_src>
import functools

import jax
import jax.numpy as jnp
from jax.experimental import pallas as pl
from jax.experimental.pallas import tpu as pltpu

C_PAD = 128          # lane-dense channel width carried through all layers
EPS = 1e-5           # BatchNorm eps (PyTorch default)


# ----------------------------- Pallas kernels ------------------------------ #

def _leaky(y):
    return jnp.where(y >= 0, y, 0.2 * y)


def _conv_bias_act_kernel(p_ref, w_ref, b_ref, o_ref, *, mode):
    """o = act(patches @ W + bias), one M-tile per grid step (f32 math)."""
    acc = jnp.dot(p_ref[...], w_ref[...], preferred_element_type=jnp.float32)
    y = acc + b_ref[...]
    if mode == "leaky":
        y = _leaky(y)
    elif mode == "sigmoid":
        y = jax.nn.sigmoid(y)
    o_ref[...] = y.astype(o_ref.dtype)


def _conv_bn_leaky_kernel(p_ref, w_ref, g_ref, bt_ref, o_ref, *, inv_m):
    """Fused conv + BatchNorm (batch stats) + LeakyReLU, whole M in one block.

    The conv accumulator stays resident in VMEM; per-channel mean/variance are
    computed on it directly (centered two-pass variance), then the affine and
    activation are applied and the result is written once.
    """
    acc = jnp.dot(p_ref[...], w_ref[...], preferred_element_type=jnp.float32)
    mean = jnp.sum(acc, axis=0, keepdims=True) * inv_m
    centered = acc - mean
    var = jnp.sum(centered * centered, axis=0, keepdims=True) * inv_m
    scale = g_ref[...] * jax.lax.rsqrt(var + EPS)
    y = centered * scale + bt_ref[...]
    o_ref[...] = _leaky(y).astype(o_ref.dtype)


# ------------------------------ Pallas wrappers ----------------------------- #

def conv_bias_act(patches, wmat, bias, mode, out_dtype, tm=256):
    """act(patches @ wmat + bias). patches (M, K) bf16, wmat (K, 128) bf16."""
    M, K = patches.shape
    C = wmat.shape[1]
    block_m = min(tm, M)
    Mp = ((M + block_m - 1) // block_m) * block_m
    if Mp != M:
        patches = jnp.pad(patches, ((0, Mp - M), (0, 0)))
    grid_m = Mp // block_m

    out = pl.pallas_call(
        functools.partial(_conv_bias_act_kernel, mode=mode),
        out_shape=jax.ShapeDtypeStruct((Mp, C), out_dtype),
        grid_spec=pltpu.PrefetchScalarGridSpec(
            num_scalar_prefetch=0,
            grid=(grid_m,),
            in_specs=[
                pl.BlockSpec((block_m, K), lambda i: (i, 0)),
                pl.BlockSpec((K, C), lambda i: (0, 0)),
                pl.BlockSpec((1, C), lambda i: (0, 0)),
            ],
            out_specs=pl.BlockSpec((block_m, C), lambda i: (i, 0)),
        ),
        compiler_params=pltpu.CompilerParams(
            dimension_semantics=("parallel",)),
    )(patches, wmat, bias)
    return out[:M] if Mp != M else out


def conv_bn_leaky(patches, wmat, gamma, beta, out_dtype):
    """Fused conv + BatchNorm(batch stats) + LeakyReLU in one pallas_call.

    The full M (N*Ho*Wo) is handled in a single block so batch statistics are
    exact (no padded rows are ever introduced).
    """
    M, K = patches.shape
    C = wmat.shape[1]
    out = pl.pallas_call(
        functools.partial(_conv_bn_leaky_kernel, inv_m=1.0 / M),
        out_shape=jax.ShapeDtypeStruct((M, C), out_dtype),
        grid_spec=pltpu.PrefetchScalarGridSpec(
            num_scalar_prefetch=0,
            grid=(1,),
            in_specs=[
                pl.BlockSpec((M, K), lambda i: (0, 0)),
                pl.BlockSpec((K, C), lambda i: (0, 0)),
                pl.BlockSpec((1, C), lambda i: (0, 0)),
                pl.BlockSpec((1, C), lambda i: (0, 0)),
            ],
            out_specs=pl.BlockSpec((M, C), lambda i: (0, 0)),
        ),
        compiler_params=pltpu.CompilerParams(
            dimension_semantics=("arbitrary",)),
    )(patches, wmat, gamma, beta)
    return out


# ------------------------------ model glue ---------------------------------- #

def _im2col(x_nhwc, kh, kw, stride, pad):
    """Extract conv patches. Returns ((N*Ho*Wo, kh*kw*C), (N, Ho, Wo))."""
    N, H, W, C = x_nhwc.shape
    xp = jnp.pad(x_nhwc, ((0, 0), (pad, pad), (pad, pad), (0, 0)))
    Ho = (H + 2 * pad - kh) // stride + 1
    Wo = (W + 2 * pad - kw) // stride + 1
    cols = []
    for i in range(kh):
        for j in range(kw):
            cols.append(xp[:, i:i + stride * Ho:stride, j:j + stride * Wo:stride, :])
    patches = jnp.stack(cols, axis=3).reshape(N, Ho, Wo, kh * kw * C)
    return patches.reshape(N * Ho * Wo, kh * kw * C), (N, Ho, Wo)


def _pad_to(x, shape):
    return jnp.pad(x, [(0, t - s) for s, t in zip(x.shape, shape)])


def init_params(key, input_nc=3, ndf=8, n_layers=3):
    """Deterministic synthetic parameters mirroring NLayerDiscriminator.__init__."""
    kw = 4
    layers = []

    def conv_w(k, cin, cout):
        return 0.02 * jax.random.normal(k, (kw, kw, cin, cout), jnp.float32)

    keys = jax.random.split(key, 32)
    ki = 0

    # layer 0: conv(input_nc -> ndf, stride 2, bias) + LeakyReLU
    layers.append(dict(kind="conv_leaky", stride=2,
                       w=conv_w(keys[ki], input_nc, ndf),
                       b=0.02 * jax.random.normal(keys[ki + 1], (ndf,), jnp.float32)))
    ki += 2

    nf_mult = 1
    for n in range(1, n_layers):
        nf_mult_prev, nf_mult = nf_mult, min(2 ** n, 8)
        cin, cout = ndf * nf_mult_prev, ndf * nf_mult
        layers.append(dict(kind="conv_bn_leaky", stride=2,
                           w=conv_w(keys[ki], cin, cout),
                           gamma=1.0 + 0.1 * jax.random.normal(keys[ki + 1], (cout,), jnp.float32),
                           beta=0.1 * jax.random.normal(keys[ki + 2], (cout,), jnp.float32)))
        ki += 3

    nf_mult_prev, nf_mult = nf_mult, min(2 ** n_layers, 8)
    cin, cout = ndf * nf_mult_prev, ndf * nf_mult
    layers.append(dict(kind="conv_bn_leaky", stride=1,
                       w=conv_w(keys[ki], cin, cout),
                       gamma=1.0 + 0.1 * jax.random.normal(keys[ki + 1], (cout,), jnp.float32),
                       beta=0.1 * jax.random.normal(keys[ki + 2], (cout,), jnp.float32)))
    ki += 3

    # final: conv(ndf*nf_mult -> 1, stride 1, bias) (+ sigmoid)
    layers.append(dict(kind="conv_final", stride=1,
                       w=conv_w(keys[ki], ndf * nf_mult, 1),
                       b=0.02 * jax.random.normal(keys[ki + 1], (1,), jnp.float32)))
    return layers


def prepare_params(params):
    """Pad weights/params to lane-dense 128-channel layout, reshape to matrices."""
    prepared = []
    for idx, layer in enumerate(params):
        w = layer["w"]                               # (kh, kw, cin, cout)
        kh, kw_, cin, cout = w.shape
        if idx == 0:
            # keep the real 3 input channels; pad K (kh*kw*cin = 48) -> 128
            wmat = w.reshape(kh * kw_ * cin, cout)
            k_pad = max(C_PAD, -(-wmat.shape[0] // 128) * 128)
            wmat = _pad_to(wmat, (k_pad, C_PAD)).astype(jnp.bfloat16)
        else:
            # carry 128 padded channels through: embed into (kh, kw, 128, 128)
            w_full = jnp.zeros((kh, kw_, C_PAD, C_PAD), jnp.float32)
            w_full = w_full.at[:, :, :cin, :cout].set(w)
            k_pad = kh * kw_ * C_PAD
            wmat = w_full.reshape(k_pad, C_PAD).astype(jnp.bfloat16)

        entry = dict(kind=layer["kind"], stride=layer["stride"],
                     kh=kh, kw=kw_, k_pad=k_pad, wmat=wmat)
        if layer["kind"] in ("conv_leaky", "conv_final"):
            entry["b"] = _pad_to(layer["b"], (C_PAD,)).reshape(1, C_PAD).astype(jnp.float32)
        else:
            entry["gamma"] = _pad_to(layer["gamma"], (C_PAD,)).reshape(1, C_PAD).astype(jnp.float32)
            entry["beta"] = _pad_to(layer["beta"], (C_PAD,)).reshape(1, C_PAD).astype(jnp.float32)
        prepared.append(entry)
    return prepared


def nlayer_discriminator_forward(x_nchw, prepared, use_sigmoid=True):
    # layout: NCHW in -> NHWC (channels on lanes) compute -> NCHW out
    x = jnp.transpose(x_nchw, (0, 2, 3, 1)).astype(jnp.bfloat16)

    for li, layer in enumerate(prepared):
        patches, (N, Ho, Wo) = _im2col(x, layer["kh"], layer["kw"], layer["stride"], 1)
        if patches.shape[1] < layer["k_pad"]:
            patches = jnp.pad(patches, ((0, 0), (0, layer["k_pad"] - patches.shape[1])))

        kind = layer["kind"]
        if kind == "conv_leaky":
            y = conv_bias_act(patches, layer["wmat"], layer["b"], "leaky", jnp.bfloat16)
        elif kind == "conv_bn_leaky":
            y = conv_bn_leaky(patches, layer["wmat"], layer["gamma"], layer["beta"],
                              jnp.bfloat16)
        else:  # conv_final
            mode = "sigmoid" if use_sigmoid else "none"
            y = conv_bias_act(patches, layer["wmat"], layer["b"], mode, jnp.float32)

        x = y.reshape(N, Ho, Wo, C_PAD)

    # only channel 0 of the final conv is real (Cout = 1)
    out = x[..., :1].astype(jnp.float32)            # (N, Ho, Wo, 1)
    return jnp.transpose(out, (0, 3, 1, 2))         # back to NCHW


# ---------------------------------- main ------------------------------------ #

if __name__ == "__main__":
    key = jax.random.PRNGKey(0)
    k_in, k_params = jax.random.split(key)

    # Small shapes: batch=2, input_nc=3, spatial=32, ndf=8, n_layers=3
    x = jax.random.normal(k_in, (2, 3, 32, 32), jnp.float32)   # NCHW
    params = init_params(k_params, input_nc=3, ndf=8, n_layers=3)
    prepared = prepare_params(params)

    forward = jax.jit(lambda xin: nlayer_discriminator_forward(xin, prepared,
                                                               use_sigmoid=True))
    out = jax.block_until_ready(forward(x))

    # Expected PatchGAN map shape for 32x32 input: (2, 1, 2, 2), values in (0, 1)
    assert out.shape == (2, 1, 2, 2), out.shape
    assert bool(jnp.all((out > 0.0) & (out < 1.0)))
    print("KERNEL_OK")
</pallas_src>

<mosaic_0001>
module attributes {stable_mosaic.version = 11 : i64} {
  func.func @_conv_bias_act_kernel(%arg0: i32, %arg1: memref<256x128xbf16, #tpu.memory_space<vmem>>, %arg2: memref<128x128xbf16, #tpu.memory_space<vmem>>, %arg3: memref<1x128xf32, #tpu.memory_space<vmem>>, %arg4: memref<256x128xbf16, #tpu.memory_space<vmem>>) attributes {dimension_semantics = [#tpu.dimension_semantics<parallel>], iteration_bounds = array<i64: 2>, scalar_prefetch = 0 : i64, scratch_operands = 0 : i64, tpu.core_type = #tpu.core_type<tc>, window_params = [{transform_indices = @transform_0, window_bounds = array<i64: 256, 128>}, {pipeline_mode = #tpu.pipeline_mode<synchronous>, transform_indices = @transform_1, window_bounds = array<i64: 128, 128>}, {pipeline_mode = #tpu.pipeline_mode<synchronous>, transform_indices = @transform_2, window_bounds = array<i64: 1, 128>}, {transform_indices = @transform_3, window_bounds = array<i64: 256, 128>}]} {
    %c0 = arith.constant 0 : index
    %c0_0 = arith.constant 0 : index
    %0 = vector.load %arg1[%c0, %c0_0] : memref<256x128xbf16, #tpu.memory_space<vmem>>, vector<256x128xbf16>
    %c0_1 = arith.constant 0 : index
    %c0_2 = arith.constant 0 : index
    %1 = vector.load %arg2[%c0_1, %c0_2] : memref<128x128xbf16, #tpu.memory_space<vmem>>, vector<128x128xbf16>
    %cst = arith.constant dense<0.000000e+00> : vector<256x128xf32>
    %2 = tpu.matmul %0, %1, %cst {dimension_numbers = #tpu.dot_dimension_numbers<[1], [0], [0], [1], [0, 0, 1, 1], [], []>} : vector<256x128xbf16>, vector<128x128xbf16>, vector<256x128xf32> -> vector<256x128xf32>
    %c0_3 = arith.constant 0 : index
    %c0_4 = arith.constant 0 : index
    %3 = vector.load %arg3[%c0_3, %c0_4] : memref<1x128xf32, #tpu.memory_space<vmem>>, vector<1x128xf32>
    %4 = vector.broadcast %3 : vector<1x128xf32> to vector<256x128xf32>
    %5 = arith.addf %2, %4 : vector<256x128xf32>
    %cst_5 = arith.constant 0.000000e+00 : f32
    %6 = vector.broadcast %cst_5 : f32 to vector<256x128xf32>
    %7 = arith.cmpf oge, %5, %6 : vector<256x128xf32>
    %cst_6 = arith.constant 2.000000e-01 : f32
    %8 = vector.broadcast %cst_6 : f32 to vector<256x128xf32>
    %9 = arith.mulf %8, %5 : vector<256x128xf32>
    %10 = arith.select %7, %5, %9 : vector<256x128xi1>, vector<256x128xf32>
    %11 = arith.truncf %10 : vector<256x128xf32> to vector<256x128xbf16>
    %c0_7 = arith.constant 0 : index
    %c0_8 = arith.constant 0 : index
    %12 = vector.load %arg4[%c0_7, %c0_8] : memref<256x128xbf16, #tpu.memory_space<vmem>>, vector<256x128xbf16>
    tpu.vector_store %arg4[%c0_7, %c0_8], %11 {strides = array<i32>} : memref<256x128xbf16, #tpu.memory_space<vmem>>, vector<256x128xbf16>,
    return
  }
  func.func @transform_0(%arg0: i32) -> (i32, i32) {
    %c0_i32 = arith.constant 0 : i32
    %c0_i32_0 = arith.constant 0 : i32
    return %arg0, %c0_i32 : i32, i32
  }
  func.func @transform_1(%arg0: i32) -> (i32, i32) {
    %c0_i32 = arith.constant 0 : i32
    %c0_i32_0 = arith.constant 0 : i32
    %c0_i32_1 = arith.constant 0 : i32
    return %c0_i32, %c0_i32_0 : i32, i32
  }
  func.func @transform_2(%arg0: i32) -> (i32, i32) {
    %c0_i32 = arith.constant 0 : i32
    %c0_i32_0 = arith.constant 0 : i32
    %c0_i32_1 = arith.constant 0 : i32
    return %c0_i32, %c0_i32_0 : i32, i32
  }
  func.func @transform_3(%arg0: i32) -> (i32, i32) {
    %c0_i32 = arith.constant 0 : i32
    %c0_i32_0 = arith.constant 0 : i32
    return %arg0, %c0_i32 : i32, i32
  }
}

module attributes {stable_mosaic.version = 11 : i64} {
  func.func @_conv_bn_leaky_kernel(%arg0: i32, %arg1: memref<128x2048xbf16, #tpu.memory_space<vmem>>, %arg2: memref<2048x128xbf16, #tpu.memory_space<vmem>>, %arg3: memref<1x128xf32, #tpu.memory_space<vmem>>, %arg4: memref<1x128xf32, #tpu.memory_space<vmem>>, %arg5: memref<128x128xbf16, #tpu.memory_space<vmem>>) attributes {dimension_semantics = [#tpu.dimension_semantics<arbitrary>], iteration_bounds = array<i64: 1>, scalar_prefetch = 0 : i64, scratch_operands = 0 : i64, tpu.core_type = #tpu.core_type<tc>, window_params = [{pipeline_mode = #tpu.pipeline_mode<synchronous>, transform_indices = @transform_0, window_bounds = array<i64: 128, 2048>}, {pipeline_mode = #tpu.pipeline_mode<synchronous>, transform_indices = @transform_1, window_bounds = array<i64: 2048, 128>}, {pipeline_mode = #tpu.pipeline_mode<synchronous>, transform_indices = @transform_2, window_bounds = array<i64: 1, 128>}, {pipeline_mode = #tpu.pipeline_mode<synchronous>, transform_indices = @transform_3, window_bounds = array<i64: 1, 128>}, {pipeline_mode = #tpu.pipeline_mode<synchronous>, transform_indices = @transform_4, window_bounds = array<i64: 128, 128>}]} {
    %c0 = arith.constant 0 : index
    %c0_0 = arith.constant 0 : index
    %0 = vector.load %arg1[%c0, %c0_0] : memref<128x2048xbf16, #tpu.memory_space<vmem>>, vector<128x2048xbf16>
    %c0_1 = arith.constant 0 : index
    %c0_2 = arith.constant 0 : index
    %1 = vector.load %arg2[%c0_1, %c0_2] : memref<2048x128xbf16, #tpu.memory_space<vmem>>, vector<2048x128xbf16>
    %cst = arith.constant dense<0.000000e+00> : vector<128x128xf32>
    %2 = tpu.matmul %0, %1, %cst {dimension_numbers = #tpu.dot_dimension_numbers<[1], [0], [0], [1], [0, 0, 1, 1], [], []>} : vector<128x2048xbf16>, vector<2048x128xbf16>, vector<128x128xf32> -> vector<128x128xf32>
    %cst_3 = arith.constant dense<0.000000e+00> : vector<128xf32>
    %3 = vector.multi_reduction <add>, %2, %cst_3 [0] : vector<128x128xf32> to vector<128xf32>
    %4 = vector.shape_cast %3 : vector<128xf32> to vector<1x128xf32>
    %cst_4 = arith.constant 7.812500e-03 : f32
    %5 = vector.broadcast %cst_4 : f32 to vector<1x128xf32>
    %6 = arith.mulf %4, %5 : vector<1x128xf32>
    %7 = vector.broadcast %6 : vector<1x128xf32> to vector<128x128xf32>
    %8 = arith.subf %2, %7 : vector<128x128xf32>
    %9 = arith.mulf %8, %8 : vector<128x128xf32>
    %cst_5 = arith.constant dense<0.000000e+00> : vector<128xf32>
    %10 = vector.multi_reduction <add>, %9, %cst_5 [0] : vector<128x128xf32> to vector<128xf32>
    %11 = vector.shape_cast %10 : vector<128xf32> to vector<1x128xf32>
    %cst_6 = arith.constant 7.812500e-03 : f32
    %12 = vector.broadcast %cst_6 : f32 to vector<1x128xf32>
    %13 = arith.mulf %11, %12 : vector<1x128xf32>
    %c0_7 = arith.constant 0 : index
    %c0_8 = arith.constant 0 : index
    %14 = vector.load %arg3[%c0_7, %c0_8] : memref<1x128xf32, #tpu.memory_space<vmem>>, vector<1x128xf32>
    %cst_9 = arith.constant 9.99999974E-6 : f32
    %15 = vector.broadcast %cst_9 : f32 to vector<1x128xf32>
    %16 = arith.addf %13, %15 : vector<1x128xf32>
    %17 = math.rsqrt %16 : vector<1x128xf32>
    %18 = arith.mulf %14, %17 : vector<1x128xf32>
    %19 = vector.broadcast %18 : vector<1x128xf32> to vector<128x128xf32>
    %20 = arith.mulf %8, %19 : vector<128x128xf32>
    %c0_10 = arith.constant 0 : index
    %c0_11 = arith.constant 0 : index
    %21 = vector.load %arg4[%c0_10, %c0_11] : memref<1x128xf32, #tpu.memory_space<vmem>>, vector<1x128xf32>
    %22 = vector.broadcast %21 : vector<1x128xf32> to vector<128x128xf32>
    %23 = arith.addf %20, %22 : vector<128x128xf32>
    %cst_12 = arith.constant 0.000000e+00 : f32
    %24 = vector.broadcast %cst_12 : f32 to vector<128x128xf32>
    %25 = arith.cmpf oge, %23, %24 : vector<128x128xf32>
    %cst_13 = arith.constant 2.000000e-01 : f32
    %26 = vector.broadcast %cst_13 : f32 to vector<128x128xf32>
    %27 = arith.mulf %26, %23 : vector<128x128xf32>
    %28 = arith.select %25, %23, %27 : vector<128x128xi1>, vector<128x128xf32>
    %29 = arith.truncf %28 : vector<128x128xf32> to vector<128x128xbf16>
    %c0_14 = arith.constant 0 : index
    %c0_15 = arith.constant 0 : index
    %30 = vector.load %arg5[%c0_14, %c0_15] : memref<128x128xbf16, #tpu.memory_space<vmem>>, vector<128x128xbf16>
    tpu.vector_store %arg5[%c0_14, %c0_15], %29 {strides = array<i32>} : memref<128x128xbf16, #tpu.memory_space<vmem>>, vector<128x128xbf16>,
    return
  }
  func.func @transform_0(%arg0: i32) -> (i32, i32) {
    %c0_i32 = arith.constant 0 : i32
    %c0_i32_0 = arith.constant 0 : i32
    %c0_i32_1 = arith.constant 0 : i32
    return %c0_i32, %c0_i32_0 : i32, i32
  }
  func.func @transform_1(%arg0: i32) -> (i32, i32) {
    %c0_i32 = arith.constant 0 : i32
    %c0_i32_0 = arith.constant 0 : i32
    %c0_i32_1 = arith.constant 0 : i32
    return %c0_i32, %c0_i32_0 : i32, i32
  }
  func.func @transform_2(%arg0: i32) -> (i32, i32) {
    %c0_i32 = arith.constant 0 : i32
    %c0_i32_0 = arith.constant 0 : i32
    %c0_i32_1 = arith.constant 0 : i32
    return %c0_i32, %c0_i32_0 : i32, i32
  }
  func.func @transform_3(%arg0: i32) -> (i32, i32) {
    %c0_i32 = arith.constant 0 : i32
    %c0_i32_0 = arith.constant 0 : i32
    %c0_i32_1 = arith.constant 0 : i32
    return %c0_i32, %c0_i32_0 : i32, i32
  }
  func.func @transform_4(%arg0: i32) -> (i32, i32) {
    %c0_i32 = arith.constant 0 : i32
    %c0_i32_0 = arith.constant 0 : i32
    %c0_i32_1 = arith.constant 0 : i32
    return %c0_i32, %c0_i32_0 : i32, i32
  }
}

module attributes {stable_mosaic.version = 11 : i64} {
  func.func @_conv_bn_leaky_kernel(%arg0: i32, %arg1: memref<32x2048xbf16, #tpu.memory_space<vmem>>, %arg2: memref<2048x128xbf16, #tpu.memory_space<vmem>>, %arg3: memref<1x128xf32, #tpu.memory_space<vmem>>, %arg4: memref<1x128xf32, #tpu.memory_space<vmem>>, %arg5: memref<32x128xbf16, #tpu.memory_space<vmem>>) attributes {dimension_semantics = [#tpu.dimension_semantics<arbitrary>], iteration_bounds = array<i64: 1>, scalar_prefetch = 0 : i64, scratch_operands = 0 : i64, tpu.core_type = #tpu.core_type<tc>, window_params = [{pipeline_mode = #tpu.pipeline_mode<synchronous>, transform_indices = @transform_0, window_bounds = array<i64: 32, 2048>}, {pipeline_mode = #tpu.pipeline_mode<synchronous>, transform_indices = @transform_1, window_bounds = array<i64: 2048, 128>}, {pipeline_mode = #tpu.pipeline_mode<synchronous>, transform_indices = @transform_2, window_bounds = array<i64: 1, 128>}, {pipeline_mode = #tpu.pipeline_mode<synchronous>, transform_indices = @transform_3, window_bounds = array<i64: 1, 128>}, {pipeline_mode = #tpu.pipeline_mode<synchronous>, transform_indices = @transform_4, window_bounds = array<i64: 32, 128>}]} {
    %c0 = arith.constant 0 : index
    %c0_0 = arith.constant 0 : index
    %0 = vector.load %arg1[%c0, %c0_0] : memref<32x2048xbf16, #tpu.memory_space<vmem>>, vector<32x2048xbf16>
    %c0_1 = arith.constant 0 : index
    %c0_2 = arith.constant 0 : index
    %1 = vector.load %arg2[%c0_1, %c0_2] : memref<2048x128xbf16, #tpu.memory_space<vmem>>, vector<2048x128xbf16>
    %cst = arith.constant dense<0.000000e+00> : vector<32x128xf32>
    %2 = tpu.matmul %0, %1, %cst {dimension_numbers = #tpu.dot_dimension_numbers<[1], [0], [0], [1], [0, 0, 1, 1], [], []>} : vector<32x2048xbf16>, vector<2048x128xbf16>, vector<32x128xf32> -> vector<32x128xf32>
    %cst_3 = arith.constant dense<0.000000e+00> : vector<128xf32>
    %3 = vector.multi_reduction <add>, %2, %cst_3 [0] : vector<32x128xf32> to vector<128xf32>
    %4 = vector.shape_cast %3 : vector<128xf32> to vector<1x128xf32>
    %cst_4 = arith.constant 3.125000e-02 : f32
    %5 = vector.broadcast %cst_4 : f32 to vector<1x128xf32>
    %6 = arith.mulf %4, %5 : vector<1x128xf32>
    %7 = vector.broadcast %6 : vector<1x128xf32> to vector<32x128xf32>
    %8 = arith.subf %2, %7 : vector<32x128xf32>
    %9 = arith.mulf %8, %8 : vector<32x128xf32>
    %cst_5 = arith.constant dense<0.000000e+00> : vector<128xf32>
    %10 = vector.multi_reduction <add>, %9, %cst_5 [0] : vector<32x128xf32> to vector<128xf32>
    %11 = vector.shape_cast %10 : vector<128xf32> to vector<1x128xf32>
    %cst_6 = arith.constant 3.125000e-02 : f32
    %12 = vector.broadcast %cst_6 : f32 to vector<1x128xf32>
    %13 = arith.mulf %11, %12 : vector<1x128xf32>
    %c0_7 = arith.constant 0 : index
    %c0_8 = arith.constant 0 : index
    %14 = vector.load %arg3[%c0_7, %c0_8] : memref<1x128xf32, #tpu.memory_space<vmem>>, vector<1x128xf32>
    %cst_9 = arith.constant 9.99999974E-6 : f32
    %15 = vector.broadcast %cst_9 : f32 to vector<1x128xf32>
    %16 = arith.addf %13, %15 : vector<1x128xf32>
    %17 = math.rsqrt %16 : vector<1x128xf32>
    %18 = arith.mulf %14, %17 : vector<1x128xf32>
    %19 = vector.broadcast %18 : vector<1x128xf32> to vector<32x128xf32>
    %20 = arith.mulf %8, %19 : vector<32x128xf32>
    %c0_10 = arith.constant 0 : index
    %c0_11 = arith.constant 0 : index
    %21 = vector.load %arg4[%c0_10, %c0_11] : memref<1x128xf32, #tpu.memory_space<vmem>>, vector<1x128xf32>
    %22 = vector.broadcast %21 : vector<1x128xf32> to vector<32x128xf32>
    %23 = arith.addf %20, %22 : vector<32x128xf32>
    %cst_12 = arith.constant 0.000000e+00 : f32
    %24 = vector.broadcast %cst_12 : f32 to vector<32x128xf32>
    %25 = arith.cmpf oge, %23, %24 : vector<32x128xf32>
    %cst_13 = arith.constant 2.000000e-01 : f32
    %26 = vector.broadcast %cst_13 : f32 to vector<32x128xf32>
    %27 = arith.mulf %26, %23 : vector<32x128xf32>
    %28 = arith.select %25, %23, %27 : vector<32x128xi1>, vector<32x128xf32>
    %29 = arith.truncf %28 : vector<32x128xf32> to vector<32x128xbf16>
    %c0_14 = arith.constant 0 : index
    %c0_15 = arith.constant 0 : index
    %30 = vector.load %arg5[%c0_14, %c0_15] : memref<32x128xbf16, #tpu.memory_space<vmem>>, vector<32x128xbf16>
    tpu.vector_store %arg5[%c0_14, %c0_15], %29 {strides = array<i32>} : memref<32x128xbf16, #tpu.memory_space<vmem>>, vector<32x128xbf16>,
    return
  }
  func.func @transform_0(%arg0: i32) -> (i32, i32) {
    %c0_i32 = arith.constant 0 : i32
    %c0_i32_0 = arith.constant 0 : i32
    %c0_i32_1 = arith.constant 0 : i32
    return %c0_i32, %c0_i32_0 : i32, i32
  }
  func.func @transform_1(%arg0: i32) -> (i32, i32) {
    %c0_i32 = arith.constant 0 : i32
    %c0_i32_0 = arith.constant 0 : i32
    %c0_i32_1 = arith.constant 0 : i32
    return %c0_i32, %c0_i32_0 : i32, i32
  }
  func.func @transform_2(%arg0: i32) -> (i32, i32) {
    %c0_i32 = arith.constant 0 : i32
    %c0_i32_0 = arith.constant 0 : i32
    %c0_i32_1 = arith.constant 0 : i32
    return %c0_i32, %c0_i32_0 : i32, i32
  }
  func.func @transform_3(%arg0: i32) -> (i32, i32) {
    %c0_i32 = arith.constant 0 : i32
    %c0_i32_0 = arith.constant 0 : i32
    %c0_i32_1 = arith.constant 0 : i32
    return %c0_i32, %c0_i32_0 : i32, i32
  }
  func.func @transform_4(%arg0: i32) -> (i32, i32) {
    %c0_i32 = arith.constant 0 : i32
    %c0_i32_0 = arith.constant 0 : i32
    %c0_i32_1 = arith.constant 0 : i32
    return %c0_i32, %c0_i32_0 : i32, i32
  }
}

module attributes {stable_mosaic.version = 11 : i64} {
  func.func @_conv_bn_leaky_kernel(%arg0: i32, %arg1: memref<18x2048xbf16, #tpu.memory_space<vmem>>, %arg2: memref<2048x128xbf16, #tpu.memory_space<vmem>>, %arg3: memref<1x128xf32, #tpu.memory_space<vmem>>, %arg4: memref<1x128xf32, #tpu.memory_space<vmem>>, %arg5: memref<18x128xbf16, #tpu.memory_space<vmem>>) attributes {dimension_semantics = [#tpu.dimension_semantics<arbitrary>], iteration_bounds = array<i64: 1>, scalar_prefetch = 0 : i64, scratch_operands = 0 : i64, tpu.core_type = #tpu.core_type<tc>, window_params = [{pipeline_mode = #tpu.pipeline_mode<synchronous>, transform_indices = @transform_0, window_bounds = array<i64: 18, 2048>}, {pipeline_mode = #tpu.pipeline_mode<synchronous>, transform_indices = @transform_1, window_bounds = array<i64: 2048, 128>}, {pipeline_mode = #tpu.pipeline_mode<synchronous>, transform_indices = @transform_2, window_bounds = array<i64: 1, 128>}, {pipeline_mode = #tpu.pipeline_mode<synchronous>, transform_indices = @transform_3, window_bounds = array<i64: 1, 128>}, {pipeline_mode = #tpu.pipeline_mode<synchronous>, transform_indices = @transform_4, window_bounds = array<i64: 18, 128>}]} {
    %c0 = arith.constant 0 : index
    %c0_0 = arith.constant 0 : index
    %0 = vector.load %arg1[%c0, %c0_0] : memref<18x2048xbf16, #tpu.memory_space<vmem>>, vector<18x2048xbf16>
    %c0_1 = arith.constant 0 : index
    %c0_2 = arith.constant 0 : index
    %1 = vector.load %arg2[%c0_1, %c0_2] : memref<2048x128xbf16, #tpu.memory_space<vmem>>, vector<2048x128xbf16>
    %cst = arith.constant dense<0.000000e+00> : vector<18x128xf32>
    %2 = tpu.matmul %0, %1, %cst {dimension_numbers = #tpu.dot_dimension_numbers<[1], [0], [0], [1], [0, 0, 1, 1], [], []>} : vector<18x2048xbf16>, vector<2048x128xbf16>, vector<18x128xf32> -> vector<18x128xf32>
    %cst_3 = arith.constant dense<0.000000e+00> : vector<128xf32>
    %3 = vector.multi_reduction <add>, %2, %cst_3 [0] : vector<18x128xf32> to vector<128xf32>
    %4 = vector.shape_cast %3 : vector<128xf32> to vector<1x128xf32>
    %cst_4 = arith.constant 0.055555556 : f32
    %5 = vector.broadcast %cst_4 : f32 to vector<1x128xf32>
    %6 = arith.mulf %4, %5 : vector<1x128xf32>
    %7 = vector.broadcast %6 : vector<1x128xf32> to vector<18x128xf32>
    %8 = arith.subf %2, %7 : vector<18x128xf32>
    %9 = arith.mulf %8, %8 : vector<18x128xf32>
    %cst_5 = arith.constant dense<0.000000e+00> : vector<128xf32>
    %10 = vector.multi_reduction <add>, %9, %cst_5 [0] : vector<18x128xf32> to vector<128xf32>
    %11 = vector.shape_cast %10 : vector<128xf32> to vector<1x128xf32>
    %cst_6 = arith.constant 0.055555556 : f32
    %12 = vector.broadcast %cst_6 : f32 to vector<1x128xf32>
    %13 = arith.mulf %11, %12 : vector<1x128xf32>
    %c0_7 = arith.constant 0 : index
    %c0_8 = arith.constant 0 : index
    %14 = vector.load %arg3[%c0_7, %c0_8] : memref<1x128xf32, #tpu.memory_space<vmem>>, vector<1x128xf32>
    %cst_9 = arith.constant 9.99999974E-6 : f32
    %15 = vector.broadcast %cst_9 : f32 to vector<1x128xf32>
    %16 = arith.addf %13, %15 : vector<1x128xf32>
    %17 = math.rsqrt %16 : vector<1x128xf32>
    %18 = arith.mulf %14, %17 : vector<1x128xf32>
    %19 = vector.broadcast %18 : vector<1x128xf32> to vector<18x128xf32>
    %20 = arith.mulf %8, %19 : vector<18x128xf32>
    %c0_10 = arith.constant 0 : index
    %c0_11 = arith.constant 0 : index
    %21 = vector.load %arg4[%c0_10, %c0_11] : memref<1x128xf32, #tpu.memory_space<vmem>>, vector<1x128xf32>
    %22 = vector.broadcast %21 : vector<1x128xf32> to vector<18x128xf32>
    %23 = arith.addf %20, %22 : vector<18x128xf32>
    %cst_12 = arith.constant 0.000000e+00 : f32
    %24 = vector.broadcast %cst_12 : f32 to vector<18x128xf32>
    %25 = arith.cmpf oge, %23, %24 : vector<18x128xf32>
    %cst_13 = arith.constant 2.000000e-01 : f32
    %26 = vector.broadcast %cst_13 : f32 to vector<18x128xf32>
    %27 = arith.mulf %26, %23 : vector<18x128xf32>
    %28 = arith.select %25, %23, %27 : vector<18x128xi1>, vector<18x128xf32>
    %29 = arith.truncf %28 : vector<18x128xf32> to vector<18x128xbf16>
    %c0_14 = arith.constant 0 : index
    %c0_15 = arith.constant 0 : index
    %30 = vector.load %arg5[%c0_14, %c0_15] : memref<18x128xbf16, #tpu.memory_space<vmem>>, vector<18x128xbf16>
    tpu.vector_store %arg5[%c0_14, %c0_15], %29 {strides = array<i32>} : memref<18x128xbf16, #tpu.memory_space<vmem>>, vector<18x128xbf16>,
    return
  }
  func.func @transform_0(%arg0: i32) -> (i32, i32) {
    %c0_i32 = arith.constant 0 : i32
    %c0_i32_0 = arith.constant 0 : i32
    %c0_i32_1 = arith.constant 0 : i32
    return %c0_i32, %c0_i32_0 : i32, i32
  }
  func.func @transform_1(%arg0: i32) -> (i32, i32) {
    %c0_i32 = arith.constant 0 : i32
    %c0_i32_0 = arith.constant 0 : i32
    %c0_i32_1 = arith.constant 0 : i32
    return %c0_i32, %c0_i32_0 : i32, i32
  }
  func.func @transform_2(%arg0: i32) -> (i32, i32) {
    %c0_i32 = arith.constant 0 : i32
    %c0_i32_0 = arith.constant 0 : i32
    %c0_i32_1 = arith.constant 0 : i32
    return %c0_i32, %c0_i32_0 : i32, i32
  }
  func.func @transform_3(%arg0: i32) -> (i32, i32) {
    %c0_i32 = arith.constant 0 : i32
    %c0_i32_0 = arith.constant 0 : i32
    %c0_i32_1 = arith.constant 0 : i32
    return %c0_i32, %c0_i32_0 : i32, i32
  }
  func.func @transform_4(%arg0: i32) -> (i32, i32) {
    %c0_i32 = arith.constant 0 : i32
    %c0_i32_0 = arith.constant 0 : i32
    %c0_i32_1 = arith.constant 0 : i32
    return %c0_i32, %c0_i32_0 : i32, i32
  }
}

module attributes {stable_mosaic.version = 11 : i64} {
  func.func @_conv_bias_act_kernel(%arg0: i32, %arg1: memref<8x2048xbf16, #tpu.memory_space<vmem>>, %arg2: memref<2048x128xbf16, #tpu.memory_space<vmem>>, %arg3: memref<1x128xf32, #tpu.memory_space<vmem>>, %arg4: memref<8x128xf32, #tpu.memory_space<vmem>>) attributes {dimension_semantics = [#tpu.dimension_semantics<parallel>], iteration_bounds = array<i64: 1>, scalar_prefetch = 0 : i64, scratch_operands = 0 : i64, tpu.core_type = #tpu.core_type<tc>, window_params = [{transform_indices = @transform_0, window_bounds = array<i64: 8, 2048>}, {pipeline_mode = #tpu.pipeline_mode<synchronous>, transform_indices = @transform_1, window_bounds = array<i64: 2048, 128>}, {pipeline_mode = #tpu.pipeline_mode<synchronous>, transform_indices = @transform_2, window_bounds = array<i64: 1, 128>}, {transform_indices = @transform_3, window_bounds = array<i64: 8, 128>}]} {
    %c0 = arith.constant 0 : index
    %c0_0 = arith.constant 0 : index
    %0 = vector.load %arg1[%c0, %c0_0] : memref<8x2048xbf16, #tpu.memory_space<vmem>>, vector<8x2048xbf16>
    %c0_1 = arith.constant 0 : index
    %c0_2 = arith.constant 0 : index
    %1 = vector.load %arg2[%c0_1, %c0_2] : memref<2048x128xbf16, #tpu.memory_space<vmem>>, vector<2048x128xbf16>
    %cst = arith.constant dense<0.000000e+00> : vector<8x128xf32>
    %2 = tpu.matmul %0, %1, %cst {dimension_numbers = #tpu.dot_dimension_numbers<[1], [0], [0], [1], [0, 0, 1, 1], [], []>} : vector<8x2048xbf16>, vector<2048x128xbf16>, vector<8x128xf32> -> vector<8x128xf32>
    %c0_3 = arith.constant 0 : index
    %c0_4 = arith.constant 0 : index
    %3 = vector.load %arg3[%c0_3, %c0_4] : memref<1x128xf32, #tpu.memory_space<vmem>>, vector<1x128xf32>
    %4 = vector.broadcast %3 : vector<1x128xf32> to vector<8x128xf32>
    %5 = arith.addf %2, %4 : vector<8x128xf32>
    %6 = arith.negf %5 : vector<8x128xf32>
    %7 = math.exp %6 : vector<8x128xf32>
    %cst_5 = arith.constant 1.000000e+00 : f32
    %8 = vector.broadcast %cst_5 : f32 to vector<8x128xf32>
    %9 = arith.addf %8, %7 : vector<8x128xf32>
    %10 = arith.divf %8, %9 : vector<8x128xf32>
    %c0_6 = arith.constant 0 : index
    %c0_7 = arith.constant 0 : index
    %11 = vector.load %arg4[%c0_6, %c0_7] : memref<8x128xf32, #tpu.memory_space<vmem>>, vector<8x128xf32>
    tpu.vector_store %arg4[%c0_6, %c0_7], %10 {strides = array<i32>} : memref<8x128xf32, #tpu.memory_space<vmem>>, vector<8x128xf32>,
    return
  }
  func.func @transform_0(%arg0: i32) -> (i32, i32) {
    %c0_i32 = arith.constant 0 : i32
    %c0_i32_0 = arith.constant 0 : i32
    return %arg0, %c0_i32 : i32, i32
  }
  func.func @transform_1(%arg0: i32) -> (i32, i32) {
    %c0_i32 = arith.constant 0 : i32
    %c0_i32_0 = arith.constant 0 : i32
    %c0_i32_1 = arith.constant 0 : i32
    return %c0_i32, %c0_i32_0 : i32, i32
  }
  func.func @transform_2(%arg0: i32) -> (i32, i32) {
    %c0_i32 = arith.constant 0 : i32
    %c0_i32_0 = arith.constant 0 : i32
    %c0_i32_1 = arith.constant 0 : i32
    return %c0_i32, %c0_i32_0 : i32, i32
  }
  func.func @transform_3(%arg0: i32) -> (i32, i32) {
    %c0_i32 = arith.constant 0 : i32
    %c0_i32_0 = arith.constant 0 : i32
    return %arg0, %c0_i32 : i32, i32
  }
}

</mosaic_0001>

<bundles_post_ra>
// kernel: _lambda_.5
= control target key start
LH: loop header
LB: loop body
LE: loop exit
PB: predicated region body
PF: predicated region fallthrough
CT: control target
= control target key end

     0   :  { %s1190_s12 = smov 0   ;;  %s1317_s0 = inlined_call_operand.vmem [shape: bf16[512,128], index: 0, kind: input, shape index: {}]   ;;  %s1318_s1 = inlined_call_operand.vmem [shape: bf16[128,128], index: 1, kind: input, shape index: {}]   ;;  %s1319_s2 = inlined_call_operand.vmem [shape: f32[1,128], index: 2, kind: input, shape index: {}]   ;;  %s1320_s3 = inlined_call_operand.vmem [shape: bf16[512,128], index: 3, kind: output, shape index: {}]  }
   0x1 LB: > { %s847_s13 = sadd.s32 4294967295, %s1168_s12   ;;  %p851_p0 = scmp.ge.s32.totalorder %s1168_s12, 1  ;;  %s1168_s12 = sphi %s1190_s12, %s13_s12  }
   0x2   : > { %p138_p1 = scmp.lt.s32.totalorder %s1168_s12, 3 }
   0x4   : > { %p139_p2 = pnand %p851_p0, %p138_p1 }
   0x5   : > { %v1138_v0 = vld [vmem:[%s1318_s1] sm:$0xff] (!%p139_p2)   ;;  %s852_s16 = sshll.u32 (!%p139_p2), %s847_s13, 5  ;;  %v1139_v1 = vld [vmem:[%s1318_s1 + $0x8] sm:$0xff] (!%p139_p2)   ;;  %v1140_v2 = vld [vmem:[%s1318_s1 + $0x10] sm:$0xff] (!%p139_p2)  }
   0x6   : > { %142 = sbr.rel (%p139_p2) target bundleno = 293 (0x125), region = 32  ;;  %p163_p3 = scmp.lt.s32.totalorder (!%p139_p2), %s852_s16, 63  ;;  %1066 = vmatprep.subr.bf16.mxu0 (!%p139_p2), %v1138_v0  ;;  %1114 = vmatprep.subr.bf16.mxu1 (!%p139_p2), %v1138_v0  ;;  %v1141_v3 = vld [vmem:[%s1318_s1 + $0x18] sm:$0xff] (!%p139_p2)   ;;  %v1142_v6 = vld [vmem:[%s1318_s1 + $0x20] sm:$0xff] (!%p139_p2)   ;;  %v1143_v7 = vld [vmem:[%s1318_s1 + $0x28] sm:$0xff] (!%p139_p2)  }
   0x7   : > { %1067 = vmatpush3.bf16.msra.mxu0 (!%p139_p2), %v1138_v0  ;;  %1122 = vmatpush3.bf16.msra.mxu1 (!%p139_p2), %v1138_v0  ;;  %v1144_v8 = vld [vmem:[%s1318_s1 + $0x30] sm:$0xff] (!%p139_p2)   ;;  %v1145_v9 = vld [vmem:[%s1318_s1 + $0x38] sm:$0xff] (!%p139_p2)   ;;  %v1251_v24 = vld [vmem:[%s1319_s2] ss:$0 sm:$0xff] (!%p139_p2) }
   0x8   : > { %1068 = vmatprep.subr.bf16.mxu0 (!%p139_p2), %v1139_v1  ;;  %1115 = vmatprep.subr.bf16.mxu1 (!%p139_p2), %v1139_v1 }
   0xb   : > { %1069 = vmatpush3.bf16.msra.mxu0 (!%p139_p2), %v1139_v1  ;;  %1123 = vmatpush3.bf16.msra.mxu1 (!%p139_p2), %v1139_v1 }
   0xc   : > { %1070 = vmatprep.subr.bf16.mxu0 (!%p139_p2), %v1140_v2  ;;  %1116 = vmatprep.subr.bf16.mxu1 (!%p139_p2), %v1140_v2 }
   0xd   : > { %s1322_s16 = smov (!%p163_p3, %s852_s16), 63 }
   0xe   : > { %s853_s21 = sshll.u32 %s1322_s16, 2 }
   0xf   : > { %s1215_s24 = scalar_lea.vmem %s1317_s0, %s853_s21  ;;  %1071 = vmatpush3.bf16.msra.mxu0 %v1140_v2  ;;  %1124 = vmatpush3.bf16.msra.mxu1 %v1140_v2  ;;  %s1268_s13 = scalar_lea.vmem %s1320_s3, %s853_s21 }
  0x10   : > { %v1146_v4 = vld [vmem:[%s1215_s24] sm:$0xff]   ;;  %1072 = vmatprep.subr.bf16.mxu0 %v1141_v3  ;;  %1117 = vmatprep.subr.bf16.mxu1 %v1141_v3  ;;  %v1148_v10 = vld [vmem:[%s1215_s24 + $0x8] sm:$0xff]   ;;  %v1150_v12 = vld [vmem:[%s1215_s24 + $0x10] sm:$0xff]  }
  0x11   : > { %v1147_v5 = vld [vmem:[%s1215_s24 + $0x40] sm:$0xff]   ;;  %1082 = vmatprep.mubr.bf16.mxu0 %v1146_v4  ;;  %v1149_v11 = vld [vmem:[%s1215_s24 + $0x48] sm:$0xff]   ;;  %v1151_v13 = vld [vmem:[%s1215_s24 + $0x50] sm:$0xff]  }
  0x12   : > { %1098 = vmatprep.mubr.bf16.mxu1 %v1147_v5  ;;  %v1152_v14 = vld [vmem:[%s1215_s24 + $0x18] sm:$0xff]   ;;  %v1154_v16 = vld [vmem:[%s1215_s24 + $0x20] sm:$0xff]   ;;  %v1156_v18 = vld [vmem:[%s1215_s24 + $0x28] sm:$0xff]  }
  0x13   : > { %1073 = vmatpush3.bf16.msra.mxu0 %v1141_v3  ;;  %1125 = vmatpush3.bf16.msra.mxu1 %v1141_v3  ;;  %v1153_v15 = vld [vmem:[%s1215_s24 + $0x58] sm:$0xff]   ;;  %v1155_v17 = vld [vmem:[%s1215_s24 + $0x60] sm:$0xff]   ;;  %v1157_v19 = vld [vmem:[%s1215_s24 + $0x68] sm:$0xff]  }
  0x14   : > { %1074 = vmatprep.subr.bf16.mxu0 %v1142_v6  ;;  %1118 = vmatprep.subr.bf16.mxu1 %v1142_v6  ;;  %v1158_v20 = vld [vmem:[%s1215_s24 + $0x30] sm:$0xff]   ;;  %v1160_v22 = vld [vmem:[%s1215_s24 + $0x38] sm:$0xff]  }
  0x15   : > { %v1159_v21 = vld [vmem:[%s1215_s24 + $0x70] sm:$0xff]   ;;  %v1161_v23 = vld [vmem:[%s1215_s24 + $0x78] sm:$0xff]  }
  0x17   : > { %1075 = vmatpush3.bf16.msra.mxu0 %v1142_v6  ;;  %1126 = vmatpush3.bf16.msra.mxu1 %v1142_v6 }
  0x18   : > { %1076 = vmatprep.subr.bf16.mxu0 %v1143_v7  ;;  %1119 = vmatprep.subr.bf16.mxu1 %v1143_v7 }
  0x1b   : > { %1077 = vmatpush3.bf16.msra.mxu0 %v1143_v7  ;;  %1127 = vmatpush3.bf16.msra.mxu1 %v1143_v7 }
  0x1c   : > { %1078 = vmatprep.subr.bf16.mxu0 %v1144_v8  ;;  %1120 = vmatprep.subr.bf16.mxu1 %v1144_v8 }
  0x1f   : > { %1079 = vmatpush3.bf16.msra.mxu0 %v1144_v8  ;;  %1128 = vmatpush3.bf16.msra.mxu1 %v1144_v8 }
  0x20   : > { %1080 = vmatprep.subr.bf16.mxu0 %v1145_v9  ;;  %1121 = vmatprep.subr.bf16.mxu1 %v1145_v9 }
  0x23   : > { %1081 = vmatpush3.bf16.msra.mxu0 %v1145_v9  ;;  %1129 = vmatpush3.bf16.msra.mxu1 %v1145_v9 }
  0x26   : > { %1083 = vmatmul.mubr.bf16.vlgmr.msra.gmra.mrb[0].mxu0 %v1148_v10  ;;  %1099 = vmatmul.mubr.bf16.vlgmr.msra.gmra.mrb[0].mxu1 %v1149_v11 }
  0x27   : > { %1086 = vmatprep.mubr.bf16.mxu0 %v1150_v12  ;;  %1102 = vmatprep.mubr.bf16.mxu1 %v1151_v13 }
  0x2e   : > { %1087 = vmatmul.mubr.bf16.gmra.mrb[4].mxu0 %v1152_v14  ;;  %1103 = vmatmul.mubr.bf16.gmra.mrb[4].mxu1 %v1153_v15 }
  0x2f   : > { %1090 = vmatprep.mubr.bf16.mxu0 %v1154_v16  ;;  %1106 = vmatprep.mubr.bf16.mxu1 %v1155_v17 }
  0x36   : > { %1091 = vmatmul.mubr.bf16.gmra.mrb[8].mxu0 %v1156_v18  ;;  %1107 = vmatmul.mubr.bf16.gmra.mrb[8].mxu1 %v1157_v19 }
  0x37   : > { %1094 = vmatprep.mubr.bf16.mxu0 %v1158_v20  ;;  %1110 = vmatprep.mubr.bf16.mxu1 %v1159_v21 }
  0x3e   : > { %1095 = vmatmul.mubr.bf16.gmra.mrb[12].mxu0 %v1160_v22  ;;  %1111 = vmatmul.mubr.bf16.gmra.mrb[12].mxu1 %v1161_v23 }
  0xf9   : > { %v1084_v25 = vpop.f32.mrb[0].mxu0  ;;  %v1100_v26 = vpop.f32.mrb[0].mxu1 }
  0xfa   : > { %v417_v27 = vadd.f32 %v1084_v25, %v1251_v24  ;;  %v481_v28 = vadd.f32 %v1100_v26, %v1251_v24  ;;  %v408_v29 = vpop.f32.mrb[1].mxu0  ;;  %v472_v30 = vpop.f32.mrb[1].mxu1 }
  0xfb   : > { %v409_v31 = vadd.f32 %v1251_v24, %v408_v29  ;;  %v473_v32 = vadd.f32 %v1251_v24, %v472_v30  ;;  %v1085_v33 = vpop.f32.mrb[2].mxu0  ;;  %v1101_v34 = vpop.f32.mrb[2].mxu1 }
  0xfc   : > { %vm537_vm0 = vcmp.ge.f32.partialorder %v417_v27, 0.0  ;;  %v569_v35 = vmul.f32 0.2, %v417_v27  ;;  %vm553_vm1 = vcmp.ge.f32.partialorder %v481_v28, 0.0  ;;  %v585_v36 = vmul.f32 0.2, %v481_v28 }
  0xfd   : > { %vm535_vm2 = vcmp.ge.f32.partialorder %v409_v31, 0.0  ;;  %v567_v37 = vmul.f32 0.2, %v409_v31  ;;  %vm551_vm3 = vcmp.ge.f32.partialorder %v473_v32, 0.0  ;;  %v583_v38 = vmul.f32 0.2, %v473_v32 }
  0xfe   : > { %v420_v39 = vadd.f32 %v1085_v33, %v1251_v24  ;;  %v484_v40 = vadd.f32 %v1101_v34, %v1251_v24  ;;  %v411_v41 = vpop.f32.mrb[3].mxu0  ;;  %v475_v42 = vpop.f32.mrb[3].mxu1  ;;  %v601_v43 = vsel %vm537_vm0, %v417_v27, %v569_v35  ;;  %v617_v44 = vsel %vm553_vm1, %v481_v28, %v585_v36 }
  0xff   : > { %v412_v45 = vadd.f32 %v1251_v24, %v411_v41  ;;  %v476_v46 = vadd.f32 %v1251_v24, %v475_v42  ;;  %v599_v51 = vsel %vm535_vm2, %v409_v31, %v567_v37  ;;  %v615_v52 = vsel %vm551_vm3, %v473_v32, %v583_v38 }
 0x100   : > { %vm538_vm4 = vcmp.ge.f32.partialorder %v420_v39, 0.0  ;;  %v570_v47 = vmul.f32 0.2, %v420_v39  ;;  %vm554_vm5 = vcmp.ge.f32.partialorder %v484_v40, 0.0  ;;  %v586_v48 = vmul.f32 0.2, %v484_v40 }
 0x101   : > { %vm536_vm6 = vcmp.ge.f32.partialorder %v412_v45, 0.0  ;;  %v568_v49 = vmul.f32 0.2, %v412_v45  ;;  %vm552_vm7 = vcmp.ge.f32.partialorder %v476_v46, 0.0  ;;  %v584_v50 = vmul.f32 0.2, %v476_v46 }
 0x102   : > { %v602_v53 = vsel %vm538_vm4, %v420_v39, %v570_v47  ;;  %v618_v54 = vsel %vm554_vm5, %v484_v40, %v586_v48  ;;  %v1088_v55 = vpop.f32.mrb[4].mxu0  ;;  %v1104_v56 = vpop.f32.mrb[4].mxu1 }
 0x103   : > { %v955_v57 = vpack.c.bf16 %v602_v53, %v601_v43  ;;  %v995_v58 = vpack.c.bf16 %v618_v54, %v617_v44  ;;  %v600_v59 = vsel %vm536_vm6, %v412_v45, %v568_v49  ;;  %v616_v60 = vsel %vm552_vm7, %v476_v46, %v584_v50  ;;  %v424_v61 = vpop.f32.mrb[5].mxu0  ;;  %v488_v62 = vpop.f32.mrb[5].mxu1 }
 0x104   : > { %v950_v63 = vpack.c.bf16 %v600_v59, %v599_v51  ;;  %v990_v0 = vpack.c.bf16 %v616_v60, %v615_v52  ;;  %v433_v1 = vadd.f32 %v1088_v55, %v1251_v24  ;;  %v497_v2 = vadd.f32 %v1104_v56, %v1251_v24  ;;  %v1089_v3 = vpop.f32.mrb[6].mxu0  ;;  %v1105_v4 = vpop.f32.mrb[6].mxu1 }
 0x105   : > { %1027 = vst [vmem:[%s1268_s13 + $0x8] sm:$0xff] %v955_v57   ;;  %1035 = vst [vmem:[%s1268_s13 + $0x48] sm:$0xff] %v995_v58   ;;  %v425_v5 = vadd.f32 %v1251_v24, %v424_v61  ;;  %v489_v6 = vadd.f32 %v1251_v24, %v488_v62  ;;  %v436_v7 = vadd.f32 %v1089_v3, %v1251_v24  ;;  %v427_v9 = vpop.f32.mrb[7].mxu0  ;;  %v491_v10 = vpop.f32.mrb[7].mxu1 }
 0x106   : > { %v500_v8 = vadd.f32 %v1105_v4, %v1251_v24  ;;  %951 = vst [vmem:[%s1268_s13] sm:$0xff] %v950_v63   ;;  %1034 = vst [vmem:[%s1268_s13 + $0x40] sm:$0xff] %v990_v0   ;;  %vm541_vm8 = vcmp.ge.f32.partialorder %v433_v1, 0.0  ;;  %v573_v11 = vmul.f32 0.2, %v433_v1  ;;  %vm557_vm9 = vcmp.ge.f32.partialorder %v497_v2, 0.0 }
 0x107   : > { %v589_v12 = vmul.f32 0.2, %v497_v2  ;;  %vm539_vm10 = vcmp.ge.f32.partialorder %v425_v5, 0.0  ;;  %v571_v13 = vmul.f32 0.2, %v425_v5  ;;  %vm555_vm11 = vcmp.ge.f32.partialorder %v489_v6, 0.0 }
 0x108   : > { %v605_v14 = vsel %vm541_vm8, %v433_v1, %v573_v11  ;;  %v587_v15 = vmul.f32 0.2, %v489_v6  ;;  %vm542_vm12 = vcmp.ge.f32.partialorder %v436_v7, 0.0  ;;  %v574_v16 = vmul.f32 0.2, %v436_v7 }
 0x109   : > { %v621_v17 = vsel %vm557_vm9, %v497_v2, %v589_v12  ;;  %v603_v18 = vsel %vm539_vm10, %v425_v5, %v571_v13  ;;  %vm558_vm13 = vcmp.ge.f32.partialorder %v500_v8, 0.0  ;;  %v590_v19 = vmul.f32 0.2, %v500_v8  ;;  %v1092_v20 = vpop.f32.mrb[8].mxu0  ;;  %v1108_v21 = vpop.f32.mrb[8].mxu1 }
 0x10a   : > { %v606_v22 = vsel %vm542_vm12, %v436_v7, %v574_v16  ;;  %v428_v23 = vadd.f32 %v1251_v24, %v427_v9  ;;  %v492_v25 = vadd.f32 %v1251_v24, %v491_v10  ;;  %v449_v26 = vadd.f32 %v1092_v20, %v1251_v24  ;;  %v440_v27 = vpop.f32.mrb[9].mxu0  ;;  %v504_v28 = vpop.f32.mrb[9].mxu1 }
 0x10b   : > { %v965_v29 = vpack.c.bf16 %v606_v22, %v605_v14  ;;  %v622_v30 = vsel %vm558_vm13, %v500_v8, %v590_v19  ;;  %v513_v31 = vadd.f32 %v1108_v21, %v1251_v24  ;;  %v441_v32 = vadd.f32 %v1251_v24, %v440_v27  ;;  %v1093_v33 = vpop.f32.mrb[10].mxu0  ;;  %v1109_v34 = vpop.f32.mrb[10].mxu1 }
 0x10c   : > { %v1005_v35 = vpack.c.bf16 %v622_v30, %v621_v17  ;;  %vm540_vm14 = vcmp.ge.f32.partialorder %v428_v23, 0.0  ;;  %v572_v36 = vmul.f32 0.2, %v428_v23  ;;  %vm556_vm15 = vcmp.ge.f32.partialorder %v492_v25, 0.0  ;;  %v443_v37 = vpop.f32.mrb[11].mxu0  ;;  %v507_v38 = vpop.f32.mrb[11].mxu1 }
 0x10d   : > { %1029 = vst [vmem:[%s1268_s13 + $0x18] sm:$0xff] %v965_v29   ;;  %v588_v39 = vmul.f32 0.2, %v492_v25  ;;  %vm545_vm0 = vcmp.ge.f32.partialorder %v449_v26, 0.0  ;;  %v577_v40 = vmul.f32 0.2, %v449_v26  ;;  %v619_v41 = vsel %vm555_vm11, %v489_v6, %v587_v15 }
 0x10e   : > { %vm561_vm1 = vcmp.ge.f32.partialorder %v513_v31, 0.0  ;;  %1037 = vst [vmem:[%s1268_s13 + $0x58] sm:$0xff] %v1005_v35   ;;  %v604_v42 = vsel %vm540_vm14, %v428_v23, %v572_v36  ;;  %v593_v43 = vmul.f32 0.2, %v513_v31  ;;  %vm543_vm2 = vcmp.ge.f32.partialorder %v441_v32, 0.0 }
 0x10f   : > { %v960_v44 = vpack.c.bf16 %v604_v42, %v603_v18  ;;  %v620_v45 = vsel %vm556_vm15, %v492_v25, %v588_v39  ;;  %v575_v46 = vmul.f32 0.2, %v441_v32  ;;  %v505_v47 = vadd.f32 %v1251_v24, %v504_v28 }
 0x110   : > { %v1000_v48 = vpack.c.bf16 %v620_v45, %v619_v41  ;;  %v609_v49 = vsel %vm545_vm0, %v449_v26, %v577_v40  ;;  %v625_v50 = vsel %vm561_vm1, %v513_v31, %v593_v43  ;;  %v452_v51 = vadd.f32 %v1093_v33, %v1251_v24 }
 0x111   : > { %1028 = vst [vmem:[%s1268_s13 + $0x10] sm:$0xff] %v960_v44   ;;  %vm559_vm3 = vcmp.ge.f32.partialorder %v505_v47, 0.0  ;;  %v591_v52 = vmul.f32 0.2, %v505_v47  ;;  %v516_v53 = vadd.f32 %v1109_v34, %v1251_v24  ;;  %v444_v54 = vadd.f32 %v1251_v24, %v443_v37  ;;  %v1096_v55 = vpop.f32.mrb[12].mxu0  ;;  %v1112_v56 = vpop.f32.mrb[12].mxu1 }
 0x112   : > { %1036 = vst [vmem:[%s1268_s13 + $0x50] sm:$0xff] %v1000_v48   ;;  %vm546_vm4 = vcmp.ge.f32.partialorder %v452_v51, 0.0  ;;  %v578_v57 = vmul.f32 0.2, %v452_v51  ;;  %v508_v58 = vadd.f32 %v1251_v24, %v507_v38  ;;  %v465_v59 = vadd.f32 %v1096_v55, %v1251_v24  ;;  %v456_v60 = vpop.f32.mrb[13].mxu0  ;;  %v520_v61 = vpop.f32.mrb[13].mxu1 }
 0x113   : > { %v607_v62 = vsel %vm543_vm2, %v441_v32, %v575_v46  ;;  %vm562_vm5 = vcmp.ge.f32.partialorder %v516_v53, 0.0  ;;  %v594_v63 = vmul.f32 0.2, %v516_v53  ;;  %vm544_vm6 = vcmp.ge.f32.partialorder %v444_v54, 0.0  ;;  %v1097_v0 = vpop.f32.mrb[14].mxu0  ;;  %v1113_v1 = vpop.f32.mrb[14].mxu1 }
 0x114   : > { %v610_v2 = vsel %vm546_vm4, %v452_v51, %v578_v57  ;;  %v576_v3 = vmul.f32 0.2, %v444_v54  ;;  %vm560_vm7 = vcmp.ge.f32.partialorder %v508_v58, 0.0  ;;  %v592_v4 = vmul.f32 0.2, %v508_v58  ;;  %v459_v5 = vpop.f32.mrb[15].mxu0 }
 0x115   : > { %v623_v6 = vsel %vm559_vm3, %v505_v47, %v591_v52  ;;  %v975_v7 = vpack.c.bf16 %v610_v2, %v609_v49  ;;  %v626_v8 = vsel %vm562_vm5, %v516_v53, %v594_v63  ;;  %v581_v9 = vmul.f32 0.2, %v465_v59  ;;  %v523_v10 = vpop.f32.mrb[15].mxu1 }
 0x116   : > { %v1015_v11 = vpack.c.bf16 %v626_v8, %v625_v50  ;;  %v608_v12 = vsel %vm544_vm6, %v444_v54, %v576_v3  ;;  %v624_v13 = vsel %vm560_vm7, %v508_v58, %v592_v4  ;;  %v529_v14 = vadd.f32 %v1112_v56, %v1251_v24 }
 0x117   : > { %1031 = vst [vmem:[%s1268_s13 + $0x28] sm:$0xff] %v975_v7   ;;  %v970_v15 = vpack.c.bf16 %v608_v12, %v607_v62  ;;  %v1010_v16 = vpack.c.bf16 %v624_v13, %v623_v6  ;;  %vm549_vm8 = vcmp.ge.f32.partialorder %v465_v59, 0.0  ;;  %v457_v17 = vadd.f32 %v1251_v24, %v456_v60 }
 0x118   : > { %1039 = vst [vmem:[%s1268_s13 + $0x68] sm:$0xff] %v1015_v11   ;;  %vm565_vm9 = vcmp.ge.f32.partialorder %v529_v14, 0.0  ;;  %v597_v18 = vmul.f32 0.2, %v529_v14  ;;  %v521_v19 = vadd.f32 %v1251_v24, %v520_v61  ;;  %v468_v20 = vadd.f32 %v1097_v0, %v1251_v24 }
 0x119   : > { %1030 = vst [vmem:[%s1268_s13 + $0x20] sm:$0xff] %v970_v15   ;;  %1038 = vst [vmem:[%s1268_s13 + $0x60] sm:$0xff] %v1010_v16   ;;  %v579_v21 = vmul.f32 0.2, %v457_v17  ;;  %v532_v22 = vadd.f32 %v1113_v1, %v1251_v24  ;;  %v460_v23 = vadd.f32 %v1251_v24, %v459_v5  ;;  %v613_v25 = vsel %vm549_vm8, %v465_v59, %v581_v9 }
 0x11a   : > { %vm547_vm10 = vcmp.ge.f32.partialorder %v457_v17, 0.0  ;;  %vm550_vm11 = vcmp.ge.f32.partialorder %v468_v20, 0.0  ;;  %v629_v26 = vsel %vm565_vm9, %v529_v14, %v597_v18  ;;  %v582_v27 = vmul.f32 0.2, %v468_v20 }
 0x11b   : > { %vm566_vm12 = vcmp.ge.f32.partialorder %v532_v22, 0.0  ;;  %v598_v28 = vmul.f32 0.2, %v532_v22  ;;  %vm563_vm13 = vcmp.ge.f32.partialorder %v521_v19, 0.0  ;;  %vm548_vm14 = vcmp.ge.f32.partialorder %v460_v23, 0.0 }
 0x11c   : > { %v580_v29 = vmul.f32 0.2, %v460_v23  ;;  %v524_v30 = vadd.f32 %v1251_v24, %v523_v10  ;;  %v611_v31 = vsel %vm547_vm10, %v457_v17, %v579_v21  ;;  %v595_v32 = vmul.f32 0.2, %v521_v19 }
 0x11d   : > { %v614_v33 = vsel %vm550_vm11, %v468_v20, %v582_v27  ;;  %v630_v34 = vsel %vm566_vm12, %v532_v22, %v598_v28 }
 0x11e   : > { %v985_v35 = vpack.c.bf16 %v614_v33, %v613_v25  ;;  %v1025_v36 = vpack.c.bf16 %v630_v34, %v629_v26  ;;  %v612_v37 = vsel %vm548_vm14, %v460_v23, %v580_v29  ;;  %vm564_vm15 = vcmp.ge.f32.partialorder %v524_v30, 0.0 }
 0x11f   : > { %v980_v38 = vpack.c.bf16 %v612_v37, %v611_v31  ;;  %v596_v39 = vmul.f32 0.2, %v524_v30  ;;  %v627_v40 = vsel %vm563_vm13, %v521_v19, %v595_v32 }
 0x120   : > { %1033 = vst [vmem:[%s1268_s13 + $0x38] sm:$0xff] %v985_v35   ;;  %1041 = vst [vmem:[%s1268_s13 + $0x78] sm:$0xff] %v1025_v36  }
 0x121   : > { %1032 = vst [vmem:[%s1268_s13 + $0x30] sm:$0xff] %v980_v38   ;;  %v628_v41 = vsel %vm564_vm15, %v524_v30, %v596_v39 }
 0x122   : > { %v1020_v42 = vpack.c.bf16 %v628_v41, %v627_v40 }
 0x124   : > { %1040 = vst [vmem:[%s1268_s13 + $0x70] sm:$0xff] %v1020_v42  }
 0x125 PF: > { %s13_s12 = sadd.s32 1, %s1168_s12  }
 0x126   : > { %p10_p4 = scmp.ge.s32.totalorder %s13_s12, 4  }
 0x128   :  { %12 = sbr.rel (!%p10_p4) target bundleno = 1 (0x1), region = 62 }

// kernel: _lambda_.6
= control target key start
LH: loop header
LB: loop body
LE: loop exit
PB: predicated region body
PF: predicated region fallthrough
CT: control target
= control target key end

     0   :  { %s4924_s1 = inlined_call_operand.vmem [shape: bf16[2048,128], index: 1, kind: input, shape index: {}]   ;;  %s4925_s0 = inlined_call_operand.vmem [shape: bf16[128,2048], index: 0, kind: input, shape index: {}]   ;;  %s4926_s2 = inlined_call_operand.vmem [shape: f32[1,128], index: 2, kind: input, shape index: {}]   ;;  %s4927_s3 = inlined_call_operand.vmem [shape: f32[1,128], index: 3, kind: input, shape index: {}]   ;;  %s4928_s4 = inlined_call_operand.vmem [shape: bf16[128,128], index: 4, kind: output, shape index: {}]  }
   0x1   :  { %v3691_v0 = vld [vmem:[%s4924_s1 + $0x40] sm:$0xff]   ;;  %v3695_v4 = vld [vmem:[%s4924_s1 + $0x48] sm:$0xff]   ;;  %v3699_v8 = vld [vmem:[%s4924_s1 + $0x50] sm:$0xff]  }
   0x2   :  { %v3692_v1 = vld [vmem:[%s4924_s1 + $0xc0] sm:$0xff]   ;;  %3179 = vmatprep.subr.bf16.mxu0 %v3691_v0  ;;  %v3696_v5 = vld [vmem:[%s4924_s1 + $0xc8] sm:$0xff]   ;;  %v3700_v9 = vld [vmem:[%s4924_s1 + $0xd0] sm:$0xff]  }
   0x3   :  { %v3693_v2 = vld [vmem:[%s4924_s1] sm:$0xff]   ;;  %3243 = vmatprep.subr.bf16.mxu1 %v3692_v1  ;;  %v3697_v6 = vld [vmem:[%s4924_s1 + $0x8] sm:$0xff]   ;;  %v3701_v10 = vld [vmem:[%s4924_s1 + $0x10] sm:$0xff]  }
   0x4   :  { %v3694_v3 = vld [vmem:[%s4924_s1 + $0x80] sm:$0xff]   ;;  %3180 = vmatpush3.bf16.msra.mxu0 %v3693_v2  ;;  %v3698_v7 = vld [vmem:[%s4924_s1 + $0x88] sm:$0xff]   ;;  %v3702_v11 = vld [vmem:[%s4924_s1 + $0x90] sm:$0xff]  }
   0x5   :  { %3244 = vmatpush3.bf16.msra.mxu1 %v3694_v3  ;;  %3181 = vmatprep.subr.bf16.mxu0 %v3695_v4  ;;  %v3703_v12 = vld [vmem:[%s4924_s1 + $0x58] sm:$0xff]   ;;  %v3707_v16 = vld [vmem:[%s4924_s1 + $0x60] sm:$0xff]   ;;  %v3711_v20 = vld [vmem:[%s4924_s1 + $0x68] sm:$0xff]  }
   0x6   :  { %3245 = vmatprep.subr.bf16.mxu1 %v3696_v5  ;;  %v3704_v13 = vld [vmem:[%s4924_s1 + $0xd8] sm:$0xff]   ;;  %v3708_v17 = vld [vmem:[%s4924_s1 + $0xe0] sm:$0xff]   ;;  %v3712_v21 = vld [vmem:[%s4924_s1 + $0xe8] sm:$0xff]  }
   0x7   :  { %v3705_v14 = vld [vmem:[%s4924_s1 + $0x18] sm:$0xff]   ;;  %v3709_v18 = vld [vmem:[%s4924_s1 + $0x20] sm:$0xff]   ;;  %v3713_v22 = vld [vmem:[%s4924_s1 + $0x28] sm:$0xff]  }
   0x8   :  { %3182 = vmatpush3.bf16.msra.mxu0 %v3697_v6  ;;  %v3706_v15 = vld [vmem:[%s4924_s1 + $0x98] sm:$0xff]   ;;  %v3710_v19 = vld [vmem:[%s4924_s1 + $0xa0] sm:$0xff]   ;;  %v3714_v23 = vld [vmem:[%s4924_s1 + $0xa8] sm:$0xff]  }
   0x9   :  { %3246 = vmatpush3.bf16.msra.mxu1 %v3698_v7  ;;  %3183 = vmatprep.subr.bf16.mxu0 %v3699_v8  ;;  %v3715_v24 = vld [vmem:[%s4924_s1 + $0x70] sm:$0xff]   ;;  %v3719_v28 = vld [vmem:[%s4924_s1 + $0x78] sm:$0xff]   ;;  %v18_v32 = vld [vmem:[%s4925_s0] sm:$0xff] }
   0xa   :  { %3247 = vmatprep.subr.bf16.mxu1 %v3700_v9  ;;  %v3716_v25 = vld [vmem:[%s4924_s1 + $0xf0] sm:$0xff]   ;;  %v3720_v29 = vld [vmem:[%s4924_s1 + $0xf8] sm:$0xff]   ;;  %v26_v33 = vld [vmem:[%s4925_s0 + $0x40] sm:$0xff] }
   0xb   :  { %v3717_v26 = vld [vmem:[%s4924_s1 + $0x30] sm:$0xff]   ;;  %v3721_v30 = vld [vmem:[%s4924_s1 + $0x38] sm:$0xff]   ;;  %v19_v34 = vld [vmem:[%s4925_s0 + $0x8] sm:$0xff]  ;;  %v2843_v35 = vcombine.low %v18_v32, %v26_v33  ;;  %v2844_v36 = vcombine.high %v18_v32, %v26_v33 }
   0xc   :  { %3184 = vmatpush3.bf16.msra.mxu0 %v3701_v10  ;;  %v3718_v27 = vld [vmem:[%s4924_s1 + $0xb0] sm:$0xff]   ;;  %v3722_v31 = vld [vmem:[%s4924_s1 + $0xb8] sm:$0xff]   ;;  %v27_v37 = vld [vmem:[%s4925_s0 + $0x48] sm:$0xff] }
   0xd   :  { %3248 = vmatpush3.bf16.msra.mxu1 %v3702_v11  ;;  %3185 = vmatprep.subr.bf16.mxu0 %v3703_v12  ;;  %v2845_v38 = vcombine.low %v19_v34, %v27_v37  ;;  %v2846_v39 = vcombine.high %v19_v34, %v27_v37  ;;  %v3723_v40 = vld [vmem:[%s4924_s1 + $0x140] sm:$0xff]   ;;  %v35_v47 = vld [vmem:[%s4925_s0 + $0x88] sm:$0xff]  ;;  %v3731_v62 = vld [vmem:[%s4924_s1 + $0x150] sm:$0xff]  }
   0xe   :  { %3249 = vmatprep.subr.bf16.mxu1 %v3704_v13  ;;  %1842 = vmatprep.mubr.bf16.mxu0 %v2844_v36  ;;  %v3724_v41 = vld [vmem:[%s4924_s1 + $0x100] sm:$0xff]   ;;  %v43_v48 = vld [vmem:[%s4925_s0 + $0xc8] sm:$0xff]  ;;  %v3732_v63 = vld [vmem:[%s4924_s1 + $0x110] sm:$0xff]  }
   0xf   :  { %1939 = vmatprep.mubr.bf16.mxu1 %v2846_v39  ;;  %v3725_v42 = vld [vmem:[%s4924_s1 + $0x1c0] sm:$0xff]   ;;  %v2862_v49 = vcombine.high %v35_v47, %v43_v48  ;;  %v3727_v50 = vld [vmem:[%s4924_s1 + $0x148] sm:$0xff]   ;;  %v2861_v53 = vcombine.low %v35_v47, %v43_v48  ;;  %v3733_v0 = vld [vmem:[%s4924_s1 + $0x1d0] sm:$0xff]  }
  0x10   :  { %3186 = vmatpush3.bf16.msra.mxu0 %v3705_v14  ;;  %v3726_v43 = vld [vmem:[%s4924_s1 + $0x180] sm:$0xff]   ;;  %v3728_v52 = vld [vmem:[%s4924_s1 + $0x108] sm:$0xff]   ;;  %v3734_v1 = vld [vmem:[%s4924_s1 + $0x190] sm:$0xff]  }
  0x11   :  { %3250 = vmatpush3.bf16.msra.mxu1 %v3706_v15  ;;  %3187 = vmatprep.subr.bf16.mxu0 %v3707_v16  ;;  %v34_v44 = vld [vmem:[%s4925_s0 + $0x80] sm:$0xff]  ;;  %v3729_v54 = vld [vmem:[%s4924_s1 + $0x1c8] sm:$0xff]   ;;  %v3735_v10 = vld [vmem:[%s4924_s1 + $0x158] sm:$0xff]  }
  0x12   :  { %3251 = vmatprep.subr.bf16.mxu1 %v3708_v17  ;;  %v42_v45 = vld [vmem:[%s4925_s0 + $0xc0] sm:$0xff]  ;;  %v3730_v55 = vld [vmem:[%s4924_s1 + $0x188] sm:$0xff]   ;;  %v3736_v11 = vld [vmem:[%s4924_s1 + $0x118] sm:$0xff]  }
  0x13   :  { %v2860_v46 = vcombine.high %v34_v44, %v42_v45  ;;  %v2859_v51 = vcombine.low %v34_v44, %v42_v45  ;;  %v50_v56 = vld [vmem:[%s4925_s0 + $0x100] sm:$0xff]  ;;  %v51_v58 = vld [vmem:[%s4925_s0 + $0x108] sm:$0xff]  ;;  %v3737_v12 = vld [vmem:[%s4924_s1 + $0x1d8] sm:$0xff]  }
  0x14   :  { %3188 = vmatpush3.bf16.msra.mxu0 %v3709_v18  ;;  %v58_v57 = vld [vmem:[%s4925_s0 + $0x140] sm:$0xff]  ;;  %v59_v59 = vld [vmem:[%s4925_s0 + $0x148] sm:$0xff]  ;;  %v3738_v13 = vld [vmem:[%s4924_s1 + $0x198] sm:$0xff]  }
  0x15   :  { %3252 = vmatpush3.bf16.msra.mxu1 %v3710_v19  ;;  %3189 = vmatprep.subr.bf16.mxu0 %v3711_v20  ;;  %v2876_v60 = vcombine.high %v50_v56, %v58_v57  ;;  %v2878_v61 = vcombine.high %v51_v58, %v59_v59  ;;  %v2875_v2 = vcombine.low %v50_v56, %v58_v57  ;;  %v66_v3 = vld [vmem:[%s4925_s0 + $0x180] sm:$0xff]  ;;  %v67_v5 = vld [vmem:[%s4925_s0 + $0x188] sm:$0xff]  ;;  %v3748_v39 = vld [vmem:[%s4924_s1 + $0x130] sm:$0xff]  }
  0x16   :  { %3253 = vmatprep.subr.bf16.mxu1 %v3712_v21  ;;  %v74_v4 = vld [vmem:[%s4925_s0 + $0x1c0] sm:$0xff]  ;;  %v2877_v6 = vcombine.low %v51_v58, %v59_v59  ;;  %v75_v8 = vld [vmem:[%s4925_s0 + $0x1c8] sm:$0xff]  ;;  %v3752_v48 = vld [vmem:[%s4924_s1 + $0x138] sm:$0xff]  }
  0x17   :  { %v2892_v7 = vcombine.high %v66_v3, %v74_v4  ;;  %v2894_v9 = vcombine.high %v67_v5, %v75_v8  ;;  %v82_v14 = vld [vmem:[%s4925_s0 + $0x200] sm:$0xff]  ;;  %v83_v16 = vld [vmem:[%s4925_s0 + $0x208] sm:$0xff]  ;;  %v2891_v19 = vcombine.low %v66_v3, %v74_v4  ;;  %v2893_v21 = vcombine.low %v67_v5, %v75_v8  ;;  %v29_v3 = vld [vmem:[%s4925_s0 + $0x58] sm:$0xff] }
  0x18   :  { %3190 = vmatpush3.bf16.msra.mxu0 %v3713_v22  ;;  %v90_v15 = vld [vmem:[%s4925_s0 + $0x240] sm:$0xff]  ;;  %v91_v17 = vld [vmem:[%s4925_s0 + $0x248] sm:$0xff]  ;;  %v36_v8 = vld [vmem:[%s4925_s0 + $0x90] sm:$0xff] }
  0x19   :  { %3254 = vmatpush3.bf16.msra.mxu1 %v3714_v23  ;;  %3191 = vmatprep.subr.bf16.mxu0 %v3715_v24  ;;  %v3739_v18 = vld [vmem:[%s4924_s1 + $0x160] sm:$0xff]   ;;  %v2908_v22 = vcombine.high %v82_v14, %v90_v15  ;;  %v2910_v24 = vcombine.high %v83_v16, %v91_v17  ;;  %v3745_v32 = vld [vmem:[%s4924_s1 + $0x1e8] sm:$0xff]   ;;  %v2907_v34 = vcombine.low %v82_v14, %v90_v15 }
  0x1a   :  { %3255 = vmatprep.subr.bf16.mxu1 %v3716_v25  ;;  %v3740_v20 = vld [vmem:[%s4924_s1 + $0x120] sm:$0xff]   ;;  %v3746_v33 = vld [vmem:[%s4924_s1 + $0x1a8] sm:$0xff]  }
  0x1b   :  { %v3741_v23 = vld [vmem:[%s4924_s1 + $0x1e0] sm:$0xff]   ;;  %v115_v44 = vld [vmem:[%s4925_s0 + $0x308] sm:$0xff] }
  0x1c   :  { %3192 = vmatpush3.bf16.msra.mxu0 %v3717_v26  ;;  %v3742_v25 = vld [vmem:[%s4924_s1 + $0x1a0] sm:$0xff]   ;;  %v123_v45 = vld [vmem:[%s4925_s0 + $0x348] sm:$0xff] }
  0x1d   :  { %3256 = vmatpush3.bf16.msra.mxu1 %v3718_v27  ;;  %3193 = vmatprep.subr.bf16.mxu0 %v3719_v28  ;;  %v98_v26 = vld [vmem:[%s4925_s0 + $0x280] sm:$0xff]  ;;  %v3743_v28 = vld [vmem:[%s4924_s1 + $0x168] sm:$0xff]  }
  0x1e   :  { %3257 = vmatprep.subr.bf16.mxu1 %v3720_v29  ;;  %v106_v27 = vld [vmem:[%s4925_s0 + $0x2c0] sm:$0xff]  ;;  %v99_v29 = vld [vmem:[%s4925_s0 + $0x288] sm:$0xff] }
  0x1f   :  { %v2924_v36 = vcombine.high %v98_v26, %v106_v27  ;;  %v2923_v47 = vcombine.low %v98_v26, %v106_v27  ;;  %v3755_v56 = vld [vmem:[%s4924_s1 + $0x240] sm:$0xff]   ;;  %v131_v57 = vld [vmem:[%s4925_s0 + $0x388] sm:$0xff]  ;;  %v3763_v26 = vld [vmem:[%s4924_s1 + $0x250] sm:$0xff]  }
  0x20   :  { %3194 = vmatpush3.bf16.msra.mxu0 %v3721_v30  ;;  %v107_v30 = vld [vmem:[%s4925_s0 + $0x2c8] sm:$0xff]  ;;  %v3757_v58 = vld [vmem:[%s4924_s1 + $0x2c0] sm:$0xff]   ;;  %v3765_v27 = vld [vmem:[%s4924_s1 + $0x2d0] sm:$0xff]  }
  0x21   :  { %3258 = vmatpush3.bf16.msra.mxu1 %v3722_v31  ;;  %3307 = vmatprep.subr.bf16.mxu0 %v3723_v40  ;;  %v3744_v31 = vld [vmem:[%s4924_s1 + $0x128] sm:$0xff]   ;;  %v2926_v37 = vcombine.high %v99_v29, %v107_v30  ;;  %v3749_v40 = vld [vmem:[%s4924_s1 + $0x1f0] sm:$0xff]   ;;  %v3758_v15 = vld [vmem:[%s4924_s1 + $0x280] sm:$0xff]  }
  0x22   :  { %3371 = vmatprep.subr.bf16.mxu1 %v3725_v42  ;;  %v122_v42 = vld [vmem:[%s4925_s0 + $0x340] sm:$0xff]  ;;  %v139_v59 = vld [vmem:[%s4925_s0 + $0x3c8] sm:$0xff] }
  0x23   :  { %1843 = vmatmul.mubr.bf16.vlgmr.msra.gmra.mrb[0].mxu0 %v2843_v35  ;;  %v2909_v35 = vcombine.low %v83_v16, %v91_v17  ;;  %v2957_v5 = vcombine.low %v131_v57, %v139_v59  ;;  %v3759_v17 = vld [vmem:[%s4924_s1 + $0x248] sm:$0xff]  }
  0x24   :  { %1940 = vmatmul.mubr.bf16.vlgmr.msra.gmra.mrb[0].mxu1 %v2845_v38  ;;  %3308 = vmatpush3.bf16.msra.mxu0 %v3724_v41  ;;  %v3747_v38 = vld [vmem:[%s4924_s1 + $0x170] sm:$0xff]   ;;  %v114_v41 = vld [vmem:[%s4925_s0 + $0x300] sm:$0xff] }
  0x25   :  { %3372 = vmatpush3.bf16.msra.mxu1 %v3726_v43  ;;  %1850 = vmatprep.mubr.bf16.mxu0 %v2860_v46  ;;  %v3750_v43 = vld [vmem:[%s4924_s1 + $0x1b0] sm:$0xff]   ;;  %v3751_v46 = vld [vmem:[%s4924_s1 + $0x178] sm:$0xff]  }
  0x26   :  { %1947 = vmatprep.mubr.bf16.mxu1 %v2862_v49  ;;  %3309 = vmatprep.subr.bf16.mxu0 %v3727_v50  ;;  %v2925_v49 = vcombine.low %v99_v29, %v107_v30  ;;  %v2940_v50 = vcombine.high %v114_v41, %v122_v42 }
  0x27   :  { %3373 = vmatprep.subr.bf16.mxu1 %v3729_v54  ;;  %v130_v54 = vld [vmem:[%s4925_s0 + $0x380] sm:$0xff] }
  0x28   :  { %3310 = vmatpush3.bf16.msra.mxu0 %v3728_v52  ;;  %v2942_v52 = vcombine.high %v115_v44, %v123_v45 }
  0x29   :  { %3374 = vmatpush3.bf16.msra.mxu1 %v3730_v55  ;;  %3311 = vmatprep.subr.bf16.mxu0 %v3731_v62  ;;  %v138_v55 = vld [vmem:[%s4925_s0 + $0x3c0] sm:$0xff] }
  0x2a   :  { %3375 = vmatprep.subr.bf16.mxu1 %v3733_v0  ;;  %v2956_v62 = vcombine.high %v130_v54, %v138_v55  ;;  %v20_v0 = vld [vmem:[%s4925_s0 + $0x10] sm:$0xff]  ;;  %v2955_v4 = vcombine.low %v130_v54, %v138_v55  ;;  %v85_v54 = vld [vmem:[%s4925_s0 + $0x218] sm:$0xff] }
  0x2b   :  { %1851 = vmatmul.mubr.bf16.gmra.mrb[4].mxu0 %v2859_v51  ;;  %v3753_v51 = vld [vmem:[%s4924_s1 + $0x1f8] sm:$0xff]  }
  0x2c   :  { %1948 = vmatmul.mubr.bf16.gmra.mrb[4].mxu1 %v2861_v53  ;;  %1858 = vmatprep.mubr.bf16.mxu0 %v2876_v60  ;;  %v3754_v53 = vld [vmem:[%s4924_s1 + $0x1b8] sm:$0xff]   ;;  %v2939_v60 = vcombine.low %v114_v41, %v122_v42  ;;  %v3771_v42 = vld [vmem:[%s4924_s1 + $0x260] sm:$0xff]  }
  0x2d   :  { %1955 = vmatprep.mubr.bf16.mxu1 %v2878_v61  ;;  %3312 = vmatpush3.bf16.msra.mxu0 %v3732_v63  ;;  %v2941_v61 = vcombine.low %v115_v44, %v123_v45  ;;  %v2958_v63 = vcombine.high %v131_v57, %v139_v59  ;;  %v3770_v41 = vld [vmem:[%s4924_s1 + $0x298] sm:$0xff]   ;;  %v3773_v44 = vld [vmem:[%s4924_s1 + $0x2e0] sm:$0xff]   ;;  %v3778_v57 = vld [vmem:[%s4924_s1 + $0x2a8] sm:$0xff]  }
  0x2e   :  { %3376 = vmatpush3.bf16.msra.mxu1 %v3734_v1  ;;  %3313 = vmatprep.subr.bf16.mxu0 %v3735_v10  ;;  %v28_v1 = vld [vmem:[%s4925_s0 + $0x50] sm:$0xff]  ;;  %v93_v55 = vld [vmem:[%s4925_s0 + $0x258] sm:$0xff] }
  0x2f   :  { %3377 = vmatprep.subr.bf16.mxu1 %v3737_v12  ;;  %v2847_v10 = vcombine.low %v20_v0, %v28_v1  ;;  %v37_v12 = vld [vmem:[%s4925_s0 + $0x98] sm:$0xff] }
  0x31   :  { %3314 = vmatpush3.bf16.msra.mxu0 %v3736_v11  ;;  %v3756_v11 = vld [vmem:[%s4924_s1 + $0x200] sm:$0xff]  }
  0x32   :  { %3378 = vmatpush3.bf16.msra.mxu1 %v3738_v13  ;;  %3315 = vmatprep.subr.bf16.mxu0 %v3739_v18  ;;  %v45_v13 = vld [vmem:[%s4925_s0 + $0xd8] sm:$0xff] }
  0x33   :  { %1859 = vmatmul.mubr.bf16.gmra.mrb[8].mxu0 %v2875_v2  ;;  %3379 = vmatprep.subr.bf16.mxu1 %v3741_v23  ;;  %v21_v2 = vld [vmem:[%s4925_s0 + $0x18] sm:$0xff]  ;;  %v2866_v18 = vcombine.high %v37_v12, %v45_v13  ;;  %v60_v23 = vld [vmem:[%s4925_s0 + $0x150] sm:$0xff]  ;;  %v2865_v29 = vcombine.low %v37_v12, %v45_v13  ;;  %v3789_v12 = vld [vmem:[%s4924_s1 + $0x3c0] sm:$0xff]   ;;  %v2913_v13 = vcombine.low %v85_v54, %v93_v55 }
  0x34   :  { %1956 = vmatmul.mubr.bf16.gmra.mrb[8].mxu1 %v2877_v6  ;;  %1866 = vmatprep.mubr.bf16.mxu0 %v2892_v7  ;;  %v2848_v6 = vcombine.high %v20_v0, %v28_v1  ;;  %v2850_v7 = vcombine.high %v21_v2, %v29_v3  ;;  %v2849_v14 = vcombine.low %v21_v2, %v29_v3  ;;  %v3780_v0 = vld [vmem:[%s4924_s1 + $0x230] sm:$0xff]   ;;  %v3783_v2 = vld [vmem:[%s4924_s1 + $0x278] sm:$0xff]  }
  0x35   :  { %1963 = vmatprep.mubr.bf16.mxu1 %v2894_v9  ;;  %3316 = vmatpush3.bf16.msra.mxu0 %v3740_v20  ;;  %v44_v9 = vld [vmem:[%s4925_s0 + $0xd0] sm:$0xff]  ;;  %v3761_v20 = vld [vmem:[%s4924_s1 + $0x2c8] sm:$0xff]  }
  0x36   :  { %3380 = vmatpush3.bf16.msra.mxu1 %v3742_v25  ;;  %3317 = vmatprep.subr.bf16.mxu0 %v3743_v28  ;;  %v2864_v16 = vcombine.high %v36_v8, %v44_v9  ;;  %v61_v25 = vld [vmem:[%s4925_s0 + $0x158] sm:$0xff]  ;;  %v2863_v28 = vcombine.low %v36_v8, %v44_v9  ;;  %v3782_v1 = vld [vmem:[%s4924_s1 + $0x2b0] sm:$0xff]  }
  0x37   :  { %3381 = vmatprep.subr.bf16.mxu1 %v3745_v32  ;;  %v3764_v32 = vld [vmem:[%s4924_s1 + $0x210] sm:$0xff]   ;;  %v3784_v8 = vld [vmem:[%s4924_s1 + $0x238] sm:$0xff]  }
  0x38   :  { %v100_v3 = vld [vmem:[%s4925_s0 + $0x290] sm:$0xff]  ;;  %v3786_v9 = vld [vmem:[%s4924_s1 + $0x2b8] sm:$0xff]  }
  0x39   :  { %3318 = vmatpush3.bf16.msra.mxu0 %v3744_v31 }
  0x3a   :  { %3382 = vmatpush3.bf16.msra.mxu1 %v3746_v33  ;;  %3319 = vmatprep.subr.bf16.mxu0 %v3747_v38  ;;  %v3766_v33 = vld [vmem:[%s4924_s1 + $0x290] sm:$0xff]   ;;  %v69_v38 = vld [vmem:[%s4925_s0 + $0x198] sm:$0xff] }
  0x3b   :  { %1867 = vmatmul.mubr.bf16.gmra.mrb[12].mxu0 %v2891_v19  ;;  %3383 = vmatprep.subr.bf16.mxu1 %v3749_v40  ;;  %v3760_v19 = vld [vmem:[%s4924_s1 + $0x208] sm:$0xff]   ;;  %v3768_v40 = vld [vmem:[%s4924_s1 + $0x218] sm:$0xff]  }
  0x3c   :  { %1964 = vmatmul.mubr.bf16.gmra.mrb[12].mxu1 %v2893_v21  ;;  %1874 = vmatprep.mubr.bf16.mxu0 %v2908_v22  ;;  %v3762_v21 = vld [vmem:[%s4924_s1 + $0x288] sm:$0xff]   ;;  %v52_v22 = vld [vmem:[%s4925_s0 + $0x110] sm:$0xff] }
  0x3d   :  { %1971 = vmatprep.mubr.bf16.mxu1 %v2910_v24  ;;  %3320 = vmatpush3.bf16.msra.mxu0 %v3748_v39  ;;  %v53_v24 = vld [vmem:[%s4925_s0 + $0x118] sm:$0xff]  ;;  %v2880_v30 = vcombine.high %v52_v22, %v60_v23 }
  0x3e   :  { %3384 = vmatpush3.bf16.msra.mxu1 %v3750_v43  ;;  %3321 = vmatprep.subr.bf16.mxu0 %v3751_v46  ;;  %v2882_v31 = vcombine.high %v53_v24, %v61_v25  ;;  %v77_v39 = vld [vmem:[%s4925_s0 + $0x1d8] sm:$0xff]  ;;  %v2879_v43 = vcombine.low %v52_v22, %v60_v23  ;;  %v2881_v45 = vcombine.low %v53_v24, %v61_v25  ;;  %v132_v24 = vld [vmem:[%s4925_s0 + $0x390] sm:$0xff] }
  0x3f   :  { %3385 = vmatprep.subr.bf16.mxu1 %v3753_v51  ;;  %v84_v51 = vld [vmem:[%s4925_s0 + $0x210] sm:$0xff] }
  0x40   :  { %v140_v25 = vld [vmem:[%s4925_s0 + $0x3d0] sm:$0xff] }
  0x41   :  { %3322 = vmatpush3.bf16.msra.mxu0 %v3752_v48  ;;  %v2898_v48 = vcombine.high %v69_v38, %v77_v39 }
  0x42   :  { %3386 = vmatpush3.bf16.msra.mxu1 %v3754_v53  ;;  %3435 = vmatprep.subr.bf16.mxu0 %v3755_v56  ;;  %v92_v53 = vld [vmem:[%s4925_s0 + $0x250] sm:$0xff]  ;;  %v3776_v56 = vld [vmem:[%s4924_s1 + $0x228] sm:$0xff]  }
  0x43   :  { %1875 = vmatmul.mubr.bf16.gmra.mrb[16].mxu0 %v2907_v34  ;;  %3499 = vmatprep.subr.bf16.mxu1 %v3757_v58  ;;  %v3767_v34 = vld [vmem:[%s4924_s1 + $0x258] sm:$0xff]   ;;  %v3779_v58 = vld [vmem:[%s4924_s1 + $0x270] sm:$0xff]  }
  0x44   :  { %1972 = vmatmul.mubr.bf16.gmra.mrb[16].mxu1 %v2909_v35  ;;  %1882 = vmatprep.mubr.bf16.mxu0 %v2924_v36  ;;  %v68_v35 = vld [vmem:[%s4925_s0 + $0x190] sm:$0xff] }
  0x45   :  { %1979 = vmatprep.mubr.bf16.mxu1 %v2926_v37  ;;  %v76_v36 = vld [vmem:[%s4925_s0 + $0x1d0] sm:$0xff]  ;;  %v3769_v37 = vld [vmem:[%s4924_s1 + $0x2d8] sm:$0xff]  }
  0x46   :  { %v2896_v46 = vcombine.high %v68_v35, %v76_v36  ;;  %v2895_v59 = vcombine.low %v68_v35, %v76_v36  ;;  %v31_v35 = vld [vmem:[%s4925_s0 + $0x68] sm:$0xff]  ;;  %v2959_v36 = vcombine.low %v132_v24, %v140_v25 }
  0x4b   :  { %1883 = vmatmul.mubr.bf16.gmra.mrb[20].mxu0 %v2923_v47  ;;  %v3772_v47 = vld [vmem:[%s4924_s1 + $0x220] sm:$0xff]  }
  0x4c   :  { %1980 = vmatmul.mubr.bf16.gmra.mrb[20].mxu1 %v2925_v49  ;;  %1890 = vmatprep.mubr.bf16.mxu0 %v2940_v50  ;;  %v3774_v49 = vld [vmem:[%s4924_s1 + $0x2a0] sm:$0xff]   ;;  %v3775_v50 = vld [vmem:[%s4924_s1 + $0x268] sm:$0xff]  }
  0x4d   :  { %1987 = vmatprep.mubr.bf16.mxu1 %v2942_v52  ;;  %v3777_v52 = vld [vmem:[%s4924_s1 + $0x2e8] sm:$0xff]  }
  0x53   :  { %1891 = vmatmul.mubr.bf16.gmra.mrb[24].mxu0 %v2939_v60  ;;  %v3781_v60 = vld [vmem:[%s4924_s1 + $0x2f0] sm:$0xff]  }
  0x54   :  { %1988 = vmatmul.mubr.bf16.gmra.mrb[24].mxu1 %v2941_v61  ;;  %1898 = vmatprep.mubr.bf16.mxu0 %v2956_v62  ;;  %v2897_v61 = vcombine.low %v69_v38, %v77_v39  ;;  %v2912_v62 = vcombine.high %v84_v51, %v92_v53 }
  0x55   :  { %1995 = vmatprep.mubr.bf16.mxu1 %v2958_v63  ;;  %v2914_v63 = vcombine.high %v85_v54, %v93_v55  ;;  %v54_v54 = vld [vmem:[%s4925_s0 + $0x120] sm:$0xff] }
  0x56   :  { %v62_v55 = vld [vmem:[%s4925_s0 + $0x160] sm:$0xff] }
  0x5b   :  { %1899 = vmatmul.mubr.bf16.gmra.mrb[28].mxu0 %v2955_v4  ;;  %v108_v4 = vld [vmem:[%s4925_s0 + $0x2d0] sm:$0xff] }
  0x5c   :  { %1996 = vmatmul.mubr.bf16.gmra.mrb[28].mxu1 %v2957_v5  ;;  %2036 = vmatprep.mubr.bf16.mxu0 %v2848_v6  ;;  %v3785_v5 = vld [vmem:[%s4924_s1 + $0x2f8] sm:$0xff]  }
  0x5d   :  { %2133 = vmatprep.mubr.bf16.mxu1 %v2850_v7  ;;  %v101_v6 = vld [vmem:[%s4925_s0 + $0x298] sm:$0xff] }
  0x5e   :  { %v109_v7 = vld [vmem:[%s4925_s0 + $0x2d8] sm:$0xff] }
  0x63   :  { %2037 = vmatmul.mubr.bf16.vlgmr.msra.gmra.mrb[32].mxu0 %v2847_v10  ;;  %v3787_v10 = vld [vmem:[%s4924_s1 + $0x340] sm:$0xff]  }
  0x64   :  { %2134 = vmatmul.mubr.bf16.vlgmr.msra.gmra.mrb[32].mxu1 %v2849_v14  ;;  %3436 = vmatpush3.bf16.msra.mxu0 %v3756_v11  ;;  %v2911_v11 = vcombine.low %v84_v51, %v92_v53  ;;  %v2928_v14 = vcombine.high %v100_v3, %v108_v4  ;;  %v3793_v51 = vld [vmem:[%s4924_s1 + $0x3c8] sm:$0xff]  }
  0x65   :  { %3500 = vmatpush3.bf16.msra.mxu1 %v3758_v15  ;;  %2044 = vmatprep.mubr.bf16.mxu0 %v2864_v16  ;;  %v2930_v15 = vcombine.high %v101_v6, %v109_v7  ;;  %v116_v16 = vld [vmem:[%s4925_s0 + $0x310] sm:$0xff]  ;;  %v3794_v53 = vld [vmem:[%s4924_s1 + $0x388] sm:$0xff]  }
  0x66   :  { %2141 = vmatprep.mubr.bf16.mxu1 %v2866_v18  ;;  %3437 = vmatprep.subr.bf16.mxu0 %v3759_v17  ;;  %v124_v17 = vld [vmem:[%s4925_s0 + $0x350] sm:$0xff]  ;;  %v117_v18 = vld [vmem:[%s4925_s0 + $0x318] sm:$0xff] }
  0x67   :  { %3501 = vmatprep.subr.bf16.mxu1 %v3761_v20  ;;  %v2927_v20 = vcombine.low %v100_v3, %v108_v4  ;;  %v2944_v22 = vcombine.high %v116_v16, %v124_v17  ;;  %v3801_v3 = vld [vmem:[%s4924_s1 + $0x3d8] sm:$0xff]   ;;  %v70_v4 = vld [vmem:[%s4925_s0 + $0x1a0] sm:$0xff] }
  0x68   :  { %3438 = vmatpush3.bf16.msra.mxu0 %v3760_v19  ;;  %v125_v19 = vld [vmem:[%s4925_s0 + $0x358] sm:$0xff] }
  0x69   :  { %3502 = vmatpush3.bf16.msra.mxu1 %v3762_v21  ;;  %3439 = vmatprep.subr.bf16.mxu0 %v3763_v26  ;;  %v2929_v21 = vcombine.low %v101_v6, %v109_v7  ;;  %v2946_v23 = vcombine.high %v117_v18, %v125_v19  ;;  %v133_v26 = vld [vmem:[%s4925_s0 + $0x398] sm:$0xff]  ;;  %v71_v6 = vld [vmem:[%s4925_s0 + $0x1a8] sm:$0xff] }
  0x6a   :  { %3503 = vmatprep.subr.bf16.mxu1 %v3765_v27  ;;  %v141_v27 = vld [vmem:[%s4925_s0 + $0x3d8] sm:$0xff] }
  0x6b   :  { %2045 = vmatmul.mubr.bf16.gmra.mrb[36].mxu0 %v2863_v28  ;;  %v2943_v28 = vcombine.low %v116_v16, %v124_v17  ;;  %v3800_v7 = vld [vmem:[%s4924_s1 + $0x318] sm:$0xff]   ;;  %v3804_v16 = vld [vmem:[%s4924_s1 + $0x320] sm:$0xff]  }
  0x6c   :  { %2142 = vmatmul.mubr.bf16.gmra.mrb[36].mxu1 %v2865_v29  ;;  %2052 = vmatprep.mubr.bf16.mxu0 %v2880_v30  ;;  %v2945_v29 = vcombine.low %v117_v18, %v125_v19  ;;  %v2960_v30 = vcombine.high %v132_v24, %v140_v25  ;;  %v3806_v17 = vld [vmem:[%s4924_s1 + $0x3a0] sm:$0xff]   ;;  %v3807_v18 = vld [vmem:[%s4924_s1 + $0x368] sm:$0xff]  }
  0x6d   :  { %2149 = vmatprep.mubr.bf16.mxu1 %v2882_v31  ;;  %3440 = vmatpush3.bf16.msra.mxu0 %v3764_v32  ;;  %v2962_v31 = vcombine.high %v133_v26, %v141_v27  ;;  %v22_v32 = vld [vmem:[%s4925_s0 + $0x20] sm:$0xff]  ;;  %v3809_v19 = vld [vmem:[%s4924_s1 + $0x3e8] sm:$0xff]  }
  0x6e   :  { %3504 = vmatpush3.bf16.msra.mxu1 %v3766_v33  ;;  %3441 = vmatprep.subr.bf16.mxu0 %v3767_v34  ;;  %v30_v33 = vld [vmem:[%s4925_s0 + $0x60] sm:$0xff]  ;;  %v23_v34 = vld [vmem:[%s4925_s0 + $0x28] sm:$0xff] }
  0x6f   :  { %3505 = vmatprep.subr.bf16.mxu1 %v3769_v37  ;;  %v2961_v37 = vcombine.low %v133_v26, %v141_v27  ;;  %v2852_v38 = vcombine.high %v22_v32, %v30_v33  ;;  %v2854_v39 = vcombine.high %v23_v34, %v31_v35  ;;  %v95_v24 = vld [vmem:[%s4925_s0 + $0x268] sm:$0xff]  ;;  %v3811_v26 = vld [vmem:[%s4924_s1 + $0x370] sm:$0xff]  }
  0x70   :  { %v3810_v25 = vld [vmem:[%s4924_s1 + $0x3a8] sm:$0xff]  }
  0x71   :  { %3442 = vmatpush3.bf16.msra.mxu0 %v3768_v40  ;;  %v38_v40 = vld [vmem:[%s4925_s0 + $0xa0] sm:$0xff] }
  0x72   :  { %3506 = vmatpush3.bf16.msra.mxu1 %v3770_v41  ;;  %3443 = vmatprep.subr.bf16.mxu0 %v3771_v42  ;;  %v46_v41 = vld [vmem:[%s4925_s0 + $0xe0] sm:$0xff]  ;;  %v2851_v42 = vcombine.low %v22_v32, %v30_v33  ;;  %v3812_v32 = vld [vmem:[%s4924_s1 + $0x330] sm:$0xff]  }
  0x73   :  { %2053 = vmatmul.mubr.bf16.gmra.mrb[40].mxu0 %v2879_v43  ;;  %3507 = vmatprep.subr.bf16.mxu1 %v3773_v44  ;;  %v39_v43 = vld [vmem:[%s4925_s0 + $0xa8] sm:$0xff]  ;;  %v3814_v33 = vld [vmem:[%s4924_s1 + $0x3b0] sm:$0xff]  }
  0x74   :  { %2150 = vmatmul.mubr.bf16.gmra.mrb[40].mxu1 %v2881_v45  ;;  %2060 = vmatprep.mubr.bf16.mxu0 %v2896_v46  ;;  %v47_v44 = vld [vmem:[%s4925_s0 + $0xe8] sm:$0xff]  ;;  %v2853_v45 = vcombine.low %v23_v34, %v31_v35  ;;  %v3788_v46 = vld [vmem:[%s4924_s1 + $0x300] sm:$0xff]   ;;  %v3815_v34 = vld [vmem:[%s4924_s1 + $0x378] sm:$0xff]  }
  0x75   :  { %2157 = vmatprep.mubr.bf16.mxu1 %v2898_v48  ;;  %3444 = vmatpush3.bf16.msra.mxu0 %v3772_v47  ;;  %v3790_v47 = vld [vmem:[%s4924_s1 + $0x380] sm:$0xff]   ;;  %v2868_v48 = vcombine.high %v38_v40, %v46_v41  ;;  %v3817_v35 = vld [vmem:[%s4924_s1 + $0x3f8] sm:$0xff]  }
  0x76   :  { %3508 = vmatpush3.bf16.msra.mxu1 %v3774_v49  ;;  %3445 = vmatprep.subr.bf16.mxu0 %v3775_v50  ;;  %v2870_v49 = vcombine.high %v39_v43, %v47_v44  ;;  %v3791_v50 = vld [vmem:[%s4924_s1 + $0x348] sm:$0xff]  }
  0x77   :  { %3509 = vmatprep.subr.bf16.mxu1 %v3777_v52  ;;  %v3792_v52 = vld [vmem:[%s4924_s1 + $0x308] sm:$0xff]  }
  0x79   :  { %3446 = vmatpush3.bf16.msra.mxu0 %v3776_v56  ;;  %v3795_v56 = vld [vmem:[%s4924_s1 + $0x350] sm:$0xff]  }
  0x7a   :  { %3510 = vmatpush3.bf16.msra.mxu1 %v3778_v57  ;;  %3447 = vmatprep.subr.bf16.mxu0 %v3779_v58  ;;  %v55_v57 = vld [vmem:[%s4925_s0 + $0x128] sm:$0xff] }
  0x7b   :  { %2061 = vmatmul.mubr.bf16.gmra.mrb[44].mxu0 %v2895_v59  ;;  %3511 = vmatprep.subr.bf16.mxu1 %v3781_v60  ;;  %v63_v58 = vld [vmem:[%s4925_s0 + $0x168] sm:$0xff]  ;;  %v3797_v59 = vld [vmem:[%s4924_s1 + $0x3d0] sm:$0xff]   ;;  %v2867_v60 = vcombine.low %v38_v40, %v46_v41  ;;  %v3818_v41 = vld [vmem:[%s4924_s1 + $0x3b8] sm:$0xff]  }
  0x7c   :  { %2158 = vmatmul.mubr.bf16.gmra.mrb[44].mxu1 %v2897_v61  ;;  %2068 = vmatprep.mubr.bf16.mxu0 %v2912_v62  ;;  %v2869_v61 = vcombine.low %v39_v43, %v47_v44  ;;  %v2884_v62 = vcombine.high %v54_v54, %v62_v55  ;;  %v111_v40 = vld [vmem:[%s4925_s0 + $0x2e8] sm:$0xff] }
  0x7d   :  { %2165 = vmatprep.mubr.bf16.mxu1 %v2914_v63  ;;  %3448 = vmatpush3.bf16.msra.mxu0 %v3780_v0  ;;  %v2886_v63 = vcombine.high %v55_v57, %v63_v58  ;;  %v3796_v0 = vld [vmem:[%s4924_s1 + $0x310] sm:$0xff]  }
  0x7e   :  { %3512 = vmatpush3.bf16.msra.mxu1 %v3782_v1  ;;  %3449 = vmatprep.subr.bf16.mxu0 %v3783_v2  ;;  %v3798_v1 = vld [vmem:[%s4924_s1 + $0x390] sm:$0xff]   ;;  %v3799_v2 = vld [vmem:[%s4924_s1 + $0x358] sm:$0xff]  }
  0x7f   :  { %3513 = vmatprep.subr.bf16.mxu1 %v3785_v5  ;;  %v78_v5 = vld [vmem:[%s4925_s0 + $0x1e0] sm:$0xff] }
  0x80   :  { %v2899_v27 = vcombine.low %v70_v4, %v78_v5 }
  0x81   :  { %3450 = vmatpush3.bf16.msra.mxu0 %v3784_v8  ;;  %v79_v8 = vld [vmem:[%s4925_s0 + $0x1e8] sm:$0xff] }
  0x82   :  { %3514 = vmatpush3.bf16.msra.mxu1 %v3786_v9  ;;  %3563 = vmatprep.subr.bf16.mxu0 %v3787_v10  ;;  %v3802_v9 = vld [vmem:[%s4924_s1 + $0x398] sm:$0xff]   ;;  %v3803_v10 = vld [vmem:[%s4924_s1 + $0x360] sm:$0xff]  }
  0x83   :  { %2069 = vmatmul.mubr.bf16.gmra.mrb[48].mxu0 %v2911_v11  ;;  %3627 = vmatprep.subr.bf16.mxu1 %v3789_v12  ;;  %v2883_v11 = vcombine.low %v54_v54, %v62_v55  ;;  %v3805_v12 = vld [vmem:[%s4924_s1 + $0x3e0] sm:$0xff]  }
  0x84   :  { %2166 = vmatmul.mubr.bf16.gmra.mrb[48].mxu1 %v2913_v13  ;;  %2076 = vmatprep.mubr.bf16.mxu0 %v2928_v14  ;;  %v2885_v13 = vcombine.low %v55_v57, %v63_v58  ;;  %v2900_v14 = vcombine.high %v70_v4, %v78_v5  ;;  %v134_v54 = vld [vmem:[%s4925_s0 + $0x3a0] sm:$0xff]  ;;  %v143_v57 = vld [vmem:[%s4925_s0 + $0x3e8] sm:$0xff] }
  0x85   :  { %2173 = vmatprep.mubr.bf16.mxu1 %v2930_v15  ;;  %v2902_v15 = vcombine.high %v71_v6, %v79_v8  ;;  %v142_v55 = vld [vmem:[%s4925_s0 + $0x3e0] sm:$0xff] }
  0x8b   :  { %2077 = vmatmul.mubr.bf16.gmra.mrb[52].mxu0 %v2927_v20  ;;  %v86_v20 = vld [vmem:[%s4925_s0 + $0x220] sm:$0xff] }
  0x8c   :  { %2174 = vmatmul.mubr.bf16.gmra.mrb[52].mxu1 %v2929_v21  ;;  %2084 = vmatprep.mubr.bf16.mxu0 %v2944_v22  ;;  %v94_v21 = vld [vmem:[%s4925_s0 + $0x260] sm:$0xff]  ;;  %v87_v22 = vld [vmem:[%s4925_s0 + $0x228] sm:$0xff] }
  0x8d   :  { %2181 = vmatprep.mubr.bf16.mxu1 %v2946_v23  ;;  %v3808_v23 = vld [vmem:[%s4924_s1 + $0x328] sm:$0xff]   ;;  %v2917_v43 = vcombine.low %v87_v22, %v95_v24 }
  0x93   :  { %2085 = vmatmul.mubr.bf16.gmra.mrb[56].mxu0 %v2943_v28  ;;  %v3813_v28 = vld [vmem:[%s4924_s1 + $0x3f0] sm:$0xff]  }
  0x94   :  { %2182 = vmatmul.mubr.bf16.gmra.mrb[56].mxu1 %v2945_v29  ;;  %2092 = vmatprep.mubr.bf16.mxu0 %v2960_v30  ;;  %v2901_v29 = vcombine.low %v71_v6, %v79_v8  ;;  %v2916_v30 = vcombine.high %v86_v20, %v94_v21  ;;  %v40_v6 = vld [vmem:[%s4925_s0 + $0xb0] sm:$0xff]  ;;  %v41_v8 = vld [vmem:[%s4925_s0 + $0xb8] sm:$0xff] }
  0x95   :  { %2189 = vmatprep.mubr.bf16.mxu1 %v2962_v31  ;;  %v2918_v31 = vcombine.high %v87_v22, %v95_v24  ;;  %v72_v22 = vld [vmem:[%s4925_s0 + $0x1b0] sm:$0xff]  ;;  %v73_v24 = vld [vmem:[%s4925_s0 + $0x1b8] sm:$0xff] }
  0x9b   :  { %2093 = vmatmul.mubr.bf16.gmra.mrb[60].mxu0 %v2959_v36  ;;  %v102_v36 = vld [vmem:[%s4925_s0 + $0x2a0] sm:$0xff] }
  0x9c   :  { %2190 = vmatmul.mubr.bf16.gmra.mrb[60].mxu1 %v2961_v37  ;;  %2230 = vmatprep.mubr.bf16.mxu0 %v2852_v38  ;;  %v110_v37 = vld [vmem:[%s4925_s0 + $0x2e0] sm:$0xff]  ;;  %v3816_v38 = vld [vmem:[%s4924_s1 + $0x338] sm:$0xff]  }
  0x9d   :  { %2327 = vmatprep.mubr.bf16.mxu1 %v2854_v39  ;;  %v103_v39 = vld [vmem:[%s4925_s0 + $0x2a8] sm:$0xff]  ;;  %v2932_v44 = vcombine.high %v102_v36, %v110_v37 }
  0xa3   :  { %2231 = vmatmul.mubr.bf16.vlgmr.msra.gmra.mrb[64].mxu0 %v2851_v42  ;;  %v2915_v42 = vcombine.low %v86_v20, %v94_v21 }
  0xa4   :  { %2328 = vmatmul.mubr.bf16.vlgmr.msra.gmra.mrb[64].mxu1 %v2853_v45  ;;  %3564 = vmatpush3.bf16.msra.mxu0 %v3788_v46  ;;  %v2934_v45 = vcombine.high %v103_v39, %v111_v40  ;;  %v118_v46 = vld [vmem:[%s4925_s0 + $0x320] sm:$0xff] }
  0xa5   :  { %3628 = vmatpush3.bf16.msra.mxu1 %v3790_v47  ;;  %2238 = vmatprep.mubr.bf16.mxu0 %v2868_v48  ;;  %v126_v47 = vld [vmem:[%s4925_s0 + $0x360] sm:$0xff]  ;;  %v119_v48 = vld [vmem:[%s4925_s0 + $0x328] sm:$0xff] }
  0xa6   :  { %2335 = vmatprep.mubr.bf16.mxu1 %v2870_v49  ;;  %3565 = vmatprep.subr.bf16.mxu0 %v3791_v50  ;;  %v127_v49 = vld [vmem:[%s4925_s0 + $0x368] sm:$0xff]  ;;  %v2931_v50 = vcombine.low %v102_v36, %v110_v37  ;;  %v2947_v58 = vcombine.low %v118_v46, %v126_v47 }
  0xa7   :  { %3629 = vmatprep.subr.bf16.mxu1 %v3793_v51  ;;  %v2933_v51 = vcombine.low %v103_v39, %v111_v40 }
  0xa8   :  { %3566 = vmatpush3.bf16.msra.mxu0 %v3792_v52  ;;  %v2948_v52 = vcombine.high %v118_v46, %v126_v47 }
  0xa9   :  { %3630 = vmatpush3.bf16.msra.mxu1 %v3794_v53  ;;  %3567 = vmatprep.subr.bf16.mxu0 %v3795_v56  ;;  %v2950_v53 = vcombine.high %v119_v48, %v127_v49  ;;  %v135_v56 = vld [vmem:[%s4925_s0 + $0x3a8] sm:$0xff] }
  0xaa   :  { %3631 = vmatprep.subr.bf16.mxu1 %v3797_v59  ;;  %v2949_v59 = vcombine.low %v119_v48, %v127_v49 }
  0xab   :  { %2239 = vmatmul.mubr.bf16.gmra.mrb[68].mxu0 %v2867_v60  ;;  %v2964_v60 = vcombine.high %v134_v54, %v142_v55 }
  0xac   :  { %2336 = vmatmul.mubr.bf16.gmra.mrb[68].mxu1 %v2869_v61  ;;  %2246 = vmatprep.mubr.bf16.mxu0 %v2884_v62  ;;  %v2966_v61 = vcombine.high %v135_v56, %v143_v57  ;;  %v24_v62 = vld [vmem:[%s4925_s0 + $0x30] sm:$0xff] }
  0xad   :  { %2343 = vmatprep.mubr.bf16.mxu1 %v2886_v63  ;;  %3568 = vmatpush3.bf16.msra.mxu0 %v3796_v0  ;;  %v32_v63 = vld [vmem:[%s4925_s0 + $0x70] sm:$0xff]  ;;  %v25_v0 = vld [vmem:[%s4925_s0 + $0x38] sm:$0xff] }
  0xae   :  { %3632 = vmatpush3.bf16.msra.mxu1 %v3798_v1  ;;  %3569 = vmatprep.subr.bf16.mxu0 %v3799_v2  ;;  %v33_v1 = vld [vmem:[%s4925_s0 + $0x78] sm:$0xff]  ;;  %v2963_v2 = vcombine.low %v134_v54, %v142_v55  ;;  %v2856_v4 = vcombine.high %v24_v62, %v32_v63 }
  0xaf   :  { %3633 = vmatprep.subr.bf16.mxu1 %v3801_v3  ;;  %v2965_v3 = vcombine.low %v135_v56, %v143_v57  ;;  %v2858_v5 = vcombine.high %v25_v0, %v33_v1  ;;  %v105_v55 = vld [vmem:[%s4925_s0 + $0x2b8] sm:$0xff] }
  0xb0   :  { %v113_v56 = vld [vmem:[%s4925_s0 + $0x2f8] sm:$0xff] }
  0xb1   :  { %3570 = vmatpush3.bf16.msra.mxu0 %v3800_v7  ;;  %v48_v7 = vld [vmem:[%s4925_s0 + $0xf0] sm:$0xff] }
  0xb2   :  { %3634 = vmatpush3.bf16.msra.mxu1 %v3802_v9  ;;  %3571 = vmatprep.subr.bf16.mxu0 %v3803_v10  ;;  %v49_v9 = vld [vmem:[%s4925_s0 + $0xf8] sm:$0xff]  ;;  %v2855_v10 = vcombine.low %v24_v62, %v32_v63 }
  0xb3   :  { %2247 = vmatmul.mubr.bf16.gmra.mrb[72].mxu0 %v2883_v11  ;;  %3635 = vmatprep.subr.bf16.mxu1 %v3805_v12  ;;  %v2857_v11 = vcombine.low %v25_v0, %v33_v1  ;;  %v2872_v12 = vcombine.high %v40_v6, %v48_v7 }
  0xb4   :  { %2344 = vmatmul.mubr.bf16.gmra.mrb[72].mxu1 %v2885_v13  ;;  %2254 = vmatprep.mubr.bf16.mxu0 %v2900_v14  ;;  %v2874_v13 = vcombine.high %v41_v8, %v49_v9  ;;  %v56_v14 = vld [vmem:[%s4925_s0 + $0x130] sm:$0xff] }
  0xb5   :  { %2351 = vmatprep.mubr.bf16.mxu1 %v2902_v15  ;;  %3572 = vmatpush3.bf16.msra.mxu0 %v3804_v16  ;;  %v64_v15 = vld [vmem:[%s4925_s0 + $0x170] sm:$0xff]  ;;  %v57_v16 = vld [vmem:[%s4925_s0 + $0x138] sm:$0xff] }
  0xb6   :  { %3636 = vmatpush3.bf16.msra.mxu1 %v3806_v17  ;;  %3573 = vmatprep.subr.bf16.mxu0 %v3807_v18  ;;  %v65_v17 = vld [vmem:[%s4925_s0 + $0x178] sm:$0xff]  ;;  %v2871_v18 = vcombine.low %v40_v6, %v48_v7  ;;  %v2888_v20 = vcombine.high %v56_v14, %v64_v15 }
  0xb7   :  { %3637 = vmatprep.subr.bf16.mxu1 %v3809_v19  ;;  %v2873_v19 = vcombine.low %v41_v8, %v49_v9  ;;  %v2890_v21 = vcombine.high %v57_v16, %v65_v17 }
  0xb9   :  { %3574 = vmatpush3.bf16.msra.mxu0 %v3808_v23  ;;  %v80_v23 = vld [vmem:[%s4925_s0 + $0x1f0] sm:$0xff] }
  0xba   :  { %3638 = vmatpush3.bf16.msra.mxu1 %v3810_v25  ;;  %3575 = vmatprep.subr.bf16.mxu0 %v3811_v26  ;;  %v81_v25 = vld [vmem:[%s4925_s0 + $0x1f8] sm:$0xff]  ;;  %v2887_v26 = vcombine.low %v56_v14, %v64_v15  ;;  %v2903_v37 = vcombine.low %v72_v22, %v80_v23 }
  0xbb   :  { %2255 = vmatmul.mubr.bf16.gmra.mrb[76].mxu0 %v2899_v27  ;;  %3639 = vmatprep.subr.bf16.mxu1 %v3813_v28  ;;  %v2889_v27 = vcombine.low %v57_v16, %v65_v17  ;;  %v2904_v28 = vcombine.high %v72_v22, %v80_v23  ;;  %v129_v14 = vld [vmem:[%s4925_s0 + $0x378] sm:$0xff] }
  0xbc   :  { %2352 = vmatmul.mubr.bf16.gmra.mrb[76].mxu1 %v2901_v29  ;;  %2262 = vmatprep.mubr.bf16.mxu0 %v2916_v30  ;;  %v2906_v29 = vcombine.high %v73_v24, %v81_v25  ;;  %v88_v30 = vld [vmem:[%s4925_s0 + $0x230] sm:$0xff] }
  0xbd   :  { %2359 = vmatprep.mubr.bf16.mxu1 %v2918_v31  ;;  %3576 = vmatpush3.bf16.msra.mxu0 %v3812_v32  ;;  %v96_v31 = vld [vmem:[%s4925_s0 + $0x270] sm:$0xff] }
  0xbe   :  { %3640 = vmatpush3.bf16.msra.mxu1 %v3814_v33  ;;  %3577 = vmatprep.subr.bf16.mxu0 %v3815_v34  ;;  %v89_v33 = vld [vmem:[%s4925_s0 + $0x238] sm:$0xff] }
  0xbf   :  { %3641 = vmatprep.subr.bf16.mxu1 %v3817_v35  ;;  %v97_v34 = vld [vmem:[%s4925_s0 + $0x278] sm:$0xff] }
  0xc0   :  { %v2922_v46 = vcombine.high %v89_v33, %v97_v34  ;;  %v2921_v63 = vcombine.low %v89_v33, %v97_v34  ;;  %v144_v33 = vld [vmem:[%s4925_s0 + $0x3f0] sm:$0xff] }
  0xc1   :  { %3578 = vmatpush3.bf16.msra.mxu0 %v3816_v38 }
  0xc2   :  { %3642 = vmatpush3.bf16.msra.mxu1 %v3818_v41  ;;  %v2905_v41 = vcombine.low %v73_v24, %v81_v25 }
  0xc3   :  { %2263 = vmatmul.mubr.bf16.gmra.mrb[80].mxu0 %v2915_v42  ;;  %v2920_v42 = vcombine.high %v88_v30, %v96_v31 }
  0xc4   :  { %2360 = vmatmul.mubr.bf16.gmra.mrb[80].mxu1 %v2917_v43  ;;  %2270 = vmatprep.mubr.bf16.mxu0 %v2932_v44 }
  0xc5   :  { %2367 = vmatprep.mubr.bf16.mxu1 %v2934_v45 }
  0xcb   :  { %2271 = vmatmul.mubr.bf16.gmra.mrb[84].mxu0 %v2931_v50 }
  0xcc   :  { %2368 = vmatmul.mubr.bf16.gmra.mrb[84].mxu1 %v2933_v51  ;;  %2278 = vmatprep.mubr.bf16.mxu0 %v2948_v52  ;;  %v104_v52 = vld [vmem:[%s4925_s0 + $0x2b0] sm:$0xff] }
  0xcd   :  { %2375 = vmatprep.mubr.bf16.mxu1 %v2950_v53  ;;  %v112_v53 = vld [vmem:[%s4925_s0 + $0x2f0] sm:$0xff] }
  0xce   :  { %v2936_v0 = vcombine.high %v104_v52, %v112_v53  ;;  %v2935_v17 = vcombine.low %v104_v52, %v112_v53 }
  0xd3   :  { %2279 = vmatmul.mubr.bf16.gmra.mrb[88].mxu0 %v2947_v58 }
  0xd4   :  { %2376 = vmatmul.mubr.bf16.gmra.mrb[88].mxu1 %v2949_v59  ;;  %2286 = vmatprep.mubr.bf16.mxu0 %v2964_v60  ;;  %v2919_v59 = vcombine.low %v88_v30, %v96_v31 }
  0xd5   :  { %2383 = vmatprep.mubr.bf16.mxu1 %v2966_v61 }
  0xdb   :  { %2287 = vmatmul.mubr.bf16.gmra.mrb[92].mxu0 %v2963_v2 }
  0xdc   :  { %2384 = vmatmul.mubr.bf16.gmra.mrb[92].mxu1 %v2965_v3  ;;  %2424 = vmatprep.mubr.bf16.mxu0 %v2856_v4  ;;  %v2938_v4 = vcombine.high %v105_v55, %v113_v56 }
  0xdd   :  { %2521 = vmatprep.mubr.bf16.mxu1 %v2858_v5 }
  0xe3   :  { %2425 = vmatmul.mubr.bf16.vlgmr.msra.gmra.mrb[96].mxu0 %v2855_v10  ;;  %v120_v10 = vld [vmem:[%s4925_s0 + $0x330] sm:$0xff] }
  0xe4   :  { %2522 = vmatmul.mubr.bf16.vlgmr.msra.gmra.mrb[96].mxu1 %v2857_v11  ;;  %2432 = vmatprep.mubr.bf16.mxu0 %v2872_v12  ;;  %v128_v11 = vld [vmem:[%s4925_s0 + $0x370] sm:$0xff] }
  0xe5   :  { %2529 = vmatprep.mubr.bf16.mxu1 %v2874_v13  ;;  %v121_v13 = vld [vmem:[%s4925_s0 + $0x338] sm:$0xff]  ;;  %v2952_v22 = vcombine.high %v120_v10, %v128_v11 }
  0xeb   :  { %2433 = vmatmul.mubr.bf16.gmra.mrb[100].mxu0 %v2871_v18 }
  0xec   :  { %2530 = vmatmul.mubr.bf16.gmra.mrb[100].mxu1 %v2873_v19  ;;  %2440 = vmatprep.mubr.bf16.mxu0 %v2888_v20 }
  0xed   :  { %2537 = vmatprep.mubr.bf16.mxu1 %v2890_v21  ;;  %v2937_v21 = vcombine.low %v105_v55, %v113_v56 }
  0xf3   :  { %2441 = vmatmul.mubr.bf16.gmra.mrb[104].mxu0 %v2887_v26  ;;  %v2954_v26 = vcombine.high %v121_v13, %v129_v14 }
  0xf4   :  { %2538 = vmatmul.mubr.bf16.gmra.mrb[104].mxu1 %v2889_v27  ;;  %2448 = vmatprep.mubr.bf16.mxu0 %v2904_v28 }
  0xf5   :  { %2545 = vmatprep.mubr.bf16.mxu1 %v2906_v29 }
  0xf6   :  { %v3195_v32 = vpop.f32.mrb[0].mxu0 }
  0xf7   :  { %v3259_v35 = vpop.f32.mrb[0].mxu1  ;;  %v3196_v36 = vpop.f32.mrb[1].mxu0 }
  0xf8   :  { %v3197_v38 = vadd.f32 %v3196_v36, %v3195_v32  ;;  %v3260_v39 = vpop.f32.mrb[1].mxu1  ;;  %v3198_v40 = vpop.f32.mrb[2].mxu0  ;;  %v136_v32 = vld [vmem:[%s4925_s0 + $0x3b0] sm:$0xff]  ;;  %v145_v36 = vld [vmem:[%s4925_s0 + $0x3f8] sm:$0xff] }
  0xf9   :  { %v3261_v43 = vadd.f32 %v3260_v39, %v3259_v35  ;;  %v3262_v44 = vpop.f32.mrb[2].mxu1  ;;  %v3199_v45 = vpop.f32.mrb[3].mxu0  ;;  %v137_v35 = vld [vmem:[%s4925_s0 + $0x3b8] sm:$0xff]  ;;  %v2951_v39 = vcombine.low %v120_v10, %v128_v11 }
  0xfa   :  { %v3200_v47 = vadd.f32 %v3199_v45, %v3198_v40  ;;  %v3263_v48 = vpop.f32.mrb[3].mxu1 }
  0xfb   :  { %v4578_v49 = vadd.f32 %v3261_v43, %v3197_v38  ;;  %v3264_v50 = vadd.f32 %v3263_v48, %v3262_v44  ;;  %2449 = vmatmul.mubr.bf16.gmra.mrb[108].mxu0 %v2903_v37  ;;  %v2953_v43 = vcombine.low %v121_v13, %v129_v14  ;;  %v2968_v44 = vcombine.high %v136_v32, %v144_v33 }
  0xfc   :  { %2546 = vmatmul.mubr.bf16.gmra.mrb[108].mxu1 %v2905_v41  ;;  %2456 = vmatprep.mubr.bf16.mxu0 %v2920_v42  ;;  %v2970_v48 = vcombine.high %v137_v35, %v145_v36 }
  0xfd   :  { %v4580_v51 = vadd.f32 %v3264_v50, %v3200_v47  ;;  %2553 = vmatprep.mubr.bf16.mxu1 %v2922_v46 }
  0xfe   :  { %v3201_v54 = vpop.f32.mrb[4].mxu0 }
  0xff   :  { %v3265_v57 = vpop.f32.mrb[4].mxu1  ;;  %v3202_v58 = vpop.f32.mrb[5].mxu0 }
 0x100   :  { %v3203_v60 = vadd.f32 %v3202_v58, %v3201_v54  ;;  %v3266_v61 = vpop.f32.mrb[5].mxu1  ;;  %v3204_v62 = vpop.f32.mrb[6].mxu0 }
 0x101   :  { %v3267_v1 = vadd.f32 %v3266_v61, %v3265_v57  ;;  %v3268_v2 = vpop.f32.mrb[6].mxu1  ;;  %v3205_v3 = vpop.f32.mrb[7].mxu0 }
 0x102   :  { %v3206_v5 = vadd.f32 %v3205_v3, %v3204_v62  ;;  %v3269_v6 = vpop.f32.mrb[7].mxu1 }
 0x103   :  { %v4594_v7 = vadd.f32 %v3267_v1, %v3203_v60  ;;  %v3270_v8 = vadd.f32 %v3269_v6, %v3268_v2  ;;  %2457 = vmatmul.mubr.bf16.gmra.mrb[112].mxu0 %v2919_v59  ;;  %v2967_v59 = vcombine.low %v136_v32, %v144_v33 }
 0x104   :  { %2554 = vmatmul.mubr.bf16.gmra.mrb[112].mxu1 %v2921_v63  ;;  %2464 = vmatprep.mubr.bf16.mxu0 %v2936_v0  ;;  %v2969_v63 = vcombine.low %v137_v35, %v145_v36 }
 0x105   :  { %v4596_v9 = vadd.f32 %v3270_v8, %v3206_v5  ;;  %2561 = vmatprep.mubr.bf16.mxu1 %v2938_v4 }
 0x106   :  { %v3207_v12 = vpop.f32.mrb[8].mxu0 }
 0x107   :  { %v3271_v15 = vpop.f32.mrb[8].mxu1  ;;  %v3208_v16 = vpop.f32.mrb[9].mxu0 }
 0x108   :  { %v3209_v18 = vadd.f32 %v3208_v16, %v3207_v12  ;;  %v3272_v19 = vpop.f32.mrb[9].mxu1  ;;  %v3210_v20 = vpop.f32.mrb[10].mxu0 }
 0x109   :  { %v3273_v23 = vadd.f32 %v3272_v19, %v3271_v15  ;;  %v3274_v24 = vpop.f32.mrb[10].mxu1  ;;  %v3211_v25 = vpop.f32.mrb[11].mxu0 }
 0x10a   :  { %v3212_v27 = vadd.f32 %v3211_v25, %v3210_v20  ;;  %v3275_v28 = vpop.f32.mrb[11].mxu1 }
 0x10b   :  { %v4610_v29 = vadd.f32 %v3273_v23, %v3209_v18  ;;  %v3276_v30 = vadd.f32 %v3275_v28, %v3274_v24  ;;  %2465 = vmatmul.mubr.bf16.gmra.mrb[116].mxu0 %v2935_v17 }
 0x10c   :  { %2562 = vmatmul.mubr.bf16.gmra.mrb[116].mxu1 %v2937_v21  ;;  %2472 = vmatprep.mubr.bf16.mxu0 %v2952_v22 }
 0x10d   :  { %v4612_v31 = vadd.f32 %v3276_v30, %v3212_v27  ;;  %2569 = vmatprep.mubr.bf16.mxu1 %v2954_v26 }
 0x10e   :  { %v3213_v34 = vpop.f32.mrb[12].mxu0 }
 0x10f   :  { %v3277_v37 = vpop.f32.mrb[12].mxu1  ;;  %v3214_v38 = vpop.f32.mrb[13].mxu0 }
 0x110   :  { %v3215_v40 = vadd.f32 %v3214_v38, %v3213_v34  ;;  %v3278_v41 = vpop.f32.mrb[13].mxu1  ;;  %v3216_v42 = vpop.f32.mrb[14].mxu0 }
 0x111   :  { %v3279_v45 = vadd.f32 %v3278_v41, %v3277_v37  ;;  %v3280_v46 = vpop.f32.mrb[14].mxu1  ;;  %v3217_v47 = vpop.f32.mrb[15].mxu0 }
 0x112   :  { %v3218_v50 = vadd.f32 %v3217_v47, %v3216_v42  ;;  %v3281_v52 = vpop.f32.mrb[15].mxu1 }
 0x113   :  { %v4626_v53 = vadd.f32 %v3279_v45, %v3215_v40  ;;  %v3282_v54 = vadd.f32 %v3281_v52, %v3280_v46  ;;  %2473 = vmatmul.mubr.bf16.gmra.mrb[120].mxu0 %v2951_v39 }
 0x114   :  { %2570 = vmatmul.mubr.bf16.gmra.mrb[120].mxu1 %v2953_v43  ;;  %2480 = vmatprep.mubr.bf16.mxu0 %v2968_v44 }
 0x115   :  { %v4628_v55 = vadd.f32 %v3282_v54, %v3218_v50  ;;  %2577 = vmatprep.mubr.bf16.mxu1 %v2970_v48 }
 0x116   :  { %v3219_v56 = vpop.f32.mrb[16].mxu0 }
 0x117   :  { %v3283_v57 = vpop.f32.mrb[16].mxu1  ;;  %v3220_v58 = vpop.f32.mrb[17].mxu0 }
 0x118   :  { %v3221_v60 = vadd.f32 %v3220_v58, %v3219_v56  ;;  %v3284_v61 = vpop.f32.mrb[17].mxu1  ;;  %v3222_v62 = vpop.f32.mrb[18].mxu0 }
 0x119   :  { %v3285_v0 = vadd.f32 %v3284_v61, %v3283_v57  ;;  %v3286_v1 = vpop.f32.mrb[18].mxu1  ;;  %v3223_v2 = vpop.f32.mrb[19].mxu0 }
 0x11a   :  { %v3224_v3 = vadd.f32 %v3223_v2, %v3222_v62  ;;  %v3287_v4 = vpop.f32.mrb[19].mxu1 }
 0x11b   :  { %v4630_v5 = vadd.f32 %v3285_v0, %v3221_v60  ;;  %v3288_v6 = vadd.f32 %v3287_v4, %v3286_v1  ;;  %2481 = vmatmul.mubr.bf16.gmra.mrb[124].mxu0 %v2967_v59 }
 0x11c   :  { %2578 = vmatmul.mubr.bf16.gmra.mrb[124].mxu1 %v2969_v63 }
 0x11d   :  { %v4632_v8 = vadd.f32 %v3288_v6, %v3224_v3 }
 0x11e   :  { %v3225_v10 = vpop.f32.mrb[20].mxu0 }
 0x11f   :  { %v3289_v11 = vpop.f32.mrb[20].mxu1  ;;  %v3226_v12 = vpop.f32.mrb[21].mxu0 }
 0x120   :  { %v3227_v13 = vadd.f32 %v3226_v12, %v3225_v10  ;;  %v3290_v14 = vpop.f32.mrb[21].mxu1  ;;  %v3228_v15 = vpop.f32.mrb[22].mxu0 }
 0x121   :  { %v3291_v16 = vadd.f32 %v3290_v14, %v3289_v11  ;;  %v3292_v17 = vpop.f32.mrb[22].mxu1  ;;  %v3229_v18 = vpop.f32.mrb[23].mxu0 }
 0x122   :  { %v3230_v19 = vadd.f32 %v3229_v18, %v3228_v15  ;;  %v3293_v20 = vpop.f32.mrb[23].mxu1 }
 0x123   :  { %v4634_v21 = vadd.f32 %v3291_v16, %v3227_v13  ;;  %v3294_v22 = vadd.f32 %v3293_v20, %v3292_v17 }
 0x125   :  { %v4636_v23 = vadd.f32 %v3294_v22, %v3230_v19 }
 0x126   :  { %v3231_v24 = vpop.f32.mrb[24].mxu0 }
 0x127   :  { %v3295_v25 = vpop.f32.mrb[24].mxu1  ;;  %v3232_v26 = vpop.f32.mrb[25].mxu0 }
 0x128   :  { %v3233_v27 = vadd.f32 %v3232_v26, %v3231_v24  ;;  %v3296_v28 = vpop.f32.mrb[25].mxu1  ;;  %v3234_v30 = vpop.f32.mrb[26].mxu0 }
 0x129   :  { %v3297_v32 = vadd.f32 %v3296_v28, %v3295_v25  ;;  %v3298_v33 = vpop.f32.mrb[26].mxu1  ;;  %v3235_v34 = vpop.f32.mrb[27].mxu0 }
 0x12a   :  { %v3236_v35 = vadd.f32 %v3235_v34, %v3234_v30  ;;  %v3299_v36 = vpop.f32.mrb[27].mxu1 }
 0x12b   :  { %v4638_v37 = vadd.f32 %v3297_v32, %v3233_v27  ;;  %v3300_v38 = vadd.f32 %v3299_v36, %v3298_v33 }
 0x12d   :  { %v4640_v39 = vadd.f32 %v3300_v38, %v3236_v35 }
 0x12e   :  { %v3237_v40 = vpop.f32.mrb[28].mxu0 }
 0x12f   :  { %v3301_v41 = vpop.f32.mrb[28].mxu1  ;;  %v3238_v42 = vpop.f32.mrb[29].mxu0 }
 0x130   :  { %v3239_v43 = vadd.f32 %v3238_v42, %v3237_v40  ;;  %v3302_v44 = vpop.f32.mrb[29].mxu1  ;;  %v3240_v45 = vpop.f32.mrb[30].mxu0 }
 0x131   :  { %v3303_v46 = vadd.f32 %v3302_v44, %v3301_v41  ;;  %v3304_v47 = vpop.f32.mrb[30].mxu1  ;;  %v3241_v48 = vpop.f32.mrb[31].mxu0 }
 0x132   :  { %v3242_v50 = vadd.f32 %v3241_v48, %v3240_v45  ;;  %v3305_v52 = vpop.f32.mrb[31].mxu1 }
 0x133   :  { %v4642_v54 = vadd.f32 %v3303_v46, %v3239_v43  ;;  %v3306_v56 = vadd.f32 %v3305_v52, %v3304_v47 }
 0x135   :  { %v4644_v57 = vadd.f32 %v3306_v56, %v3242_v50 }
 0x136   :  { %v3323_v58 = vpop.f32.mrb[32].mxu0 }
 0x137   :  { %v3387_v59 = vpop.f32.mrb[32].mxu1  ;;  %v3324_v60 = vpop.f32.mrb[33].mxu0 }
 0x138   :  { %v3325_v61 = vadd.f32 %v3324_v60, %v3323_v58  ;;  %v3388_v62 = vpop.f32.mrb[33].mxu1  ;;  %v3326_v63 = vpop.f32.mrb[34].mxu0 }
 0x139   :  { %v3389_v0 = vadd.f32 %v3388_v62, %v3387_v59  ;;  %v3390_v1 = vpop.f32.mrb[34].mxu1  ;;  %v3327_v2 = vpop.f32.mrb[35].mxu0 }
 0x13a   :  { %v2039_v3 = vadd.f32 %v3325_v61, %v4578_v49  ;;  %v3328_v4 = vadd.f32 %v3327_v2, %v3326_v63  ;;  %v3391_v6 = vpop.f32.mrb[35].mxu1 }
 0x13b   :  { %v3392_v10 = vadd.f32 %v3391_v6, %v3390_v1 }
 0x13c   :  { %v4647_v11 = vadd.f32 %v3389_v0, %v2039_v3  ;;  %v2042_v12 = vadd.f32 %v3328_v4, %v4580_v51 }
 0x13e   :  { %v4650_v13 = vadd.f32 %v3392_v10, %v2042_v12  ;;  %v3329_v14 = vpop.f32.mrb[36].mxu0 }
 0x13f   :  { %v3393_v15 = vpop.f32.mrb[36].mxu1  ;;  %v3330_v16 = vpop.f32.mrb[37].mxu0 }
 0x140   :  { %v3331_v17 = vadd.f32 %v3330_v16, %v3329_v14  ;;  %v3394_v18 = vpop.f32.mrb[37].mxu1  ;;  %v3332_v19 = vpop.f32.mrb[38].mxu0 }
 0x141   :  { %v3395_v20 = vadd.f32 %v3394_v18, %v3393_v15  ;;  %v3396_v22 = vpop.f32.mrb[38].mxu1  ;;  %v3333_v24 = vpop.f32.mrb[39].mxu0 }
 0x142   :  { %v2047_v49 = vadd.f32 %v3331_v17, %v4594_v7  ;;  %v3334_v25 = vadd.f32 %v3333_v24, %v3332_v19  ;;  %v3397_v26 = vpop.f32.mrb[39].mxu1 }
 0x143   :  { %v3398_v27 = vadd.f32 %v3397_v26, %v3396_v22 }
 0x144   :  { %v4653_v28 = vadd.f32 %v3395_v20, %v2047_v49  ;;  %v2050_v51 = vadd.f32 %v3334_v25, %v4596_v9 }
 0x146   :  { %v4656_v30 = vadd.f32 %v3398_v27, %v2050_v51  ;;  %v3335_v32 = vpop.f32.mrb[40].mxu0 }
 0x147   :  { %v3399_v33 = vpop.f32.mrb[40].mxu1  ;;  %v3336_v34 = vpop.f32.mrb[41].mxu0 }
 0x148   :  { %v3337_v35 = vadd.f32 %v3336_v34, %v3335_v32  ;;  %v3400_v36 = vpop.f32.mrb[41].mxu1  ;;  %v3338_v38 = vpop.f32.mrb[42].mxu0 }
 0x149   :  { %v3401_v40 = vadd.f32 %v3400_v36, %v3399_v33  ;;  %v3402_v41 = vpop.f32.mrb[42].mxu1  ;;  %v3339_v42 = vpop.f32.mrb[43].mxu0 }
 0x14a   :  { %v2055_v7 = vadd.f32 %v3337_v35, %v4610_v29  ;;  %v3340_v43 = vadd.f32 %v3339_v42, %v3338_v38  ;;  %v3403_v44 = vpop.f32.mrb[43].mxu1 }
 0x14b   :  { %v3404_v45 = vadd.f32 %v3403_v44, %v3402_v41 }
 0x14c   :  { %v4659_v46 = vadd.f32 %v3401_v40, %v2055_v7  ;;  %v2058_v9 = vadd.f32 %v3340_v43, %v4612_v31 }
 0x14e   :  { %v4662_v47 = vadd.f32 %v3404_v45, %v2058_v9  ;;  %v3341_v48 = vpop.f32.mrb[44].mxu0 }
 0x14f   :  { %v3405_v50 = vpop.f32.mrb[44].mxu1  ;;  %v3342_v52 = vpop.f32.mrb[45].mxu0 }
 0x150   :  { %v3343_v56 = vadd.f32 %v3342_v52, %v3341_v48  ;;  %v3406_v58 = vpop.f32.mrb[45].mxu1  ;;  %v3344_v59 = vpop.f32.mrb[46].mxu0 }
 0x151   :  { %v3407_v60 = vadd.f32 %v3406_v58, %v3405_v50  ;;  %v3408_v61 = vpop.f32.mrb[46].mxu1  ;;  %v3345_v62 = vpop.f32.mrb[47].mxu0 }
 0x152   :  { %v2063_v29 = vadd.f32 %v3343_v56, %v4626_v53  ;;  %v3346_v63 = vadd.f32 %v3345_v62, %v3344_v59  ;;  %v3409_v0 = vpop.f32.mrb[47].mxu1 }
 0x153   :  { %v3410_v1 = vadd.f32 %v3409_v0, %v3408_v61 }
 0x154   :  { %v4665_v2 = vadd.f32 %v3407_v60, %v2063_v29  ;;  %v2066_v31 = vadd.f32 %v3346_v63, %v4628_v55 }
 0x156   :  { %v4668_v3 = vadd.f32 %v3410_v1, %v2066_v31  ;;  %v3347_v4 = vpop.f32.mrb[48].mxu0 }
 0x157   :  { %v3411_v6 = vpop.f32.mrb[48].mxu1  ;;  %v3348_v10 = vpop.f32.mrb[49].mxu0 }
 0x158   :  { %v3349_v12 = vadd.f32 %v3348_v10, %v3347_v4  ;;  %v3412_v14 = vpop.f32.mrb[49].mxu1  ;;  %v3350_v15 = vpop.f32.mrb[50].mxu0 }
 0x159   :  { %v3413_v16 = vadd.f32 %v3412_v14, %v3411_v6  ;;  %v3414_v17 = vpop.f32.mrb[50].mxu1  ;;  %v3351_v18 = vpop.f32.mrb[51].mxu0 }
 0x15a   :  { %v2071_v53 = vadd.f32 %v3349_v12, %v4630_v5  ;;  %v3352_v19 = vadd.f32 %v3351_v18, %v3350_v15  ;;  %v3415_v20 = vpop.f32.mrb[51].mxu1 }
 0x15b   :  { %v3416_v22 = vadd.f32 %v3415_v20, %v3414_v17 }
 0x15c   :  { %v4671_v24 = vadd.f32 %v3413_v16, %v2071_v53  ;;  %v2074_v55 = vadd.f32 %v3352_v19, %v4632_v8 }
 0x15e   :  { %v4674_v49 = vadd.f32 %v3416_v22, %v2074_v55  ;;  %v3353_v25 = vpop.f32.mrb[52].mxu0 }
 0x15f   :  { %v3417_v26 = vpop.f32.mrb[52].mxu1  ;;  %v3354_v27 = vpop.f32.mrb[53].mxu0 }
 0x160   :  { %v3355_v51 = vadd.f32 %v3354_v27, %v3353_v25  ;;  %v3418_v32 = vpop.f32.mrb[53].mxu1  ;;  %v3356_v33 = vpop.f32.mrb[54].mxu0 }
 0x161   :  { %v3419_v34 = vadd.f32 %v3418_v32, %v3417_v26  ;;  %v3420_v35 = vpop.f32.mrb[54].mxu1  ;;  %v3357_v36 = vpop.f32.mrb[55].mxu0 }
 0x162   :  { %v2079_v5 = vadd.f32 %v3355_v51, %v4634_v21  ;;  %v3358_v38 = vadd.f32 %v3357_v36, %v3356_v33  ;;  %v3421_v40 = vpop.f32.mrb[55].mxu1 }
 0x163   :  { %v3422_v41 = vadd.f32 %v3421_v40, %v3420_v35 }
 0x164   :  { %v4677_v42 = vadd.f32 %v3419_v34, %v2079_v5  ;;  %v2082_v8 = vadd.f32 %v3358_v38, %v4636_v23 }
 0x166   :  { %v4680_v7 = vadd.f32 %v3422_v41, %v2082_v8  ;;  %v3359_v43 = vpop.f32.mrb[56].mxu0 }
 0x167   :  { %v3423_v44 = vpop.f32.mrb[56].mxu1  ;;  %v3360_v45 = vpop.f32.mrb[57].mxu0 }
 0x168   :  { %v3361_v9 = vadd.f32 %v3360_v45, %v3359_v43  ;;  %v3424_v48 = vpop.f32.mrb[57].mxu1  ;;  %v3362_v50 = vpop.f32.mrb[58].mxu0 }
 0x169   :  { %v3425_v52 = vadd.f32 %v3424_v48, %v3423_v44  ;;  %v3426_v56 = vpop.f32.mrb[58].mxu1  ;;  %v3363_v58 = vpop.f32.mrb[59].mxu0 }
 0x16a   :  { %v2087_v21 = vadd.f32 %v3361_v9, %v4638_v37  ;;  %v3364_v59 = vadd.f32 %v3363_v58, %v3362_v50  ;;  %v3427_v60 = vpop.f32.mrb[59].mxu1 }
 0x16b   :  { %v3428_v61 = vadd.f32 %v3427_v60, %v3426_v56 }
 0x16c   :  { %v4683_v62 = vadd.f32 %v3425_v52, %v2087_v21  ;;  %v2090_v23 = vadd.f32 %v3364_v59, %v4640_v39 }
 0x16e   :  { %v4686_v29 = vadd.f32 %v3428_v61, %v2090_v23  ;;  %v3365_v63 = vpop.f32.mrb[60].mxu0 }
 0x16f   :  { %v3429_v0 = vpop.f32.mrb[60].mxu1  ;;  %v3366_v1 = vpop.f32.mrb[61].mxu0 }
 0x170   :  { %v3367_v31 = vadd.f32 %v3366_v1, %v3365_v63  ;;  %v3430_v4 = vpop.f32.mrb[61].mxu1  ;;  %v3368_v6 = vpop.f32.mrb[62].mxu0 }
 0x171   :  { %v3431_v10 = vadd.f32 %v3430_v4, %v3429_v0  ;;  %v3432_v12 = vpop.f32.mrb[62].mxu1  ;;  %v3369_v14 = vpop.f32.mrb[63].mxu0 }
 0x172   :  { %v2095_v37 = vadd.f32 %v3367_v31, %v4642_v54  ;;  %v3370_v15 = vadd.f32 %v3369_v14, %v3368_v6  ;;  %v3433_v16 = vpop.f32.mrb[63].mxu1 }
 0x173   :  { %v3434_v17 = vadd.f32 %v3433_v16, %v3432_v12 }
 0x174   :  { %v4689_v18 = vadd.f32 %v3431_v10, %v2095_v37  ;;  %v2098_v39 = vadd.f32 %v3370_v15, %v4644_v57 }
 0x176   :  { %v4692_v53 = vadd.f32 %v3434_v17, %v2098_v39  ;;  %v3451_v19 = vpop.f32.mrb[64].mxu0 }
 0x177   :  { %v3515_v20 = vpop.f32.mrb[64].mxu1  ;;  %v3452_v22 = vpop.f32.mrb[65].mxu0 }
 0x178   :  { %v3453_v55 = vadd.f32 %v3452_v22, %v3451_v19  ;;  %v3516_v25 = vpop.f32.mrb[65].mxu1  ;;  %v3454_v26 = vpop.f32.mrb[66].mxu0 }
 0x179   :  { %v3517_v27 = vadd.f32 %v3516_v25, %v3515_v20  ;;  %v3518_v51 = vpop.f32.mrb[66].mxu1  ;;  %v3455_v32 = vpop.f32.mrb[67].mxu0 }
 0x17a   :  { %v2233_v54 = vadd.f32 %v3453_v55, %v4647_v11  ;;  %v3456_v33 = vadd.f32 %v3455_v32, %v3454_v26  ;;  %v3519_v34 = vpop.f32.mrb[67].mxu1 }
 0x17b   :  { %v3520_v35 = vadd.f32 %v3519_v34, %v3518_v51 }
 0x17c   :  { %v4695_v36 = vadd.f32 %v3517_v27, %v2233_v54  ;;  %v2236_v57 = vadd.f32 %v3456_v33, %v4650_v13 }
 0x17e   :  { %v4698_v5 = vadd.f32 %v3520_v35, %v2236_v57  ;;  %v3457_v38 = vpop.f32.mrb[68].mxu0 }
 0x17f   :  { %v3521_v40 = vpop.f32.mrb[68].mxu1  ;;  %v3458_v41 = vpop.f32.mrb[69].mxu0 }
 0x180   :  { %v3459_v8 = vadd.f32 %v3458_v41, %v3457_v38  ;;  %v3522_v43 = vpop.f32.mrb[69].mxu1  ;;  %v3460_v44 = vpop.f32.mrb[70].mxu0 }
 0x181   :  { %v3523_v45 = vadd.f32 %v3522_v43, %v3521_v40  ;;  %v3524_v9 = vpop.f32.mrb[70].mxu1  ;;  %v3461_v48 = vpop.f32.mrb[71].mxu0 }
 0x182   :  { %v2241_v11 = vadd.f32 %v3459_v8, %v4653_v28  ;;  %v3462_v50 = vadd.f32 %v3461_v48, %v3460_v44  ;;  %v3525_v52 = vpop.f32.mrb[71].mxu1 }
 0x183   :  { %v3526_v56 = vadd.f32 %v3525_v52, %v3524_v9 }
 0x184   :  { %v4701_v58 = vadd.f32 %v3523_v45, %v2241_v11  ;;  %v2244_v13 = vadd.f32 %v3462_v50, %v4656_v30 }
 0x186   :  { %v4704_v21 = vadd.f32 %v3526_v56, %v2244_v13  ;;  %v3463_v59 = vpop.f32.mrb[72].mxu0 }
 0x187   :  { %v3527_v60 = vpop.f32.mrb[72].mxu1  ;;  %v3464_v61 = vpop.f32.mrb[73].mxu0 }
 0x188   :  { %v3465_v23 = vadd.f32 %v3464_v61, %v3463_v59  ;;  %v3528_v63 = vpop.f32.mrb[73].mxu1  ;;  %v3466_v0 = vpop.f32.mrb[74].mxu0 }
 0x189   :  { %v3529_v1 = vadd.f32 %v3528_v63, %v3527_v60  ;;  %v3530_v31 = vpop.f32.mrb[74].mxu1  ;;  %v3467_v4 = vpop.f32.mrb[75].mxu0 }
 0x18a   :  { %v2249_v28 = vadd.f32 %v3465_v23, %v4659_v46  ;;  %v3468_v6 = vadd.f32 %v3467_v4, %v3466_v0  ;;  %v3531_v10 = vpop.f32.mrb[75].mxu1 }
 0x18b   :  { %v3532_v12 = vadd.f32 %v3531_v10, %v3530_v31 }
 0x18c   :  { %v4707_v14 = vadd.f32 %v3529_v1, %v2249_v28  ;;  %v2252_v30 = vadd.f32 %v3468_v6, %v4662_v47 }
 0x18e   :  { %v4710_v37 = vadd.f32 %v3532_v12, %v2252_v30  ;;  %v3469_v15 = vpop.f32.mrb[76].mxu0 }
 0x18f   :  { %v3533_v16 = vpop.f32.mrb[76].mxu1  ;;  %v3470_v17 = vpop.f32.mrb[77].mxu0 }
 0x190   :  { %v3471_v39 = vadd.f32 %v3470_v17, %v3469_v15  ;;  %v3534_v19 = vpop.f32.mrb[77].mxu1  ;;  %v3472_v20 = vpop.f32.mrb[78].mxu0 }
 0x191   :  { %v3535_v22 = vadd.f32 %v3534_v19, %v3533_v16  ;;  %v3536_v55 = vpop.f32.mrb[78].mxu1  ;;  %v3473_v25 = vpop.f32.mrb[79].mxu0 }
 0x192   :  { %v2257_v46 = vadd.f32 %v3471_v39, %v4665_v2  ;;  %v3474_v26 = vadd.f32 %v3473_v25, %v3472_v20  ;;  %v3537_v27 = vpop.f32.mrb[79].mxu1 }
 0x193   :  { %v3538_v51 = vadd.f32 %v3537_v27, %v3536_v55 }
 0x194   :  { %v4713_v32 = vadd.f32 %v3535_v22, %v2257_v46  ;;  %v2260_v47 = vadd.f32 %v3474_v26, %v4668_v3 }
 0x196   :  { %v4716_v54 = vadd.f32 %v3538_v51, %v2260_v47  ;;  %v3475_v33 = vpop.f32.mrb[80].mxu0 }
 0x197   :  { %v3539_v34 = vpop.f32.mrb[80].mxu1  ;;  %v3476_v35 = vpop.f32.mrb[81].mxu0 }
 0x198   :  { %v3477_v57 = vadd.f32 %v3476_v35, %v3475_v33  ;;  %v3540_v38 = vpop.f32.mrb[81].mxu1  ;;  %v3478_v40 = vpop.f32.mrb[82].mxu0 }
 0x199   :  { %v3541_v41 = vadd.f32 %v3540_v38, %v3539_v34  ;;  %v3542_v8 = vpop.f32.mrb[82].mxu1  ;;  %v3479_v43 = vpop.f32.mrb[83].mxu0 }
 0x19a   :  { %v2265_v2 = vadd.f32 %v3477_v57, %v4671_v24  ;;  %v3480_v44 = vadd.f32 %v3479_v43, %v3478_v40  ;;  %v3543_v45 = vpop.f32.mrb[83].mxu1 }
 0x19b   :  { %v3544_v9 = vadd.f32 %v3543_v45, %v3542_v8 }
 0x19c   :  { %v4719_v48 = vadd.f32 %v3541_v41, %v2265_v2  ;;  %v2268_v3 = vadd.f32 %v3480_v44, %v4674_v49 }
 0x19e   :  { %v4722_v11 = vadd.f32 %v3544_v9, %v2268_v3  ;;  %v3481_v50 = vpop.f32.mrb[84].mxu0 }
 0x19f   :  { %v3545_v52 = vpop.f32.mrb[84].mxu1  ;;  %v3482_v56 = vpop.f32.mrb[85].mxu0 }
 0x1a0   :  { %v3483_v13 = vadd.f32 %v3482_v56, %v3481_v50  ;;  %v3546_v59 = vpop.f32.mrb[85].mxu1  ;;  %v3484_v60 = vpop.f32.mrb[86].mxu0 }
 0x1a1   :  { %v3547_v61 = vadd.f32 %v3546_v59, %v3545_v52  ;;  %v3548_v23 = vpop.f32.mrb[86].mxu1  ;;  %v3485_v63 = vpop.f32.mrb[87].mxu0 }
 0x1a2   :  { %v2273_v24 = vadd.f32 %v3483_v13, %v4677_v42  ;;  %v3486_v0 = vadd.f32 %v3485_v63, %v3484_v60  ;;  %v3549_v1 = vpop.f32.mrb[87].mxu1 }
 0x1a3   :  { %v3550_v31 = vadd.f32 %v3549_v1, %v3548_v23 }
 0x1a4   :  { %v4725_v4 = vadd.f32 %v3547_v61, %v2273_v24  ;;  %v2276_v49 = vadd.f32 %v3486_v0, %v4680_v7 }
 0x1a6   :  { %v4728_v28 = vadd.f32 %v3550_v31, %v2276_v49  ;;  %v3487_v6 = vpop.f32.mrb[88].mxu0 }
 0x1a7   :  { %v3551_v10 = vpop.f32.mrb[88].mxu1  ;;  %v3488_v12 = vpop.f32.mrb[89].mxu0 }
 0x1a8   :  { %v3489_v30 = vadd.f32 %v3488_v12, %v3487_v6  ;;  %v3552_v15 = vpop.f32.mrb[89].mxu1  ;;  %v3490_v16 = vpop.f32.mrb[90].mxu0 }
 0x1a9   :  { %v3553_v17 = vadd.f32 %v3552_v15, %v3551_v10  ;;  %v3554_v39 = vpop.f32.mrb[90].mxu1  ;;  %v3491_v19 = vpop.f32.mrb[91].mxu0 }
 0x1aa   :  { %v2281_v42 = vadd.f32 %v3489_v30, %v4683_v62  ;;  %v3492_v20 = vadd.f32 %v3491_v19, %v3490_v16  ;;  %v3555_v22 = vpop.f32.mrb[91].mxu1 }
 0x1ab   :  { %v3556_v55 = vadd.f32 %v3555_v22, %v3554_v39 }
 0x1ac   :  { %v4731_v25 = vadd.f32 %v3553_v17, %v2281_v42  ;;  %v2284_v7 = vadd.f32 %v3492_v20, %v4686_v29 }
 0x1ae   :  { %v4734_v46 = vadd.f32 %v3556_v55, %v2284_v7  ;;  %v3493_v26 = vpop.f32.mrb[92].mxu0 }
 0x1af   :  { %v3557_v27 = vpop.f32.mrb[92].mxu1  ;;  %v3494_v51 = vpop.f32.mrb[93].mxu0 }
 0x1b0   :  { %v3495_v47 = vadd.f32 %v3494_v51, %v3493_v26  ;;  %v3558_v33 = vpop.f32.mrb[93].mxu1  ;;  %v3496_v34 = vpop.f32.mrb[94].mxu0 }
 0x1b1   :  { %v3559_v35 = vadd.f32 %v3558_v33, %v3557_v27  ;;  %v3560_v57 = vpop.f32.mrb[94].mxu1  ;;  %v3497_v38 = vpop.f32.mrb[95].mxu0 }
 0x1b2   :  { %v2289_v62 = vadd.f32 %v3495_v47, %v4689_v18  ;;  %v3498_v40 = vadd.f32 %v3497_v38, %v3496_v34  ;;  %v3561_v41 = vpop.f32.mrb[95].mxu1 }
 0x1b3   :  { %v3562_v8 = vadd.f32 %v3561_v41, %v3560_v57 }
 0x1b4   :  { %v4737_v43 = vadd.f32 %v3559_v35, %v2289_v62  ;;  %v2292_v29 = vadd.f32 %v3498_v40, %v4692_v53 }
 0x1b6   :  { %v4740_v2 = vadd.f32 %v3562_v8, %v2292_v29  ;;  %v3579_v44 = vpop.f32.mrb[96].mxu0 }
 0x1b7   :  { %v3643_v45 = vpop.f32.mrb[96].mxu1  ;;  %v3580_v9 = vpop.f32.mrb[97].mxu0 }
 0x1b8   :  { %v3581_v3 = vadd.f32 %v3580_v9, %v3579_v44  ;;  %v3644_v50 = vpop.f32.mrb[97].mxu1  ;;  %v3582_v52 = vpop.f32.mrb[98].mxu0 }
 0x1b9   :  { %v3645_v56 = vadd.f32 %v3644_v50, %v3643_v45  ;;  %v3646_v13 = vpop.f32.mrb[98].mxu1  ;;  %v3583_v59 = vpop.f32.mrb[99].mxu0 }
 0x1ba   :  { %v2427_v18 = vadd.f32 %v3581_v3, %v4695_v36  ;;  %v3584_v60 = vadd.f32 %v3583_v59, %v3582_v52  ;;  %v3647_v61 = vpop.f32.mrb[99].mxu1 }
 0x1bb   :  { %v3648_v23 = vadd.f32 %v3647_v61, %v3646_v13 }
 0x1bc   :  { %v4743_v63 = vadd.f32 %v3645_v56, %v2427_v18  ;;  %v2430_v53 = vadd.f32 %v3584_v60, %v4698_v5 }
 0x1be   :  { %v4746_v24 = vadd.f32 %v3648_v23, %v2430_v53  ;;  %v3585_v0 = vpop.f32.mrb[100].mxu0 }
 0x1bf   :  { %v3649_v1 = vpop.f32.mrb[100].mxu1  ;;  %v3586_v31 = vpop.f32.mrb[101].mxu0 }
 0x1c0   :  { %v2586_v49 = vadd.f32 %v4746_v24, %v4743_v63  ;;  %v3587_v6 = vadd.f32 %v3586_v31, %v3585_v0  ;;  %v3650_v10 = vpop.f32.mrb[101].mxu1  ;;  %v3588_v12 = vpop.f32.mrb[102].mxu0 }
 0x1c1   :  { %v3651_v30 = vadd.f32 %v3650_v10, %v3649_v1  ;;  %v3652_v36 = vpop.f32.mrb[102].mxu1  ;;  %v3589_v15 = vpop.f32.mrb[103].mxu0 }
 0x1c2   :  { %v2435_v16 = vadd.f32 %v3587_v6, %v4701_v58  ;;  %v3590_v17 = vadd.f32 %v3589_v15, %v3588_v12  ;;  %v3653_v39 = vpop.f32.mrb[103].mxu1 }
 0x1c3   :  { %v3654_v19 = vadd.f32 %v3653_v39, %v3652_v36 }
 0x1c4   :  { %v4751_v5 = vadd.f32 %v3651_v30, %v2435_v16  ;;  %v2438_v42 = vadd.f32 %v3590_v17, %v4704_v21 }
 0x1c6   :  { %v2587_v20 = vadd.f32 %v2586_v49, %v4751_v5  ;;  %v4755_v22 = vadd.f32 %v3654_v19, %v2438_v42  ;;  %v3591_v55 = vpop.f32.mrb[104].mxu0 }
 0x1c7   :  { %v3655_v7 = vpop.f32.mrb[104].mxu1  ;;  %v3592_v26 = vpop.f32.mrb[105].mxu0 }
 0x1c8   :  { %v2588_v27 = vadd.f32 %v2587_v20, %v4755_v22  ;;  %v3593_v51 = vadd.f32 %v3592_v26, %v3591_v55  ;;  %v3656_v47 = vpop.f32.mrb[105].mxu1  ;;  %v3594_v33 = vpop.f32.mrb[106].mxu0 }
 0x1c9   :  { %v3657_v58 = vadd.f32 %v3656_v47, %v3655_v7  ;;  %v3658_v34 = vpop.f32.mrb[106].mxu1  ;;  %v3595_v35 = vpop.f32.mrb[107].mxu0 }
 0x1ca   :  { %v2443_v57 = vadd.f32 %v3593_v51, %v4707_v14  ;;  %v3596_v38 = vadd.f32 %v3595_v35, %v3594_v33  ;;  %v3659_v62 = vpop.f32.mrb[107].mxu1 }
 0x1cb   :  { %v3660_v21 = vadd.f32 %v3659_v62, %v3658_v34 }
 0x1cc   :  { %v4759_v40 = vadd.f32 %v3657_v58, %v2443_v57  ;;  %v2446_v41 = vadd.f32 %v3596_v38, %v4710_v37 }
 0x1ce   :  { %v2589_v8 = vadd.f32 %v2588_v27, %v4759_v40  ;;  %v4763_v29 = vadd.f32 %v3660_v21, %v2446_v41  ;;  %v3597_v44 = vpop.f32.mrb[108].mxu0 }
 0x1cf   :  { %v3661_v45 = vpop.f32.mrb[108].mxu1  ;;  %v3598_v9 = vpop.f32.mrb[109].mxu0 }
 0x1d0   :  { %v2590_v3 = vadd.f32 %v2589_v8, %v4763_v29  ;;  %v3599_v50 = vadd.f32 %v3598_v9, %v3597_v44  ;;  %v3662_v52 = vpop.f32.mrb[109].mxu1  ;;  %v3600_v56 = vpop.f32.mrb[110].mxu0 }
 0x1d1   :  { %v3663_v14 = vadd.f32 %v3662_v52, %v3661_v45  ;;  %v3664_v13 = vpop.f32.mrb[110].mxu1  ;;  %v3601_v59 = vpop.f32.mrb[111].mxu0 }
 0x1d2   :  { %v2451_v18 = vadd.f32 %v3599_v50, %v4713_v32  ;;  %v3602_v60 = vadd.f32 %v3601_v59, %v3600_v56  ;;  %v3665_v61 = vpop.f32.mrb[111].mxu1 }
 0x1d3   :  { %v3666_v37 = vadd.f32 %v3665_v61, %v3664_v13 }
 0x1d4   :  { %v4767_v23 = vadd.f32 %v3663_v14, %v2451_v18  ;;  %v2454_v53 = vadd.f32 %v3602_v60, %v4716_v54 }
 0x1d6   :  { %v2591_v0 = vadd.f32 %v2590_v3, %v4767_v23  ;;  %v4771_v1 = vadd.f32 %v3666_v37, %v2454_v53  ;;  %v3603_v31 = vpop.f32.mrb[112].mxu0 }
 0x1d7   :  { %v3667_v49 = vpop.f32.mrb[112].mxu1  ;;  %v3604_v6 = vpop.f32.mrb[113].mxu0 }
 0x1d8   :  { %v2592_v10 = vadd.f32 %v2591_v0, %v4771_v1  ;;  %v3605_v12 = vadd.f32 %v3604_v6, %v3603_v31  ;;  %v3668_v30 = vpop.f32.mrb[113].mxu1  ;;  %v3606_v36 = vpop.f32.mrb[114].mxu0 }
 0x1d9   :  { %v3669_v32 = vadd.f32 %v3668_v30, %v3667_v49  ;;  %v3670_v15 = vpop.f32.mrb[114].mxu1  ;;  %v3607_v16 = vpop.f32.mrb[115].mxu0 }
 0x1da   :  { %v2459_v17 = vadd.f32 %v3605_v12, %v4719_v48  ;;  %v3608_v39 = vadd.f32 %v3607_v16, %v3606_v36  ;;  %v3671_v19 = vpop.f32.mrb[115].mxu1 }
 0x1db   :  { %v3672_v54 = vadd.f32 %v3671_v19, %v3670_v15 }
 0x1dc   :  { %v4775_v42 = vadd.f32 %v3669_v32, %v2459_v17  ;;  %v2462_v20 = vadd.f32 %v3608_v39, %v4722_v11 }
 0x1de   :  { %v2593_v55 = vadd.f32 %v2592_v10, %v4775_v42  ;;  %v4779_v7 = vadd.f32 %v3672_v54, %v2462_v20  ;;  %v3609_v26 = vpop.f32.mrb[116].mxu0 }
 0x1df   :  { %v3673_v27 = vpop.f32.mrb[116].mxu1  ;;  %v3610_v51 = vpop.f32.mrb[117].mxu0 }
 0x1e0   :  { %v2594_v47 = vadd.f32 %v2593_v55, %v4779_v7  ;;  %v3611_v33 = vadd.f32 %v3610_v51, %v3609_v26  ;;  %v3674_v58 = vpop.f32.mrb[117].mxu1  ;;  %v3612_v34 = vpop.f32.mrb[118].mxu0 }
 0x1e1   :  { %v3675_v48 = vadd.f32 %v3674_v58, %v3673_v27  ;;  %v3676_v35 = vpop.f32.mrb[118].mxu1  ;;  %v3613_v57 = vpop.f32.mrb[119].mxu0 }
 0x1e2   :  { %v2467_v38 = vadd.f32 %v3611_v33, %v4725_v4  ;;  %v3614_v62 = vadd.f32 %v3613_v57, %v3612_v34  ;;  %v3677_v21 = vpop.f32.mrb[119].mxu1 }
 0x1e3   :  { %v3678_v11 = vadd.f32 %v3677_v21, %v3676_v35 }
 0x1e4   :  { %v2564_v41 = vadd.f32 %v3675_v48, %v2467_v38  ;;  %v2470_v8 = vadd.f32 %v3614_v62, %v4728_v28 }
 0x1e6   :  { %v2595_v44 = vadd.f32 %v2594_v47, %v2564_v41  ;;  %v2567_v45 = vadd.f32 %v3678_v11, %v2470_v8  ;;  %v3615_v9 = vpop.f32.mrb[120].mxu0 }
 0x1e7   :  { %v3679_v3 = vpop.f32.mrb[120].mxu1  ;;  %v3616_v50 = vpop.f32.mrb[121].mxu0 }
 0x1e8   :  { %v2596_v52 = vadd.f32 %v2595_v44, %v2567_v45  ;;  %v3617_v56 = vadd.f32 %v3616_v50, %v3615_v9  ;;  %v3680_v14 = vpop.f32.mrb[121].mxu1  ;;  %v3618_v13 = vpop.f32.mrb[122].mxu0 }
 0x1e9   :  { %v3681_v59 = vadd.f32 %v3680_v14, %v3679_v3  ;;  %v3682_v18 = vpop.f32.mrb[122].mxu1  ;;  %v3619_v60 = vpop.f32.mrb[123].mxu0 }
 0x1ea   :  { %v2475_v4 = vadd.f32 %v3617_v56, %v4731_v25  ;;  %v3620_v61 = vadd.f32 %v3619_v60, %v3618_v13  ;;  %v3683_v37 = vpop.f32.mrb[123].mxu1 }
 0x1eb   :  { %v3684_v53 = vadd.f32 %v3683_v37, %v3682_v18 }
 0x1ec   :  { %v2572_v0 = vadd.f32 %v3681_v59, %v2475_v4  ;;  %v2478_v28 = vadd.f32 %v3620_v61, %v4734_v46 }
 0x1ee   :  { %v2597_v31 = vadd.f32 %v2596_v52, %v2572_v0  ;;  %v2575_v49 = vadd.f32 %v3684_v53, %v2478_v28  ;;  %v3621_v6 = vpop.f32.mrb[124].mxu0 }
 0x1ef   :  { %v3685_v10 = vpop.f32.mrb[124].mxu1  ;;  %v3622_v12 = vpop.f32.mrb[125].mxu0 }
 0x1f0   :  { %v2598_v30 = vadd.f32 %v2597_v31, %v2575_v49  ;;  %v3623_v36 = vadd.f32 %v3622_v12, %v3621_v6  ;;  %v3686_v32 = vpop.f32.mrb[125].mxu1  ;;  %v3624_v15 = vpop.f32.mrb[126].mxu0 }
 0x1f1   :  { %v3687_v16 = vadd.f32 %v3686_v32, %v3685_v10  ;;  %v3688_v17 = vpop.f32.mrb[126].mxu1  ;;  %v3625_v39 = vpop.f32.mrb[127].mxu0 }
 0x1f2   :  { %v2483_v25 = vadd.f32 %v3623_v36, %v4737_v43  ;;  %v3626_v19 = vadd.f32 %v3625_v39, %v3624_v15  ;;  %v3689_v54 = vpop.f32.mrb[127].mxu1 }
 0x1f3   :  { %v3690_v20 = vadd.f32 %v3689_v54, %v3688_v17 }
 0x1f4   :  { %v2580_v55 = vadd.f32 %v3687_v16, %v2483_v25  ;;  %v2486_v46 = vadd.f32 %v3626_v19, %v4740_v2 }
 0x1f6   :  { %v2599_v26 = vadd.f32 %v2598_v30, %v2580_v55  ;;  %v2583_v27 = vadd.f32 %v3690_v20, %v2486_v46 }
 0x1f8   :  { %v2600_v51 = vadd.f32 %v2599_v26, %v2583_v27 }
 0x1fa   :  { %v2601_v47 = vrot.slane %v2600_v51, 4 }
 0x1fc   :  { %v2602_v33 = vadd.f32 %v2601_v47, %v2600_v51  ;;  %v2662_v47 = vld [vmem:[%s4926_s2] sm:$0x1] }
 0x1fe   :  { %v2603_v58 = vrot.slane %v2602_v33, 2 }
 0x200   :  { %v2604_v34 = vadd.f32 %v2603_v58, %v2602_v33 }
 0x202   :  { %v2605_v48 = vrot.slane %v2604_v34, 1 }
 0x204   :  { %v2606_v35 = vadd.f32 %v2605_v48, %v2604_v34 }
 0x206   :  { %v2607_v57 = vmul.f32 0.0078125, %v2606_v35 }
 0x208   :  { %v4789_v38 = vsub.f32 %v4743_v63, %v2607_v57  ;;  %v4792_v43 = vsub.f32 %v4746_v24, %v2607_v57  ;;  %v4795_v62 = vsub.f32 %v4751_v5, %v2607_v57  ;;  %v4798_v2 = vsub.f32 %v4755_v22, %v2607_v57 }
 0x209   :  { %v4801_v21 = vsub.f32 %v4759_v40, %v2607_v57  ;;  %v4804_v11 = vsub.f32 %v4763_v29, %v2607_v57  ;;  %v4807_v8 = vsub.f32 %v4767_v23, %v2607_v57  ;;  %v4810_v63 = vsub.f32 %v4771_v1, %v2607_v57 }
 0x20a   :  { %v4813_v24 = vsub.f32 %v4775_v42, %v2607_v57  ;;  %v4816_v5 = vsub.f32 %v4779_v7, %v2607_v57  ;;  %v4818_v22 = vsub.f32 %v2564_v41, %v2607_v57  ;;  %v4820_v44 = vsub.f32 %v2567_v45, %v2607_v57 }
 0x20b   :  { %v4822_v40 = vsub.f32 %v2572_v0, %v2607_v57  ;;  %v4824_v29 = vsub.f32 %v2575_v49, %v2607_v57  ;;  %v4826_v9 = vsub.f32 %v2580_v55, %v2607_v57  ;;  %v4828_v23 = vsub.f32 %v2583_v27, %v2607_v57 }
 0x20c   :  { %v2624_v1 = vmul.f32 %v4789_v38, %v4789_v38  ;;  %v2625_v42 = vmul.f32 %v4792_v43, %v4792_v43  ;;  %v2626_v7 = vmul.f32 %v4795_v62, %v4795_v62  ;;  %v2627_v45 = vmul.f32 %v4798_v2, %v4798_v2 }
 0x20d   :  { %v2628_v50 = vmul.f32 %v4801_v21, %v4801_v21  ;;  %v2629_v56 = vmul.f32 %v4804_v11, %v4804_v11  ;;  %v2630_v13 = vmul.f32 %v4807_v8, %v4807_v8  ;;  %v2631_v18 = vmul.f32 %v4810_v63, %v4810_v63 }
 0x20e   :  { %v2640_v41 = vadd.f32 %v2625_v42, %v2624_v1  ;;  %v2632_v4 = vmul.f32 %v4813_v24, %v4813_v24  ;;  %v2633_v37 = vmul.f32 %v4816_v5, %v4816_v5  ;;  %v2634_v0 = vmul.f32 %v4818_v22, %v4818_v22 }
 0x20f   :  { %v2635_v31 = vmul.f32 %v4820_v44, %v4820_v44  ;;  %v2636_v6 = vmul.f32 %v4822_v40, %v4822_v40  ;;  %v2637_v12 = vmul.f32 %v4824_v29, %v4824_v29  ;;  %v2638_v36 = vmul.f32 %v4826_v9, %v4826_v9 }
 0x210   :  { %v2641_v3 = vadd.f32 %v2640_v41, %v2626_v7  ;;  %v2639_v15 = vmul.f32 %v4828_v23, %v4828_v23  ;;  %v2667_v27 = vlaneseq }
 0x212   :  { %v2642_v52 = vadd.f32 %v2641_v3, %v2627_v45  ;;  %v2668_v51 = vshrl.u32 %v2667_v27, 7 }
 0x214   :  { %v2643_v14 = vadd.f32 %v2642_v52, %v2628_v50  ;;  %v2669_v33 = vsub.s32 0, %v2668_v51  ;;  %v3099_v50 = vld [vmem:[%s4927_s3] ss:$0 sm:$0xff] }
 0x216   :  { %v2644_v59 = vadd.f32 %v2643_v14, %v2629_v56 }
 0x218   :  { %v2645_v60 = vadd.f32 %v2644_v59, %v2630_v13 }
 0x21a   :  { %v2646_v61 = vadd.f32 %v2645_v60, %v2631_v18 }
 0x21c   :  { %v2647_v53 = vadd.f32 %v2646_v61, %v2632_v4 }
 0x21e   :  { %v2648_v28 = vadd.f32 %v2647_v53, %v2633_v37 }
 0x220   :  { %v2649_v49 = vadd.f32 %v2648_v28, %v2634_v0 }
 0x222   :  { %v2650_v10 = vadd.f32 %v2649_v49, %v2635_v31 }
 0x224   :  { %v2651_v30 = vadd.f32 %v2650_v10, %v2636_v6 }
 0x226   :  { %v2652_v32 = vadd.f32 %v2651_v30, %v2637_v12 }
 0x228   :  { %v2653_v16 = vadd.f32 %v2652_v32, %v2638_v36 }
 0x22a   :  { %v2654_v17 = vadd.f32 %v2653_v16, %v2639_v15 }
 0x22c   :  { %v2655_v39 = vrot.slane %v2654_v17, 4 }
 0x22e   :  { %v2656_v25 = vadd.f32 %v2655_v39, %v2654_v17 }
 0x230   :  { %v2657_v19 = vrot.slane %v2656_v25, 2 }
 0x232   :  { %v2658_v54 = vadd.f32 %v2657_v19, %v2656_v25 }
 0x234   :  { %v2659_v20 = vrot.slane %v2658_v54, 1 }
 0x236   :  { %v2660_v55 = vadd.f32 %v2659_v20, %v2658_v54 }
 0x238   :  { %v2661_v46 = vmul.f32 0.0078125, %v2660_v55 }
 0x23a   :  { %v2663_v26 = vadd.f32 1e-05, %v2661_v46 }
 0x23c   :  { %3819 = vrsqrt.f32 %v2663_v26 }
 0x246   :  { %v3820_v58 = vpop.eup %3819 }
 0x247   :  { %v2665_v34 = vmul.f32 %v3820_v58, %v2662_v47 }
 0x249   :  { %v2670_v48 = vrot.slane %v2665_v34, %v2669_v33 }
 0x24b   :  { %v2672_v35 = vmul.f32 %v2670_v48, %v4789_v38  ;;  %v2673_v57 = vmul.f32 %v2670_v48, %v4792_v43  ;;  %v2674_v1 = vmul.f32 %v2670_v48, %v4795_v62  ;;  %v2675_v42 = vmul.f32 %v2670_v48, %v4798_v2 }
 0x24c   :  { %v2676_v7 = vmul.f32 %v2670_v48, %v4801_v21  ;;  %v2677_v41 = vmul.f32 %v2670_v48, %v4804_v11  ;;  %v2678_v45 = vmul.f32 %v2670_v48, %v4807_v8  ;;  %v2679_v3 = vmul.f32 %v2670_v48, %v4810_v63 }
 0x24d   :  { %v2680_v38 = vmul.f32 %v2670_v48, %v4813_v24  ;;  %v2681_v43 = vmul.f32 %v2670_v48, %v4816_v5  ;;  %v2682_v62 = vmul.f32 %v2670_v48, %v4818_v22  ;;  %v2683_v2 = vmul.f32 %v2670_v48, %v4820_v44 }
 0x24e   :  { %v2684_v21 = vmul.f32 %v2670_v48, %v4822_v40  ;;  %v2685_v11 = vmul.f32 %v2670_v48, %v4824_v29  ;;  %v2686_v8 = vmul.f32 %v2670_v48, %v4826_v9  ;;  %v2687_v63 = vmul.f32 %v2670_v48, %v4828_v23 }
 0x24f   :  { %v2695_v52 = vadd.f32 %v3099_v50, %v2672_v35  ;;  %v2696_v56 = vadd.f32 %v3099_v50, %v2673_v57  ;;  %v2697_v14 = vadd.f32 %v3099_v50, %v2674_v1  ;;  %v2698_v13 = vadd.f32 %v3099_v50, %v2675_v42 }
 0x250   :  { %v2699_v59 = vadd.f32 %v3099_v50, %v2676_v7  ;;  %v2700_v24 = vadd.f32 %v3099_v50, %v2677_v41  ;;  %v2701_v18 = vadd.f32 %v3099_v50, %v2678_v45  ;;  %v2702_v5 = vadd.f32 %v3099_v50, %v2679_v3 }
 0x251   :  { %v2703_v60 = vadd.f32 %v3099_v50, %v2680_v38  ;;  %v2704_v22 = vadd.f32 %v3099_v50, %v2681_v43  ;;  %v2705_v4 = vadd.f32 %v3099_v50, %v2682_v62  ;;  %v2706_v44 = vadd.f32 %v3099_v50, %v2683_v2 }
 0x252   :  { %v2707_v61 = vadd.f32 %v3099_v50, %v2684_v21  ;;  %v2708_v40 = vadd.f32 %v3099_v50, %v2685_v11  ;;  %v2709_v37 = vadd.f32 %v3099_v50, %v2686_v8  ;;  %v2710_v29 = vadd.f32 %v3099_v50, %v2687_v63 }
 0x253   :  { %vm2711_vm0 = vcmp.ge.f32.partialorder %v2695_v52, 0.0  ;;  %vm2712_vm1 = vcmp.ge.f32.partialorder %v2696_v56, 0.0  ;;  %vm2713_vm2 = vcmp.ge.f32.partialorder %v2697_v14, 0.0  ;;  %vm2714_vm3 = vcmp.ge.f32.partialorder %v2698_v13, 0.0 }
 0x254   :  { %vm2715_vm4 = vcmp.ge.f32.partialorder %v2699_v59, 0.0  ;;  %vm2716_vm5 = vcmp.ge.f32.partialorder %v2700_v24, 0.0  ;;  %vm2717_vm6 = vcmp.ge.f32.partialorder %v2701_v18, 0.0  ;;  %vm2718_vm7 = vcmp.ge.f32.partialorder %v2702_v5, 0.0 }
 0x255   :  { %vm2719_vm8 = vcmp.ge.f32.partialorder %v2703_v60, 0.0  ;;  %vm2720_vm9 = vcmp.ge.f32.partialorder %v2704_v22, 0.0  ;;  %vm2721_vm10 = vcmp.ge.f32.partialorder %v2705_v4, 0.0  ;;  %vm2722_vm11 = vcmp.ge.f32.partialorder %v2706_v44, 0.0 }
 0x256   :  { %vm2723_vm12 = vcmp.ge.f32.partialorder %v2707_v61, 0.0  ;;  %vm2724_vm13 = vcmp.ge.f32.partialorder %v2708_v40, 0.0  ;;  %vm2725_vm14 = vcmp.ge.f32.partialorder %v2709_v37, 0.0  ;;  %vm2726_vm15 = vcmp.ge.f32.partialorder %v2710_v29, 0.0 }
 0x257   :  { %v2727_v9 = vmul.f32 0.2, %v2695_v52  ;;  %v2728_v23 = vmul.f32 0.2, %v2696_v56  ;;  %v2729_v53 = vmul.f32 0.2, %v2697_v14 }
 0x258   :  { %v2730_v0 = vmul.f32 0.2, %v2698_v13  ;;  %v2731_v28 = vmul.f32 0.2, %v2699_v59  ;;  %v2732_v31 = vmul.f32 0.2, %v2700_v24 }
 0x259   :  { %v2733_v49 = vmul.f32 0.2, %v2701_v18  ;;  %v2734_v6 = vmul.f32 0.2, %v2702_v5  ;;  %v2735_v10 = vmul.f32 0.2, %v2703_v60  ;;  %v2743_v12 = vsel %vm2711_vm0, %v2695_v52, %v2727_v9 }
 0x25a   :  { %v2736_v30 = vmul.f32 0.2, %v2704_v22  ;;  %v2737_v36 = vmul.f32 0.2, %v2705_v4  ;;  %v2738_v32 = vmul.f32 0.2, %v2706_v44  ;;  %v2744_v15 = vsel %vm2712_vm1, %v2696_v56, %v2728_v23 }
 0x25b   :  { %v2739_v16 = vmul.f32 0.2, %v2707_v61  ;;  %v2740_v17 = vmul.f32 0.2, %v2708_v40  ;;  %v2741_v39 = vmul.f32 0.2, %v2709_v37  ;;  %v2745_v25 = vsel %vm2713_vm2, %v2697_v14, %v2729_v53 }
 0x25c   :  { %v2742_v19 = vmul.f32 0.2, %v2710_v29  ;;  %v2746_v54 = vsel %vm2714_vm3, %v2698_v13, %v2730_v0  ;;  %v2747_v20 = vsel %vm2715_vm4, %v2699_v59, %v2731_v28  ;;  %v2748_v55 = vsel %vm2716_vm5, %v2700_v24, %v2732_v31 }
 0x25d   :  { %v2749_v46 = vsel %vm2717_vm6, %v2701_v18, %v2733_v49  ;;  %v2750_v26 = vsel %vm2718_vm7, %v2702_v5, %v2734_v6  ;;  %v2751_v27 = vsel %vm2719_vm8, %v2703_v60, %v2735_v10  ;;  %v2752_v51 = vsel %vm2720_vm9, %v2704_v22, %v2736_v30 }
 0x25e   :  { %v2753_v47 = vsel %vm2721_vm10, %v2705_v4, %v2737_v36  ;;  %v2754_v33 = vsel %vm2722_vm11, %v2706_v44, %v2738_v32  ;;  %v2755_v58 = vsel %vm2723_vm12, %v2707_v61, %v2739_v16  ;;  %v2756_v34 = vsel %vm2724_vm13, %v2708_v40, %v2740_v17 }
 0x25f   :  { %v2757_v48 = vsel %vm2725_vm14, %v2709_v37, %v2741_v39  ;;  %v2758_v35 = vsel %vm2726_vm15, %v2710_v29, %v2742_v19  ;;  %v3135_v57 = vpack.c.bf16 %v2744_v15, %v2743_v12  ;;  %v3140_v1 = vpack.c.bf16 %v2746_v54, %v2745_v25 }
 0x260   :  { %v3145_v42 = vpack.c.bf16 %v2748_v55, %v2747_v20  ;;  %v3150_v7 = vpack.c.bf16 %v2750_v26, %v2749_v46  ;;  %v3155_v41 = vpack.c.bf16 %v2752_v51, %v2751_v27  ;;  %v3160_v45 = vpack.c.bf16 %v2754_v33, %v2753_v47 }
 0x261   :  { %3136 = vst [vmem:[%s4928_s4] sm:$0xff] %v3135_v57   ;;  %3172 = vst [vmem:[%s4928_s4 + $0x8] sm:$0xff] %v3140_v1   ;;  %v3165_v3 = vpack.c.bf16 %v2756_v34, %v2755_v58  ;;  %v3170_v50 = vpack.c.bf16 %v2758_v35, %v2757_v48 }
 0x262   :  { %3173 = vst [vmem:[%s4928_s4 + $0x10] sm:$0xff] %v3145_v42   ;;  %3174 = vst [vmem:[%s4928_s4 + $0x18] sm:$0xff] %v3150_v7  }
 0x263   :  { %3175 = vst [vmem:[%s4928_s4 + $0x20] sm:$0xff] %v3155_v41   ;;  %3176 = vst [vmem:[%s4928_s4 + $0x28] sm:$0xff] %v3160_v45  }
 0x264   :  { %3177 = vst [vmem:[%s4928_s4 + $0x30] sm:$0xff] %v3165_v3   ;;  %3178 = vst [vmem:[%s4928_s4 + $0x38] sm:$0xff] %v3170_v50  }

// kernel: _lambda_.7
= control target key start
LH: loop header
LB: loop body
LE: loop exit
PB: predicated region body
PF: predicated region fallthrough
CT: control target
= control target key end

     0   :  { %s2766_s1 = inlined_call_operand.vmem [shape: bf16[2048,128], index: 1, kind: input, shape index: {}]   ;;  %s2767_s0 = inlined_call_operand.vmem [shape: bf16[32,2048], index: 0, kind: input, shape index: {}]   ;;  %s2768_s2 = inlined_call_operand.vmem [shape: f32[1,128], index: 2, kind: input, shape index: {}]   ;;  %s2769_s3 = inlined_call_operand.vmem [shape: f32[1,128], index: 3, kind: input, shape index: {}]   ;;  %s2770_s4 = inlined_call_operand.vmem [shape: bf16[32,128], index: 4, kind: output, shape index: {}]  }
   0x1   :  { %v2119_v0 = vld [vmem:[%s2766_s1 + $0x40] sm:$0xff]   ;;  %v2123_v4 = vld [vmem:[%s2766_s1 + $0x48] sm:$0xff]   ;;  %v2127_v8 = vld [vmem:[%s2766_s1 + $0x50] sm:$0xff]  }
   0x2   :  { %v2120_v1 = vld [vmem:[%s2766_s1 + $0xc0] sm:$0xff]   ;;  %1895 = vmatprep.subr.bf16.mxu0 %v2119_v0  ;;  %v2124_v5 = vld [vmem:[%s2766_s1 + $0xc8] sm:$0xff]   ;;  %v2128_v9 = vld [vmem:[%s2766_s1 + $0xd0] sm:$0xff]  }
   0x3   :  { %v2121_v2 = vld [vmem:[%s2766_s1] sm:$0xff]   ;;  %1923 = vmatprep.subr.bf16.mxu1 %v2120_v1  ;;  %v2125_v6 = vld [vmem:[%s2766_s1 + $0x8] sm:$0xff]   ;;  %v2129_v10 = vld [vmem:[%s2766_s1 + $0x10] sm:$0xff]  }
   0x4   :  { %v2122_v3 = vld [vmem:[%s2766_s1 + $0x80] sm:$0xff]   ;;  %1896 = vmatpush3.bf16.msra.mxu0 %v2121_v2  ;;  %v2126_v7 = vld [vmem:[%s2766_s1 + $0x88] sm:$0xff]   ;;  %v2130_v11 = vld [vmem:[%s2766_s1 + $0x90] sm:$0xff]  }
   0x5   :  { %1924 = vmatpush3.bf16.msra.mxu1 %v2122_v3  ;;  %1897 = vmatprep.subr.bf16.mxu0 %v2123_v4  ;;  %v2131_v12 = vld [vmem:[%s2766_s1 + $0x58] sm:$0xff]   ;;  %v2135_v16 = vld [vmem:[%s2766_s1 + $0x60] sm:$0xff]   ;;  %v2139_v20 = vld [vmem:[%s2766_s1 + $0x68] sm:$0xff]  }
   0x6   :  { %1925 = vmatprep.subr.bf16.mxu1 %v2124_v5  ;;  %v2132_v13 = vld [vmem:[%s2766_s1 + $0xd8] sm:$0xff]   ;;  %v2136_v17 = vld [vmem:[%s2766_s1 + $0xe0] sm:$0xff]   ;;  %v2140_v21 = vld [vmem:[%s2766_s1 + $0xe8] sm:$0xff]  }
   0x7   :  { %v2133_v14 = vld [vmem:[%s2766_s1 + $0x18] sm:$0xff]   ;;  %v2137_v18 = vld [vmem:[%s2766_s1 + $0x20] sm:$0xff]   ;;  %v2141_v22 = vld [vmem:[%s2766_s1 + $0x28] sm:$0xff]  }
   0x8   :  { %1898 = vmatpush3.bf16.msra.mxu0 %v2125_v6  ;;  %v2134_v15 = vld [vmem:[%s2766_s1 + $0x98] sm:$0xff]   ;;  %v2138_v19 = vld [vmem:[%s2766_s1 + $0xa0] sm:$0xff]   ;;  %v2142_v23 = vld [vmem:[%s2766_s1 + $0xa8] sm:$0xff]  }
   0x9   :  { %1926 = vmatpush3.bf16.msra.mxu1 %v2126_v7  ;;  %1899 = vmatprep.subr.bf16.mxu0 %v2127_v8  ;;  %v2143_v24 = vld [vmem:[%s2766_s1 + $0x70] sm:$0xff]   ;;  %v2147_v28 = vld [vmem:[%s2766_s1 + $0x78] sm:$0xff]   ;;  %v18_v32 = vld [vmem:[%s2767_s0] sm:$0xff] }
   0xa   :  { %1927 = vmatprep.subr.bf16.mxu1 %v2128_v9  ;;  %v2144_v25 = vld [vmem:[%s2766_s1 + $0xf0] sm:$0xff]   ;;  %v2148_v29 = vld [vmem:[%s2766_s1 + $0xf8] sm:$0xff]   ;;  %v26_v33 = vld [vmem:[%s2767_s0 + $0x40] sm:$0xff] }
   0xb   :  { %v2145_v26 = vld [vmem:[%s2766_s1 + $0x30] sm:$0xff]   ;;  %v2149_v30 = vld [vmem:[%s2766_s1 + $0x38] sm:$0xff]   ;;  %v19_v34 = vld [vmem:[%s2767_s0 + $0x8] sm:$0xff]  ;;  %v1715_v35 = vcombine.low %v18_v32, %v26_v33  ;;  %v1716_v36 = vcombine.high %v18_v32, %v26_v33 }
   0xc   :  { %1900 = vmatpush3.bf16.msra.mxu0 %v2129_v10  ;;  %v2146_v27 = vld [vmem:[%s2766_s1 + $0xb0] sm:$0xff]   ;;  %v2150_v31 = vld [vmem:[%s2766_s1 + $0xb8] sm:$0xff]   ;;  %v27_v37 = vld [vmem:[%s2767_s0 + $0x48] sm:$0xff] }
   0xd   :  { %1928 = vmatpush3.bf16.msra.mxu1 %v2130_v11  ;;  %1901 = vmatprep.subr.bf16.mxu0 %v2131_v12  ;;  %v1717_v38 = vcombine.low %v19_v34, %v27_v37  ;;  %v1718_v39 = vcombine.high %v19_v34, %v27_v37  ;;  %v2151_v40 = vld [vmem:[%s2766_s1 + $0x140] sm:$0xff]   ;;  %v2155_v44 = vld [vmem:[%s2766_s1 + $0x148] sm:$0xff]   ;;  %v2159_v48 = vld [vmem:[%s2766_s1 + $0x150] sm:$0xff]  }
   0xe   :  { %1929 = vmatprep.subr.bf16.mxu1 %v2132_v13  ;;  %1266 = vmatprep.mubr.bf16.mxu0 %v1716_v36  ;;  %v2152_v41 = vld [vmem:[%s2766_s1 + $0x1c0] sm:$0xff]   ;;  %v2156_v45 = vld [vmem:[%s2766_s1 + $0x1c8] sm:$0xff]   ;;  %v2160_v49 = vld [vmem:[%s2766_s1 + $0x1d0] sm:$0xff]  }
   0xf   :  { %1315 = vmatprep.mubr.bf16.mxu1 %v1718_v39  ;;  %v2153_v42 = vld [vmem:[%s2766_s1 + $0x100] sm:$0xff]   ;;  %v2157_v46 = vld [vmem:[%s2766_s1 + $0x108] sm:$0xff]   ;;  %v2161_v50 = vld [vmem:[%s2766_s1 + $0x110] sm:$0xff]  }
  0x10   :  { %1902 = vmatpush3.bf16.msra.mxu0 %v2133_v14  ;;  %v2154_v43 = vld [vmem:[%s2766_s1 + $0x180] sm:$0xff]   ;;  %v2158_v47 = vld [vmem:[%s2766_s1 + $0x188] sm:$0xff]   ;;  %v2162_v51 = vld [vmem:[%s2766_s1 + $0x190] sm:$0xff]  }
  0x11   :  { %1930 = vmatpush3.bf16.msra.mxu1 %v2134_v15  ;;  %1903 = vmatprep.subr.bf16.mxu0 %v2135_v16  ;;  %v2163_v52 = vld [vmem:[%s2766_s1 + $0x158] sm:$0xff]   ;;  %v2167_v56 = vld [vmem:[%s2766_s1 + $0x160] sm:$0xff]   ;;  %v2171_v60 = vld [vmem:[%s2766_s1 + $0x168] sm:$0xff]  }
  0x12   :  { %1931 = vmatprep.subr.bf16.mxu1 %v2136_v17  ;;  %v2164_v53 = vld [vmem:[%s2766_s1 + $0x1d8] sm:$0xff]   ;;  %v2168_v57 = vld [vmem:[%s2766_s1 + $0x1e0] sm:$0xff]   ;;  %v2172_v61 = vld [vmem:[%s2766_s1 + $0x1e8] sm:$0xff]  }
  0x13   :  { %v2165_v54 = vld [vmem:[%s2766_s1 + $0x118] sm:$0xff]   ;;  %v2169_v58 = vld [vmem:[%s2766_s1 + $0x120] sm:$0xff]   ;;  %v35_v1 = vld [vmem:[%s2767_s0 + $0x88] sm:$0xff] }
  0x14   :  { %1904 = vmatpush3.bf16.msra.mxu0 %v2137_v18  ;;  %v2166_v55 = vld [vmem:[%s2766_s1 + $0x198] sm:$0xff]   ;;  %v2170_v59 = vld [vmem:[%s2766_s1 + $0x1a0] sm:$0xff]   ;;  %v43_v2 = vld [vmem:[%s2767_s0 + $0xc8] sm:$0xff] }
  0x15   :  { %1932 = vmatpush3.bf16.msra.mxu1 %v2138_v19  ;;  %1905 = vmatprep.subr.bf16.mxu0 %v2139_v20  ;;  %v34_v62 = vld [vmem:[%s2767_s0 + $0x80] sm:$0xff]  ;;  %v1734_v4 = vcombine.high %v35_v1, %v43_v2  ;;  %v2173_v5 = vld [vmem:[%s2766_s1 + $0x128] sm:$0xff]   ;;  %v1733_v6 = vcombine.low %v35_v1, %v43_v2  ;;  %v2175_v8 = vld [vmem:[%s2766_s1 + $0x170] sm:$0xff]  }
  0x16   :  { %1933 = vmatprep.subr.bf16.mxu1 %v2140_v21  ;;  %v42_v63 = vld [vmem:[%s2767_s0 + $0xc0] sm:$0xff]  ;;  %v2174_v7 = vld [vmem:[%s2766_s1 + $0x1a8] sm:$0xff]   ;;  %v2176_v9 = vld [vmem:[%s2766_s1 + $0x1f0] sm:$0xff]  }
  0x17   :  { %v1732_v0 = vcombine.high %v34_v62, %v42_v63  ;;  %v1731_v3 = vcombine.low %v34_v62, %v42_v63  ;;  %v2177_v10 = vld [vmem:[%s2766_s1 + $0x130] sm:$0xff]   ;;  %v2179_v12 = vld [vmem:[%s2766_s1 + $0x178] sm:$0xff]   ;;  %v30_v1 = vld [vmem:[%s2767_s0 + $0x60] sm:$0xff] }
  0x18   :  { %1906 = vmatpush3.bf16.msra.mxu0 %v2141_v22  ;;  %v2178_v11 = vld [vmem:[%s2766_s1 + $0x1b0] sm:$0xff]   ;;  %v2180_v13 = vld [vmem:[%s2766_s1 + $0x1f8] sm:$0xff]  }
  0x19   :  { %1934 = vmatpush3.bf16.msra.mxu1 %v2142_v23  ;;  %1907 = vmatprep.subr.bf16.mxu0 %v2143_v24  ;;  %v2181_v14 = vld [vmem:[%s2766_s1 + $0x138] sm:$0xff]   ;;  %v20_v16 = vld [vmem:[%s2767_s0 + $0x10] sm:$0xff]  ;;  %v2183_v24 = vld [vmem:[%s2766_s1 + $0x240] sm:$0xff]  }
  0x1a   :  { %1935 = vmatprep.subr.bf16.mxu1 %v2144_v25  ;;  %v2182_v15 = vld [vmem:[%s2766_s1 + $0x1b8] sm:$0xff]   ;;  %v28_v17 = vld [vmem:[%s2767_s0 + $0x50] sm:$0xff]  ;;  %v2184_v25 = vld [vmem:[%s2766_s1 + $0x2c0] sm:$0xff]  }
  0x1b   :  { %v21_v18 = vld [vmem:[%s2767_s0 + $0x18] sm:$0xff]  ;;  %v1719_v20 = vcombine.low %v20_v16, %v28_v17  ;;  %v1720_v21 = vcombine.high %v20_v16, %v28_v17  ;;  %v36_v32 = vld [vmem:[%s2767_s0 + $0x90] sm:$0xff]  ;;  %v38_v16 = vld [vmem:[%s2767_s0 + $0xa0] sm:$0xff] }
  0x1c   :  { %1908 = vmatpush3.bf16.msra.mxu0 %v2145_v26  ;;  %v29_v19 = vld [vmem:[%s2767_s0 + $0x58] sm:$0xff]  ;;  %v2185_v26 = vld [vmem:[%s2766_s1 + $0x200] sm:$0xff]   ;;  %v44_v33 = vld [vmem:[%s2767_s0 + $0xd0] sm:$0xff] }
  0x1d   :  { %1936 = vmatpush3.bf16.msra.mxu1 %v2146_v27  ;;  %1909 = vmatprep.subr.bf16.mxu0 %v2147_v28  ;;  %v1721_v22 = vcombine.low %v21_v18, %v29_v19  ;;  %v1722_v23 = vcombine.high %v21_v18, %v29_v19  ;;  %v2186_v27 = vld [vmem:[%s2766_s1 + $0x280] sm:$0xff]   ;;  %v2187_v28 = vld [vmem:[%s2766_s1 + $0x248] sm:$0xff]   ;;  %v1736_v34 = vcombine.high %v36_v32, %v44_v33  ;;  %v2191_v36 = vld [vmem:[%s2766_s1 + $0x250] sm:$0xff]  }
  0x1e   :  { %1937 = vmatprep.subr.bf16.mxu1 %v2148_v29  ;;  %v2188_v29 = vld [vmem:[%s2766_s1 + $0x2c8] sm:$0xff]   ;;  %v2192_v37 = vld [vmem:[%s2766_s1 + $0x2d0] sm:$0xff]   ;;  %v45_v39 = vld [vmem:[%s2767_s0 + $0xd8] sm:$0xff] }
  0x1f   :  { %v2213_v62 = vld [vmem:[%s2766_s1 + $0x238] sm:$0xff]   ;;  %v46_v17 = vld [vmem:[%s2767_s0 + $0xe0] sm:$0xff] }
  0x20   :  { %1910 = vmatpush3.bf16.msra.mxu0 %v2149_v30  ;;  %v2189_v30 = vld [vmem:[%s2766_s1 + $0x208] sm:$0xff]   ;;  %v2214_v63 = vld [vmem:[%s2766_s1 + $0x2b8] sm:$0xff]   ;;  %v1740_v18 = vcombine.high %v38_v16, %v46_v17  ;;  %v1739_v19 = vcombine.low %v38_v16, %v46_v17 }
  0x21   :  { %1938 = vmatpush3.bf16.msra.mxu1 %v2150_v31  ;;  %1951 = vmatprep.subr.bf16.mxu0 %v2151_v40  ;;  %v2190_v31 = vld [vmem:[%s2766_s1 + $0x288] sm:$0xff]  }
  0x22   :  { %1979 = vmatprep.subr.bf16.mxu1 %v2152_v41  ;;  %v2193_v41 = vld [vmem:[%s2766_s1 + $0x210] sm:$0xff]  }
  0x23   :  { %1267 = vmatmul.mubr.bf16.vlgmr.msra.gmra.mrb[0].mxu0 %v1715_v35  ;;  %v1735_v35 = vcombine.low %v36_v32, %v44_v33  ;;  %v2231_v32 = vld [vmem:[%s2766_s1 + $0x360] sm:$0xff]  }
  0x24   :  { %1316 = vmatmul.mubr.bf16.vlgmr.msra.gmra.mrb[0].mxu1 %v1717_v38  ;;  %1952 = vmatpush3.bf16.msra.mxu0 %v2153_v42  ;;  %v37_v38 = vld [vmem:[%s2767_s0 + $0x98] sm:$0xff]  ;;  %v2232_v33 = vld [vmem:[%s2766_s1 + $0x3e0] sm:$0xff]  }
  0x25   :  { %1980 = vmatpush3.bf16.msra.mxu1 %v2154_v43  ;;  %1953 = vmatprep.subr.bf16.mxu0 %v2155_v44  ;;  %v1738_v40 = vcombine.high %v37_v38, %v45_v39  ;;  %v1737_v42 = vcombine.low %v37_v38, %v45_v39  ;;  %v2194_v43 = vld [vmem:[%s2766_s1 + $0x290] sm:$0xff]   ;;  %v2195_v44 = vld [vmem:[%s2766_s1 + $0x258] sm:$0xff]   ;;  %v2237_v38 = vld [vmem:[%s2766_s1 + $0x328] sm:$0xff]  }
  0x26   :  { %1981 = vmatprep.subr.bf16.mxu1 %v2156_v45  ;;  %1274 = vmatprep.mubr.bf16.mxu0 %v1732_v0  ;;  %v2196_v45 = vld [vmem:[%s2766_s1 + $0x2d8] sm:$0xff]   ;;  %v22_v0 = vld [vmem:[%s2767_s0 + $0x20] sm:$0xff]  ;;  %v2238_v39 = vld [vmem:[%s2766_s1 + $0x3a8] sm:$0xff]  }
  0x27   :  { %1323 = vmatprep.mubr.bf16.mxu1 %v1734_v4  ;;  %v1723_v2 = vcombine.low %v22_v0, %v30_v1  ;;  %v23_v4 = vld [vmem:[%s2767_s0 + $0x28] sm:$0xff] }
  0x28   :  { %1954 = vmatpush3.bf16.msra.mxu0 %v2157_v46  ;;  %v2197_v46 = vld [vmem:[%s2766_s1 + $0x218] sm:$0xff]  }
  0x29   :  { %1982 = vmatpush3.bf16.msra.mxu1 %v2158_v47  ;;  %1955 = vmatprep.subr.bf16.mxu0 %v2159_v48  ;;  %v2198_v47 = vld [vmem:[%s2766_s1 + $0x298] sm:$0xff]   ;;  %v2199_v48 = vld [vmem:[%s2766_s1 + $0x260] sm:$0xff]  }
  0x2a   :  { %1983 = vmatprep.subr.bf16.mxu1 %v2160_v49  ;;  %v2200_v49 = vld [vmem:[%s2766_s1 + $0x2e0] sm:$0xff]  }
  0x2b   :  { %1275 = vmatmul.mubr.bf16.gmra.mrb[4].mxu0 %v1731_v3  ;;  %v1724_v3 = vcombine.high %v22_v0, %v30_v1 }
  0x2c   :  { %1956 = vmatpush3.bf16.msra.mxu0 %v2161_v50  ;;  %1324 = vmatmul.mubr.bf16.gmra.mrb[4].mxu1 %v1733_v6  ;;  %v2201_v50 = vld [vmem:[%s2766_s1 + $0x220] sm:$0xff]  }
  0x2d   :  { %1984 = vmatpush3.bf16.msra.mxu1 %v2162_v51  ;;  %1957 = vmatprep.subr.bf16.mxu0 %v2163_v52  ;;  %v2202_v51 = vld [vmem:[%s2766_s1 + $0x2a0] sm:$0xff]   ;;  %v2203_v52 = vld [vmem:[%s2766_s1 + $0x268] sm:$0xff]  }
  0x2e   :  { %1985 = vmatprep.subr.bf16.mxu1 %v2164_v53  ;;  %1364 = vmatprep.mubr.bf16.mxu0 %v1720_v21  ;;  %v2204_v53 = vld [vmem:[%s2766_s1 + $0x2e8] sm:$0xff]   ;;  %v2224_v21 = vld [vmem:[%s2766_s1 + $0x3d0] sm:$0xff]  }
  0x2f   :  { %1413 = vmatprep.mubr.bf16.mxu1 %v1722_v23  ;;  %v47_v23 = vld [vmem:[%s2767_s0 + $0xe8] sm:$0xff] }
  0x30   :  { %1958 = vmatpush3.bf16.msra.mxu0 %v2165_v54  ;;  %v2205_v54 = vld [vmem:[%s2766_s1 + $0x228] sm:$0xff]  }
  0x31   :  { %1986 = vmatpush3.bf16.msra.mxu1 %v2166_v55  ;;  %1959 = vmatprep.subr.bf16.mxu0 %v2167_v56  ;;  %v2206_v55 = vld [vmem:[%s2766_s1 + $0x2a8] sm:$0xff]   ;;  %v2207_v56 = vld [vmem:[%s2766_s1 + $0x270] sm:$0xff]  }
  0x32   :  { %1987 = vmatprep.subr.bf16.mxu1 %v2168_v57  ;;  %v2208_v57 = vld [vmem:[%s2766_s1 + $0x2f0] sm:$0xff]  }
  0x34   :  { %1960 = vmatpush3.bf16.msra.mxu0 %v2169_v58  ;;  %v2209_v58 = vld [vmem:[%s2766_s1 + $0x230] sm:$0xff]  }
  0x35   :  { %1988 = vmatpush3.bf16.msra.mxu1 %v2170_v59  ;;  %1961 = vmatprep.subr.bf16.mxu0 %v2171_v60  ;;  %v2210_v59 = vld [vmem:[%s2766_s1 + $0x2b0] sm:$0xff]   ;;  %v2211_v60 = vld [vmem:[%s2766_s1 + $0x278] sm:$0xff]  }
  0x36   :  { %1989 = vmatprep.subr.bf16.mxu1 %v2172_v61  ;;  %v2212_v61 = vld [vmem:[%s2766_s1 + $0x2f8] sm:$0xff]  }
  0x38   :  { %1962 = vmatpush3.bf16.msra.mxu0 %v2173_v5  ;;  %v31_v5 = vld [vmem:[%s2767_s0 + $0x68] sm:$0xff] }
  0x39   :  { %1990 = vmatpush3.bf16.msra.mxu1 %v2174_v7  ;;  %1963 = vmatprep.subr.bf16.mxu0 %v2175_v8  ;;  %v1725_v6 = vcombine.low %v23_v4, %v31_v5  ;;  %v1726_v7 = vcombine.high %v23_v4, %v31_v5  ;;  %v2215_v8 = vld [vmem:[%s2766_s1 + $0x340] sm:$0xff]  }
  0x3a   :  { %1991 = vmatprep.subr.bf16.mxu1 %v2176_v9  ;;  %v2216_v9 = vld [vmem:[%s2766_s1 + $0x3c0] sm:$0xff]  }
  0x3c   :  { %1964 = vmatpush3.bf16.msra.mxu0 %v2177_v10  ;;  %v2217_v10 = vld [vmem:[%s2766_s1 + $0x300] sm:$0xff]  }
  0x3d   :  { %1992 = vmatpush3.bf16.msra.mxu1 %v2178_v11  ;;  %1965 = vmatprep.subr.bf16.mxu0 %v2179_v12  ;;  %v2218_v11 = vld [vmem:[%s2766_s1 + $0x380] sm:$0xff]   ;;  %v2219_v12 = vld [vmem:[%s2766_s1 + $0x348] sm:$0xff]  }
  0x3e   :  { %1993 = vmatprep.subr.bf16.mxu1 %v2180_v13  ;;  %v2220_v13 = vld [vmem:[%s2766_s1 + $0x3c8] sm:$0xff]  }
  0x40   :  { %1966 = vmatpush3.bf16.msra.mxu0 %v2181_v14  ;;  %v2221_v14 = vld [vmem:[%s2766_s1 + $0x308] sm:$0xff]  }
  0x41   :  { %1994 = vmatpush3.bf16.msra.mxu1 %v2182_v15  ;;  %2007 = vmatprep.subr.bf16.mxu0 %v2183_v24  ;;  %v2222_v15 = vld [vmem:[%s2766_s1 + $0x388] sm:$0xff]  }
  0x42   :  { %2035 = vmatprep.subr.bf16.mxu1 %v2184_v25  ;;  %v2225_v25 = vld [vmem:[%s2766_s1 + $0x310] sm:$0xff]  }
  0x43   :  { %1365 = vmatmul.mubr.bf16.vlgmr.msra.gmra.mrb[8].mxu0 %v1719_v20  ;;  %v2223_v20 = vld [vmem:[%s2766_s1 + $0x350] sm:$0xff]  }
  0x44   :  { %1414 = vmatmul.mubr.bf16.vlgmr.msra.gmra.mrb[8].mxu1 %v1721_v22  ;;  %2008 = vmatpush3.bf16.msra.mxu0 %v2185_v26  ;;  %v39_v22 = vld [vmem:[%s2767_s0 + $0xa8] sm:$0xff] }
  0x45   :  { %2036 = vmatpush3.bf16.msra.mxu1 %v2186_v27  ;;  %2009 = vmatprep.subr.bf16.mxu0 %v2187_v28  ;;  %v1742_v24 = vcombine.high %v39_v22, %v47_v23  ;;  %v1741_v26 = vcombine.low %v39_v22, %v47_v23  ;;  %v2226_v27 = vld [vmem:[%s2766_s1 + $0x390] sm:$0xff]   ;;  %v2227_v28 = vld [vmem:[%s2766_s1 + $0x358] sm:$0xff]  }
  0x46   :  { %2037 = vmatprep.subr.bf16.mxu1 %v2188_v29  ;;  %1372 = vmatprep.mubr.bf16.mxu0 %v1736_v34  ;;  %v2228_v29 = vld [vmem:[%s2766_s1 + $0x3d8] sm:$0xff]   ;;  %v2233_v34 = vld [vmem:[%s2766_s1 + $0x320] sm:$0xff]  }
  0x47   :  { %1421 = vmatprep.mubr.bf16.mxu1 %v1738_v40  ;;  %v2239_v40 = vld [vmem:[%s2766_s1 + $0x370] sm:$0xff]  }
  0x48   :  { %2010 = vmatpush3.bf16.msra.mxu0 %v2189_v30  ;;  %v2229_v30 = vld [vmem:[%s2766_s1 + $0x318] sm:$0xff]  }
  0x49   :  { %2038 = vmatpush3.bf16.msra.mxu1 %v2190_v31  ;;  %2011 = vmatprep.subr.bf16.mxu0 %v2191_v36  ;;  %v2230_v31 = vld [vmem:[%s2766_s1 + $0x398] sm:$0xff]   ;;  %v2235_v36 = vld [vmem:[%s2766_s1 + $0x368] sm:$0xff]  }
  0x4a   :  { %2039 = vmatprep.subr.bf16.mxu1 %v2192_v37  ;;  %v2236_v37 = vld [vmem:[%s2766_s1 + $0x3e8] sm:$0xff]  }
  0x4b   :  { %1373 = vmatmul.mubr.bf16.gmra.mrb[12].mxu0 %v1735_v35  ;;  %v2234_v35 = vld [vmem:[%s2766_s1 + $0x3a0] sm:$0xff]  }
  0x4c   :  { %2012 = vmatpush3.bf16.msra.mxu0 %v2193_v41  ;;  %1422 = vmatmul.mubr.bf16.gmra.mrb[12].mxu1 %v1737_v42  ;;  %v2240_v41 = vld [vmem:[%s2766_s1 + $0x3f0] sm:$0xff]  }
  0x4d   :  { %2040 = vmatpush3.bf16.msra.mxu1 %v2194_v43  ;;  %2013 = vmatprep.subr.bf16.mxu0 %v2195_v44  ;;  %v2241_v42 = vld [vmem:[%s2766_s1 + $0x330] sm:$0xff]   ;;  %v2243_v44 = vld [vmem:[%s2766_s1 + $0x378] sm:$0xff]  }
  0x4e   :  { %2041 = vmatprep.subr.bf16.mxu1 %v2196_v45  ;;  %1462 = vmatprep.mubr.bf16.mxu0 %v1724_v3  ;;  %v2242_v43 = vld [vmem:[%s2766_s1 + $0x3b0] sm:$0xff]   ;;  %v2244_v45 = vld [vmem:[%s2766_s1 + $0x3f8] sm:$0xff]  }
  0x4f   :  { %1511 = vmatprep.mubr.bf16.mxu1 %v1726_v7 }
  0x50   :  { %2014 = vmatpush3.bf16.msra.mxu0 %v2197_v46  ;;  %v2245_v46 = vld [vmem:[%s2766_s1 + $0x338] sm:$0xff]  }
  0x51   :  { %2042 = vmatpush3.bf16.msra.mxu1 %v2198_v47  ;;  %2015 = vmatprep.subr.bf16.mxu0 %v2199_v48  ;;  %v2246_v47 = vld [vmem:[%s2766_s1 + $0x3b8] sm:$0xff]   ;;  %v24_v48 = vld [vmem:[%s2767_s0 + $0x30] sm:$0xff] }
  0x52   :  { %2043 = vmatprep.subr.bf16.mxu1 %v2200_v49  ;;  %v32_v49 = vld [vmem:[%s2767_s0 + $0x70] sm:$0xff] }
  0x54   :  { %2016 = vmatpush3.bf16.msra.mxu0 %v2201_v50  ;;  %v25_v50 = vld [vmem:[%s2767_s0 + $0x38] sm:$0xff] }
  0x55   :  { %2044 = vmatpush3.bf16.msra.mxu1 %v2202_v51  ;;  %2017 = vmatprep.subr.bf16.mxu0 %v2203_v52  ;;  %v1727_v51 = vcombine.low %v24_v48, %v32_v49  ;;  %v1728_v52 = vcombine.high %v24_v48, %v32_v49 }
  0x56   :  { %2045 = vmatprep.subr.bf16.mxu1 %v2204_v53  ;;  %v33_v53 = vld [vmem:[%s2767_s0 + $0x78] sm:$0xff] }
  0x58   :  { %2018 = vmatpush3.bf16.msra.mxu0 %v2205_v54  ;;  %v40_v54 = vld [vmem:[%s2767_s0 + $0xb0] sm:$0xff] }
  0x59   :  { %2046 = vmatpush3.bf16.msra.mxu1 %v2206_v55  ;;  %2019 = vmatprep.subr.bf16.mxu0 %v2207_v56  ;;  %v48_v55 = vld [vmem:[%s2767_s0 + $0xf0] sm:$0xff]  ;;  %v1729_v56 = vcombine.low %v25_v50, %v33_v53 }
  0x5a   :  { %2047 = vmatprep.subr.bf16.mxu1 %v2208_v57  ;;  %v1730_v57 = vcombine.high %v25_v50, %v33_v53 }
  0x5c   :  { %2020 = vmatpush3.bf16.msra.mxu0 %v2209_v58  ;;  %v1744_v58 = vcombine.high %v40_v54, %v48_v55 }
  0x5d   :  { %2048 = vmatpush3.bf16.msra.mxu1 %v2210_v59  ;;  %2021 = vmatprep.subr.bf16.mxu0 %v2211_v60  ;;  %v41_v59 = vld [vmem:[%s2767_s0 + $0xb8] sm:$0xff] }
  0x5e   :  { %2049 = vmatprep.subr.bf16.mxu1 %v2212_v61  ;;  %v49_v60 = vld [vmem:[%s2767_s0 + $0xf8] sm:$0xff] }
  0x5f   :  { %v1746_v61 = vcombine.high %v41_v59, %v49_v60 }
  0x60   :  { %2022 = vmatpush3.bf16.msra.mxu0 %v2213_v62  ;;  %v1743_v62 = vcombine.low %v40_v54, %v48_v55 }
  0x61   :  { %2050 = vmatpush3.bf16.msra.mxu1 %v2214_v63  ;;  %2063 = vmatprep.subr.bf16.mxu0 %v2215_v8  ;;  %v1745_v63 = vcombine.low %v41_v59, %v49_v60 }
  0x62   :  { %2091 = vmatprep.subr.bf16.mxu1 %v2216_v9 }
  0x63   :  { %1463 = vmatmul.mubr.bf16.vlgmr.msra.gmra.mrb[16].mxu0 %v1723_v2 }
  0x64   :  { %1512 = vmatmul.mubr.bf16.vlgmr.msra.gmra.mrb[16].mxu1 %v1725_v6  ;;  %2064 = vmatpush3.bf16.msra.mxu0 %v2217_v10 }
  0x65   :  { %2092 = vmatpush3.bf16.msra.mxu1 %v2218_v11  ;;  %2065 = vmatprep.subr.bf16.mxu0 %v2219_v12 }
  0x66   :  { %2093 = vmatprep.subr.bf16.mxu1 %v2220_v13  ;;  %1470 = vmatprep.mubr.bf16.mxu0 %v1740_v18 }
  0x67   :  { %1519 = vmatprep.mubr.bf16.mxu1 %v1742_v24 }
  0x68   :  { %2066 = vmatpush3.bf16.msra.mxu0 %v2221_v14 }
  0x69   :  { %2094 = vmatpush3.bf16.msra.mxu1 %v2222_v15  ;;  %2067 = vmatprep.subr.bf16.mxu0 %v2223_v20 }
  0x6a   :  { %2095 = vmatprep.subr.bf16.mxu1 %v2224_v21 }
  0x6b   :  { %1471 = vmatmul.mubr.bf16.gmra.mrb[20].mxu0 %v1739_v19 }
  0x6c   :  { %2068 = vmatpush3.bf16.msra.mxu0 %v2225_v25  ;;  %1520 = vmatmul.mubr.bf16.gmra.mrb[20].mxu1 %v1741_v26 }
  0x6d   :  { %2096 = vmatpush3.bf16.msra.mxu1 %v2226_v27  ;;  %2069 = vmatprep.subr.bf16.mxu0 %v2227_v28 }
  0x6e   :  { %2097 = vmatprep.subr.bf16.mxu1 %v2228_v29  ;;  %1560 = vmatprep.mubr.bf16.mxu0 %v1728_v52 }
  0x6f   :  { %1609 = vmatprep.mubr.bf16.mxu1 %v1730_v57 }
  0x70   :  { %2070 = vmatpush3.bf16.msra.mxu0 %v2229_v30 }
  0x71   :  { %2098 = vmatpush3.bf16.msra.mxu1 %v2230_v31  ;;  %2071 = vmatprep.subr.bf16.mxu0 %v2231_v32 }
  0x72   :  { %2099 = vmatprep.subr.bf16.mxu1 %v2232_v33 }
  0x74   :  { %2072 = vmatpush3.bf16.msra.mxu0 %v2233_v34 }
  0x75   :  { %2100 = vmatpush3.bf16.msra.mxu1 %v2234_v35  ;;  %2073 = vmatprep.subr.bf16.mxu0 %v2235_v36 }
  0x76   :  { %2101 = vmatprep.subr.bf16.mxu1 %v2236_v37 }
  0x78   :  { %2074 = vmatpush3.bf16.msra.mxu0 %v2237_v38 }
  0x79   :  { %2102 = vmatpush3.bf16.msra.mxu1 %v2238_v39  ;;  %2075 = vmatprep.subr.bf16.mxu0 %v2239_v40 }
  0x7a   :  { %2103 = vmatprep.subr.bf16.mxu1 %v2240_v41 }
  0x7c   :  { %2076 = vmatpush3.bf16.msra.mxu0 %v2241_v42 }
  0x7d   :  { %2104 = vmatpush3.bf16.msra.mxu1 %v2242_v43  ;;  %2077 = vmatprep.subr.bf16.mxu0 %v2243_v44 }
  0x7e   :  { %2105 = vmatprep.subr.bf16.mxu1 %v2244_v45 }
  0x80   :  { %2078 = vmatpush3.bf16.msra.mxu0 %v2245_v46 }
  0x81   :  { %2106 = vmatpush3.bf16.msra.mxu1 %v2246_v47 }
  0x83   :  { %1561 = vmatmul.mubr.bf16.vlgmr.msra.gmra.mrb[24].mxu0 %v1727_v51 }
  0x84   :  { %1610 = vmatmul.mubr.bf16.vlgmr.msra.gmra.mrb[24].mxu1 %v1729_v56  ;;  %1568 = vmatprep.mubr.bf16.mxu0 %v1744_v58 }
  0x85   :  { %1617 = vmatprep.mubr.bf16.mxu1 %v1746_v61 }
  0x8b   :  { %1569 = vmatmul.mubr.bf16.gmra.mrb[28].mxu0 %v1743_v62 }
  0x8c   :  { %1618 = vmatmul.mubr.bf16.gmra.mrb[28].mxu1 %v1745_v63 }
  0xf6   :  { %v1911_v0 = vpop.f32.mrb[0].mxu0 }
  0xf7   :  { %v1939_v1 = vpop.f32.mrb[0].mxu1  ;;  %v1912_v2 = vpop.f32.mrb[1].mxu0 }
  0xf8   :  { %v1913_v3 = vadd.f32 %v1912_v2, %v1911_v0  ;;  %v1940_v4 = vpop.f32.mrb[1].mxu1  ;;  %v1914_v5 = vpop.f32.mrb[2].mxu0 }
  0xf9   :  { %v1941_v6 = vadd.f32 %v1940_v4, %v1939_v1  ;;  %v1942_v7 = vpop.f32.mrb[2].mxu1  ;;  %v1915_v8 = vpop.f32.mrb[3].mxu0 }
  0xfa   :  { %v1916_v9 = vadd.f32 %v1915_v8, %v1914_v5  ;;  %v1943_v10 = vpop.f32.mrb[3].mxu1 }
  0xfb   :  { %v1318_v11 = vadd.f32 %v1941_v6, %v1913_v3  ;;  %v1944_v12 = vadd.f32 %v1943_v10, %v1942_v7 }
  0xfd   :  { %v1321_v13 = vadd.f32 %v1944_v12, %v1916_v9 }
  0xfe   :  { %v1917_v14 = vpop.f32.mrb[4].mxu0 }
  0xff   :  { %v1945_v15 = vpop.f32.mrb[4].mxu1  ;;  %v1918_v16 = vpop.f32.mrb[5].mxu0 }
 0x100   :  { %v1919_v17 = vadd.f32 %v1918_v16, %v1917_v14  ;;  %v1946_v18 = vpop.f32.mrb[5].mxu1  ;;  %v1920_v19 = vpop.f32.mrb[6].mxu0 }
 0x101   :  { %v1947_v20 = vadd.f32 %v1946_v18, %v1945_v15  ;;  %v1948_v21 = vpop.f32.mrb[6].mxu1  ;;  %v1921_v22 = vpop.f32.mrb[7].mxu0 }
 0x102   :  { %v1922_v23 = vadd.f32 %v1921_v22, %v1920_v19  ;;  %v1949_v24 = vpop.f32.mrb[7].mxu1 }
 0x103   :  { %v1326_v25 = vadd.f32 %v1947_v20, %v1919_v17  ;;  %v1950_v26 = vadd.f32 %v1949_v24, %v1948_v21 }
 0x105   :  { %v1329_v27 = vadd.f32 %v1950_v26, %v1922_v23 }
 0x116   :  { %v1967_v28 = vpop.f32.mrb[8].mxu0 }
 0x117   :  { %v1995_v29 = vpop.f32.mrb[8].mxu1  ;;  %v1968_v30 = vpop.f32.mrb[9].mxu0 }
 0x118   :  { %v1996_v31 = vpop.f32.mrb[9].mxu1  ;;  %v1969_v32 = vadd.f32 %v1968_v30, %v1967_v28  ;;  %v1970_v34 = vpop.f32.mrb[10].mxu0 }
 0x119   :  { %v1997_v33 = vadd.f32 %v1996_v31, %v1995_v29  ;;  %v1998_v35 = vpop.f32.mrb[10].mxu1  ;;  %v1971_v36 = vpop.f32.mrb[11].mxu0 }
 0x11a   :  { %v1999_v37 = vpop.f32.mrb[11].mxu1  ;;  %v1367_v38 = vadd.f32 %v1969_v32, %v1318_v11  ;;  %v1972_v39 = vadd.f32 %v1971_v36, %v1970_v34 }
 0x11b   :  { %v2000_v40 = vadd.f32 %v1999_v37, %v1998_v35 }
 0x11c   :  { %v1416_v41 = vadd.f32 %v1997_v33, %v1367_v38  ;;  %v1370_v42 = vadd.f32 %v1972_v39, %v1321_v13 }
 0x11e   :  { %v1419_v43 = vadd.f32 %v2000_v40, %v1370_v42  ;;  %v1973_v44 = vpop.f32.mrb[12].mxu0 }
 0x11f   :  { %v1974_v45 = vpop.f32.mrb[13].mxu0  ;;  %v2001_v50 = vpop.f32.mrb[12].mxu1 }
 0x120   :  { %v1975_v46 = vadd.f32 %v1974_v45, %v1973_v44  ;;  %v1976_v47 = vpop.f32.mrb[14].mxu0  ;;  %v2002_v52 = vpop.f32.mrb[13].mxu1 }
 0x121   :  { %v1977_v48 = vpop.f32.mrb[15].mxu0  ;;  %v2003_v54 = vadd.f32 %v2002_v52, %v2001_v50  ;;  %v2004_v55 = vpop.f32.mrb[14].mxu1 }
 0x122   :  { %v1375_v49 = vadd.f32 %v1975_v46, %v1326_v25  ;;  %v1978_v51 = vadd.f32 %v1977_v48, %v1976_v47  ;;  %v2005_v56 = vpop.f32.mrb[15].mxu1 }
 0x123   :  { %v2006_v58 = vadd.f32 %v2005_v56, %v2004_v55 }
 0x124   :  { %v1378_v53 = vadd.f32 %v1978_v51, %v1329_v27  ;;  %v1424_v57 = vadd.f32 %v2003_v54, %v1375_v49 }
 0x126   :  { %v1427_v59 = vadd.f32 %v2006_v58, %v1378_v53 }
 0x136   :  { %v2023_v60 = vpop.f32.mrb[16].mxu0 }
 0x137   :  { %v2051_v61 = vpop.f32.mrb[16].mxu1  ;;  %v2024_v62 = vpop.f32.mrb[17].mxu0 }
 0x138   :  { %v2025_v63 = vadd.f32 %v2024_v62, %v2023_v60  ;;  %v2052_v0 = vpop.f32.mrb[17].mxu1  ;;  %v2026_v1 = vpop.f32.mrb[18].mxu0 }
 0x139   :  { %v2053_v2 = vadd.f32 %v2052_v0, %v2051_v61  ;;  %v2054_v3 = vpop.f32.mrb[18].mxu1  ;;  %v2027_v4 = vpop.f32.mrb[19].mxu0 }
 0x13a   :  { %v1465_v5 = vadd.f32 %v2025_v63, %v1416_v41  ;;  %v2028_v6 = vadd.f32 %v2027_v4, %v2026_v1  ;;  %v2055_v7 = vpop.f32.mrb[19].mxu1 }
 0x13b   :  { %v2056_v8 = vadd.f32 %v2055_v7, %v2054_v3 }
 0x13c   :  { %v1514_v9 = vadd.f32 %v2053_v2, %v1465_v5  ;;  %v1468_v10 = vadd.f32 %v2028_v6, %v1419_v43 }
 0x13e   :  { %v1517_v11 = vadd.f32 %v2056_v8, %v1468_v10  ;;  %v2029_v12 = vpop.f32.mrb[20].mxu0 }
 0x13f   :  { %v2030_v13 = vpop.f32.mrb[21].mxu0  ;;  %v2057_v16 = vpop.f32.mrb[20].mxu1 }
 0x140   :  { %v2031_v14 = vadd.f32 %v2030_v13, %v2029_v12  ;;  %v2032_v15 = vpop.f32.mrb[22].mxu0  ;;  %v2058_v20 = vpop.f32.mrb[21].mxu1 }
 0x141   :  { %v2033_v17 = vpop.f32.mrb[23].mxu0  ;;  %v2059_v21 = vadd.f32 %v2058_v20, %v2057_v16  ;;  %v2060_v22 = vpop.f32.mrb[22].mxu1 }
 0x142   :  { %v1473_v18 = vadd.f32 %v2031_v14, %v1424_v57  ;;  %v2034_v19 = vadd.f32 %v2033_v17, %v2032_v15  ;;  %v2061_v24 = vpop.f32.mrb[23].mxu1 }
 0x143   :  { %v2062_v26 = vadd.f32 %v2061_v24, %v2060_v22 }
 0x144   :  { %v1476_v23 = vadd.f32 %v2034_v19, %v1427_v59  ;;  %v1522_v25 = vadd.f32 %v2059_v21, %v1473_v18 }
 0x146   :  { %v1525_v27 = vadd.f32 %v2062_v26, %v1476_v23 }
 0x156   :  { %v2079_v28 = vpop.f32.mrb[24].mxu0 }
 0x157   :  { %v2107_v29 = vpop.f32.mrb[24].mxu1  ;;  %v2080_v30 = vpop.f32.mrb[25].mxu0 }
 0x158   :  { %v2081_v31 = vadd.f32 %v2080_v30, %v2079_v28  ;;  %v2108_v32 = vpop.f32.mrb[25].mxu1  ;;  %v2082_v33 = vpop.f32.mrb[26].mxu0 }
 0x159   :  { %v2109_v34 = vadd.f32 %v2108_v32, %v2107_v29  ;;  %v2110_v35 = vpop.f32.mrb[26].mxu1  ;;  %v2083_v36 = vpop.f32.mrb[27].mxu0  ;;  %v1875_v32 = vld [vmem:[%s2769_s3] ss:$0 sm:$0xff] }
 0x15a   :  { %v1563_v37 = vadd.f32 %v2081_v31, %v1514_v9  ;;  %v2084_v38 = vadd.f32 %v2083_v36, %v2082_v33  ;;  %v2111_v39 = vpop.f32.mrb[27].mxu1 }
 0x15b   :  { %v2112_v40 = vadd.f32 %v2111_v39, %v2110_v35 }
 0x15c   :  { %v1612_v41 = vadd.f32 %v2109_v34, %v1563_v37  ;;  %v1566_v42 = vadd.f32 %v2084_v38, %v1517_v11 }
 0x15e   :  { %v1615_v43 = vadd.f32 %v2112_v40, %v1566_v42  ;;  %v2085_v44 = vpop.f32.mrb[28].mxu0 }
 0x15f   :  { %v2113_v45 = vpop.f32.mrb[28].mxu1  ;;  %v2086_v46 = vpop.f32.mrb[29].mxu0 }
 0x160   :  { %v1626_v47 = vadd.f32 %v1615_v43, %v1612_v41  ;;  %v2087_v48 = vadd.f32 %v2086_v46, %v2085_v44  ;;  %v2114_v49 = vpop.f32.mrb[29].mxu1  ;;  %v2088_v50 = vpop.f32.mrb[30].mxu0 }
 0x161   :  { %v2115_v51 = vadd.f32 %v2114_v49, %v2113_v45  ;;  %v2116_v52 = vpop.f32.mrb[30].mxu1  ;;  %v2089_v53 = vpop.f32.mrb[31].mxu0 }
 0x162   :  { %v1571_v54 = vadd.f32 %v2087_v48, %v1522_v25  ;;  %v2090_v55 = vadd.f32 %v2089_v53, %v2088_v50  ;;  %v2117_v56 = vpop.f32.mrb[31].mxu1  ;;  %v1659_v25 = vlaneseq }
 0x163   :  { %v2118_v57 = vadd.f32 %v2117_v56, %v2116_v52 }
 0x164   :  { %v1620_v58 = vadd.f32 %v2115_v51, %v1571_v54  ;;  %v1574_v59 = vadd.f32 %v2090_v55, %v1525_v27  ;;  %v1660_v26 = vshrl.u32 %v1659_v25, 7  ;;  %v1654_v27 = vld [vmem:[%s2768_s2] sm:$0x1] }
 0x166   :  { %v1627_v60 = vadd.f32 %v1626_v47, %v1620_v58  ;;  %v1623_v61 = vadd.f32 %v2118_v57, %v1574_v59  ;;  %v1661_v28 = vsub.s32 0, %v1660_v26 }
 0x168   :  { %v1628_v62 = vadd.f32 %v1627_v60, %v1623_v61 }
 0x16a   :  { %v1629_v63 = vrot.slane %v1628_v62, 4 }
 0x16c   :  { %v1630_v0 = vadd.f32 %v1629_v63, %v1628_v62 }
 0x16e   :  { %v1631_v1 = vrot.slane %v1630_v0, 2 }
 0x170   :  { %v1632_v2 = vadd.f32 %v1631_v1, %v1630_v0 }
 0x172   :  { %v1633_v3 = vrot.slane %v1632_v2, 1 }
 0x174   :  { %v1634_v4 = vadd.f32 %v1633_v3, %v1632_v2 }
 0x176   :  { %v1635_v5 = vmul.f32 0.03125, %v1634_v4 }
 0x178   :  { %v1636_v6 = vsub.f32 %v1612_v41, %v1635_v5  ;;  %v1637_v7 = vsub.f32 %v1615_v43, %v1635_v5  ;;  %v1638_v8 = vsub.f32 %v1620_v58, %v1635_v5  ;;  %v1639_v9 = vsub.f32 %v1623_v61, %v1635_v5 }
 0x17a   :  { %v1640_v10 = vmul.f32 %v1636_v6, %v1636_v6  ;;  %v1641_v11 = vmul.f32 %v1637_v7, %v1637_v7  ;;  %v1642_v12 = vmul.f32 %v1638_v8, %v1638_v8  ;;  %v1643_v14 = vmul.f32 %v1639_v9, %v1639_v9 }
 0x17c   :  { %v1644_v13 = vadd.f32 %v1641_v11, %v1640_v10 }
 0x17e   :  { %v1645_v15 = vadd.f32 %v1644_v13, %v1642_v12 }
 0x180   :  { %v1646_v16 = vadd.f32 %v1645_v15, %v1643_v14 }
 0x182   :  { %v1647_v17 = vrot.slane %v1646_v16, 4 }
 0x184   :  { %v1648_v18 = vadd.f32 %v1647_v17, %v1646_v16 }
 0x186   :  { %v1649_v19 = vrot.slane %v1648_v18, 2 }
 0x188   :  { %v1650_v20 = vadd.f32 %v1649_v19, %v1648_v18 }
 0x18a   :  { %v1651_v21 = vrot.slane %v1650_v20, 1 }
 0x18c   :  { %v1652_v22 = vadd.f32 %v1651_v21, %v1650_v20 }
 0x18e   :  { %v1653_v23 = vmul.f32 0.03125, %v1652_v22 }
 0x190   :  { %v1655_v24 = vadd.f32 1e-05, %v1653_v23 }
 0x192   :  { %2247 = vrsqrt.f32 %v1655_v24 }
 0x19c   :  { %v2248_v29 = vpop.eup %2247 }
 0x19d   :  { %v1657_v30 = vmul.f32 %v2248_v29, %v1654_v27 }
 0x19f   :  { %v1662_v31 = vrot.slane %v1657_v30, %v1661_v28 }
 0x1a1   :  { %v1664_v33 = vmul.f32 %v1662_v31, %v1636_v6  ;;  %v1665_v34 = vmul.f32 %v1662_v31, %v1637_v7  ;;  %v1666_v35 = vmul.f32 %v1662_v31, %v1638_v8  ;;  %v1667_v36 = vmul.f32 %v1662_v31, %v1639_v9 }
 0x1a3   :  { %v1675_v37 = vadd.f32 %v1875_v32, %v1664_v33  ;;  %v1676_v38 = vadd.f32 %v1875_v32, %v1665_v34  ;;  %v1677_v39 = vadd.f32 %v1875_v32, %v1666_v35  ;;  %v1678_v40 = vadd.f32 %v1875_v32, %v1667_v36 }
 0x1a5   :  { %vm1679_vm0 = vcmp.ge.f32.partialorder %v1675_v37, 0.0  ;;  %vm1680_vm1 = vcmp.ge.f32.partialorder %v1676_v38, 0.0  ;;  %vm1681_vm2 = vcmp.ge.f32.partialorder %v1677_v39, 0.0  ;;  %vm1682_vm3 = vcmp.ge.f32.partialorder %v1678_v40, 0.0 }
 0x1a6   :  { %v1683_v41 = vmul.f32 0.2, %v1675_v37  ;;  %v1684_v42 = vmul.f32 0.2, %v1676_v38  ;;  %v1685_v43 = vmul.f32 0.2, %v1677_v39 }
 0x1a7   :  { %v1686_v44 = vmul.f32 0.2, %v1678_v40 }
 0x1a8   :  { %v1687_v45 = vsel %vm1679_vm0, %v1675_v37, %v1683_v41  ;;  %v1688_v46 = vsel %vm1680_vm1, %v1676_v38, %v1684_v42  ;;  %v1689_v47 = vsel %vm1681_vm2, %v1677_v39, %v1685_v43 }
 0x1a9   :  { %v1690_v48 = vsel %vm1682_vm3, %v1678_v40, %v1686_v44  ;;  %v1887_v49 = vpack.c.bf16 %v1688_v46, %v1687_v45 }
 0x1aa   :  { %v1892_v50 = vpack.c.bf16 %v1690_v48, %v1689_v47 }
 0x1ab   :  { %1888 = vst [vmem:[%s2770_s4] sm:$0xff] %v1887_v49  }
 0x1ac   :  { %1894 = vst [vmem:[%s2770_s4 + $0x8] sm:$0xff] %v1892_v50  }

// kernel: _lambda_.8
= control target key start
LH: loop header
LB: loop body
LE: loop exit
PB: predicated region body
PF: predicated region fallthrough
CT: control target
= control target key end

     0   :  { %vm1587_vm0 = vcmask 1041408   ;;  %s2702_s1 = inlined_call_operand.vmem [shape: bf16[2048,128], index: 1, kind: input, shape index: {}]   ;;  %s2703_s0 = inlined_call_operand.vmem [shape: bf16[18,2048], index: 0, kind: input, shape index: {}]   ;;  %s2704_s2 = inlined_call_operand.vmem [shape: f32[1,128], index: 2, kind: input, shape index: {}]   ;;  %s2705_s3 = inlined_call_operand.vmem [shape: f32[1,128], index: 3, kind: input, shape index: {}]   ;;  %s2706_s4 = inlined_call_operand.vmem [shape: bf16[18,128], index: 4, kind: output, shape index: {}]  }
   0x1   :  { %v2061_v0 = vld [vmem:[%s2702_s1 + $0x40] sm:$0xff]   ;;  %v2065_v4 = vld [vmem:[%s2702_s1 + $0x48] sm:$0xff]   ;;  %v2069_v8 = vld [vmem:[%s2702_s1 + $0x50] sm:$0xff]  }
   0x2   :  { %v2062_v1 = vld [vmem:[%s2702_s1 + $0xc0] sm:$0xff]   ;;  %1837 = vmatprep.subr.bf16.mxu0 %v2061_v0  ;;  %v2066_v5 = vld [vmem:[%s2702_s1 + $0xc8] sm:$0xff]   ;;  %v2070_v9 = vld [vmem:[%s2702_s1 + $0xd0] sm:$0xff]  }
   0x3   :  { %v2063_v2 = vld [vmem:[%s2702_s1] sm:$0xff]   ;;  %1865 = vmatprep.subr.bf16.mxu1 %v2062_v1  ;;  %v2067_v6 = vld [vmem:[%s2702_s1 + $0x8] sm:$0xff]   ;;  %v2071_v10 = vld [vmem:[%s2702_s1 + $0x10] sm:$0xff]  }
   0x4   :  { %v2064_v3 = vld [vmem:[%s2702_s1 + $0x80] sm:$0xff]   ;;  %1838 = vmatpush3.bf16.msra.mxu0 %v2063_v2  ;;  %v2068_v7 = vld [vmem:[%s2702_s1 + $0x88] sm:$0xff]   ;;  %v2072_v11 = vld [vmem:[%s2702_s1 + $0x90] sm:$0xff]  }
   0x5   :  { %1866 = vmatpush3.bf16.msra.mxu1 %v2064_v3  ;;  %1839 = vmatprep.subr.bf16.mxu0 %v2065_v4  ;;  %v2073_v12 = vld [vmem:[%s2702_s1 + $0x58] sm:$0xff]   ;;  %v2077_v16 = vld [vmem:[%s2702_s1 + $0x60] sm:$0xff]   ;;  %v2081_v20 = vld [vmem:[%s2702_s1 + $0x68] sm:$0xff]  }
   0x6   :  { %1867 = vmatprep.subr.bf16.mxu1 %v2066_v5  ;;  %v2074_v13 = vld [vmem:[%s2702_s1 + $0xd8] sm:$0xff]   ;;  %v2078_v17 = vld [vmem:[%s2702_s1 + $0xe0] sm:$0xff]   ;;  %v2082_v21 = vld [vmem:[%s2702_s1 + $0xe8] sm:$0xff]  }
   0x7   :  { %v2075_v14 = vld [vmem:[%s2702_s1 + $0x18] sm:$0xff]   ;;  %v2079_v18 = vld [vmem:[%s2702_s1 + $0x20] sm:$0xff]   ;;  %v2083_v22 = vld [vmem:[%s2702_s1 + $0x28] sm:$0xff]  }
   0x8   :  { %1840 = vmatpush3.bf16.msra.mxu0 %v2067_v6  ;;  %v2076_v15 = vld [vmem:[%s2702_s1 + $0x98] sm:$0xff]   ;;  %v2080_v19 = vld [vmem:[%s2702_s1 + $0xa0] sm:$0xff]   ;;  %v2084_v23 = vld [vmem:[%s2702_s1 + $0xa8] sm:$0xff]  }
   0x9   :  { %1868 = vmatpush3.bf16.msra.mxu1 %v2068_v7  ;;  %1841 = vmatprep.subr.bf16.mxu0 %v2069_v8  ;;  %v2085_v24 = vld [vmem:[%s2702_s1 + $0x70] sm:$0xff]   ;;  %v2089_v28 = vld [vmem:[%s2702_s1 + $0x78] sm:$0xff]   ;;  %v18_v32 = vld [vmem:[%s2703_s0] sm:$0xff] }
   0xa   :  { %1869 = vmatprep.subr.bf16.mxu1 %v2070_v9  ;;  %v2086_v25 = vld [vmem:[%s2702_s1 + $0xf0] sm:$0xff]   ;;  %v2090_v29 = vld [vmem:[%s2702_s1 + $0xf8] sm:$0xff]   ;;  %v26_v33 = vld [vmem:[%s2703_s0 + $0x40] sm:$0xff] }
   0xb   :  { %v2087_v26 = vld [vmem:[%s2702_s1 + $0x30] sm:$0xff]   ;;  %v2091_v30 = vld [vmem:[%s2702_s1 + $0x38] sm:$0xff]   ;;  %v19_v34 = vld [vmem:[%s2703_s0 + $0x8] sm:$0xff]  ;;  %v1665_v35 = vcombine.low %v18_v32, %v26_v33  ;;  %v1666_v36 = vcombine.high %v18_v32, %v26_v33 }
   0xc   :  { %1842 = vmatpush3.bf16.msra.mxu0 %v2071_v10  ;;  %v2088_v27 = vld [vmem:[%s2702_s1 + $0xb0] sm:$0xff]   ;;  %v2092_v31 = vld [vmem:[%s2702_s1 + $0xb8] sm:$0xff]   ;;  %v27_v37 = vld [vmem:[%s2703_s0 + $0x48] sm:$0xff] }
   0xd   :  { %1870 = vmatpush3.bf16.msra.mxu1 %v2072_v11  ;;  %1843 = vmatprep.subr.bf16.mxu0 %v2073_v12  ;;  %v1667_v38 = vcombine.low %v19_v34, %v27_v37  ;;  %v1668_v39 = vcombine.high %v19_v34, %v27_v37  ;;  %v2093_v40 = vld [vmem:[%s2702_s1 + $0x140] sm:$0xff]   ;;  %v2097_v44 = vld [vmem:[%s2702_s1 + $0x148] sm:$0xff]   ;;  %v2101_v48 = vld [vmem:[%s2702_s1 + $0x150] sm:$0xff]  }
   0xe   :  { %1871 = vmatprep.subr.bf16.mxu1 %v2074_v13  ;;  %1234 = vmatprep.mubr.bf16.mxu0 %v1666_v36  ;;  %v2094_v41 = vld [vmem:[%s2702_s1 + $0x1c0] sm:$0xff]   ;;  %v2098_v45 = vld [vmem:[%s2702_s1 + $0x1c8] sm:$0xff]   ;;  %v2102_v49 = vld [vmem:[%s2702_s1 + $0x1d0] sm:$0xff]  }
   0xf   :  { %1282 = vmatprep.mubr.bf16.mxu1 %v1668_v39  ;;  %v2095_v42 = vld [vmem:[%s2702_s1 + $0x100] sm:$0xff]   ;;  %v2099_v46 = vld [vmem:[%s2702_s1 + $0x108] sm:$0xff]   ;;  %v2103_v50 = vld [vmem:[%s2702_s1 + $0x110] sm:$0xff]  }
  0x10   :  { %1844 = vmatpush3.bf16.msra.mxu0 %v2075_v14  ;;  %v2096_v43 = vld [vmem:[%s2702_s1 + $0x180] sm:$0xff]   ;;  %v2100_v47 = vld [vmem:[%s2702_s1 + $0x188] sm:$0xff]   ;;  %v2104_v51 = vld [vmem:[%s2702_s1 + $0x190] sm:$0xff]  }
  0x11   :  { %1872 = vmatpush3.bf16.msra.mxu1 %v2076_v15  ;;  %1845 = vmatprep.subr.bf16.mxu0 %v2077_v16  ;;  %v2105_v52 = vld [vmem:[%s2702_s1 + $0x158] sm:$0xff]   ;;  %v2109_v56 = vld [vmem:[%s2702_s1 + $0x160] sm:$0xff]   ;;  %v2113_v60 = vld [vmem:[%s2702_s1 + $0x168] sm:$0xff]  }
  0x12   :  { %1873 = vmatprep.subr.bf16.mxu1 %v2078_v17  ;;  %v2106_v53 = vld [vmem:[%s2702_s1 + $0x1d8] sm:$0xff]   ;;  %v2110_v57 = vld [vmem:[%s2702_s1 + $0x1e0] sm:$0xff]   ;;  %v2114_v61 = vld [vmem:[%s2702_s1 + $0x1e8] sm:$0xff]  }
  0x13   :  { %v2107_v54 = vld [vmem:[%s2702_s1 + $0x118] sm:$0xff]   ;;  %v2111_v58 = vld [vmem:[%s2702_s1 + $0x120] sm:$0xff]   ;;  %v2116_v0 = vld [vmem:[%s2702_s1 + $0x128] sm:$0xff]  }
  0x14   :  { %1846 = vmatpush3.bf16.msra.mxu0 %v2079_v18  ;;  %v2108_v55 = vld [vmem:[%s2702_s1 + $0x198] sm:$0xff]   ;;  %v2112_v59 = vld [vmem:[%s2702_s1 + $0x1a0] sm:$0xff]   ;;  %v2117_v2 = vld [vmem:[%s2702_s1 + $0x1a8] sm:$0xff]  }
  0x15   :  { %1874 = vmatpush3.bf16.msra.mxu1 %v2080_v19  ;;  %1847 = vmatprep.subr.bf16.mxu0 %v2081_v20  ;;  %v34_v62 = vld [vmem:[%s2703_s0 + $0x80] sm:$0x11]  ;;  %v35_v3 = vld [vmem:[%s2703_s0 + $0x88] sm:$0x11]  ;;  %v2121_v6 = vld [vmem:[%s2702_s1 + $0x170] sm:$0xff]  }
  0x16   :  { %1875 = vmatprep.subr.bf16.mxu1 %v2082_v21  ;;  %v1682_v63 = vcombine.high %v34_v62, %v34_v62  ;;  %v1681_v1 = vcombine.low %v34_v62, %v34_v62  ;;  %v1684_v4 = vcombine.high %v35_v3, %v35_v3  ;;  %v1683_v5 = vcombine.low %v35_v3, %v35_v3  ;;  %v2122_v7 = vld [vmem:[%s2702_s1 + $0x1f0] sm:$0xff]   ;;  %v2125_v10 = vld [vmem:[%s2702_s1 + $0x178] sm:$0xff]   ;;  %v23_v62 = vld [vmem:[%s2703_s0 + $0x28] sm:$0xff] }
  0x17   :  { %v2123_v8 = vld [vmem:[%s2702_s1 + $0x130] sm:$0xff]   ;;  %v2126_v11 = vld [vmem:[%s2702_s1 + $0x1f8] sm:$0xff]  }
  0x18   :  { %1848 = vmatpush3.bf16.msra.mxu0 %v2083_v22  ;;  %v2124_v9 = vld [vmem:[%s2702_s1 + $0x1b0] sm:$0xff]   ;;  %v2127_v12 = vld [vmem:[%s2702_s1 + $0x138] sm:$0xff]   ;;  %v2129_v22 = vld [vmem:[%s2702_s1 + $0x240] sm:$0xff]  }
  0x19   :  { %1876 = vmatpush3.bf16.msra.mxu1 %v2084_v23  ;;  %1849 = vmatprep.subr.bf16.mxu0 %v2085_v24  ;;  %v2128_v13 = vld [vmem:[%s2702_s1 + $0x1b8] sm:$0xff]   ;;  %v20_v14 = vld [vmem:[%s2703_s0 + $0x10] sm:$0xff]  ;;  %v2130_v23 = vld [vmem:[%s2702_s1 + $0x2c0] sm:$0xff]  }
  0x1a   :  { %1877 = vmatprep.subr.bf16.mxu1 %v2086_v25  ;;  %v28_v15 = vld [vmem:[%s2703_s0 + $0x50] sm:$0xff]  ;;  %v21_v16 = vld [vmem:[%s2703_s0 + $0x18] sm:$0xff]  ;;  %v2131_v24 = vld [vmem:[%s2702_s1 + $0x200] sm:$0xff]  }
  0x1b   :  { %v1669_v17 = vcombine.low %v20_v14, %v28_v15  ;;  %v1670_v18 = vcombine.high %v20_v14, %v28_v15  ;;  %v29_v19 = vld [vmem:[%s2703_s0 + $0x58] sm:$0xff]  ;;  %v2132_v25 = vld [vmem:[%s2702_s1 + $0x280] sm:$0xff]   ;;  %v2139_v33 = vld [vmem:[%s2702_s1 + $0x250] sm:$0xff]  }
  0x1c   :  { %1850 = vmatpush3.bf16.msra.mxu0 %v2087_v26  ;;  %v1671_v20 = vcombine.low %v21_v16, %v29_v19  ;;  %v1672_v21 = vcombine.high %v21_v16, %v29_v19  ;;  %v2133_v26 = vld [vmem:[%s2702_s1 + $0x248] sm:$0xff]   ;;  %v2140_v34 = vld [vmem:[%s2702_s1 + $0x2d0] sm:$0xff]  }
  0x1d   :  { %1878 = vmatpush3.bf16.msra.mxu1 %v2088_v27  ;;  %1851 = vmatprep.subr.bf16.mxu0 %v2089_v28  ;;  %v2134_v27 = vld [vmem:[%s2702_s1 + $0x2c8] sm:$0xff]   ;;  %v2142_v37 = vld [vmem:[%s2702_s1 + $0x210] sm:$0xff]  }
  0x1e   :  { %1879 = vmatprep.subr.bf16.mxu1 %v2090_v29  ;;  %v2135_v28 = vld [vmem:[%s2702_s1 + $0x208] sm:$0xff]   ;;  %v2143_v39 = vld [vmem:[%s2702_s1 + $0x290] sm:$0xff]  }
  0x1f   :  { %v2136_v29 = vld [vmem:[%s2702_s1 + $0x288] sm:$0xff]   ;;  %v2175_v15 = vld [vmem:[%s2702_s1 + $0x350] sm:$0xff]  }
  0x20   :  { %1852 = vmatpush3.bf16.msra.mxu0 %v2091_v30  ;;  %v36_v30 = vld [vmem:[%s2703_s0 + $0x90] sm:$0x11] }
  0x21   :  { %1880 = vmatpush3.bf16.msra.mxu1 %v2092_v31  ;;  %1893 = vmatprep.subr.bf16.mxu0 %v2093_v40  ;;  %v1686_v31 = vcombine.high %v36_v30, %v36_v30  ;;  %v1685_v32 = vcombine.low %v36_v30, %v36_v30  ;;  %v2145_v40 = vld [vmem:[%s2702_s1 + $0x258] sm:$0xff]   ;;  %v2176_v16 = vld [vmem:[%s2702_s1 + $0x3d0] sm:$0xff]   ;;  %v2189_v30 = vld [vmem:[%s2702_s1 + $0x368] sm:$0xff]  }
  0x22   :  { %1921 = vmatprep.subr.bf16.mxu1 %v2094_v41  ;;  %v2146_v41 = vld [vmem:[%s2702_s1 + $0x2d8] sm:$0xff]   ;;  %v2178_v19 = vld [vmem:[%s2702_s1 + $0x310] sm:$0xff]  }
  0x23   :  { %1235 = vmatmul.mubr.bf16.vlgmr.msra.gmra.mrb[0].mxu0 %v1665_v35  ;;  %v37_v35 = vld [vmem:[%s2703_s0 + $0x98] sm:$0x11] }
  0x24   :  { %1283 = vmatmul.mubr.bf16.vlgmr.msra.gmra.mrb[0].mxu1 %v1667_v38  ;;  %1894 = vmatpush3.bf16.msra.mxu0 %v2095_v42  ;;  %v1688_v36 = vcombine.high %v37_v35, %v37_v35  ;;  %v1687_v38 = vcombine.low %v37_v35, %v37_v35  ;;  %v2147_v42 = vld [vmem:[%s2702_s1 + $0x218] sm:$0xff]   ;;  %v2194_v35 = vld [vmem:[%s2702_s1 + $0x3f0] sm:$0xff]  }
  0x25   :  { %1922 = vmatpush3.bf16.msra.mxu1 %v2096_v43  ;;  %1895 = vmatprep.subr.bf16.mxu0 %v2097_v44  ;;  %v2148_v43 = vld [vmem:[%s2702_s1 + $0x298] sm:$0xff]   ;;  %v2149_v44 = vld [vmem:[%s2702_s1 + $0x260] sm:$0xff]  }
  0x26   :  { %1923 = vmatprep.subr.bf16.mxu1 %v2098_v45  ;;  %1242 = vmatprep.mubr.bf16.mxu0 %v1682_v63  ;;  %v2150_v45 = vld [vmem:[%s2702_s1 + $0x2e0] sm:$0xff]  }
  0x27   :  { %1290 = vmatprep.mubr.bf16.mxu1 %v1684_v4  ;;  %v2165_v4 = vld [vmem:[%s2702_s1 + $0x340] sm:$0xff]  }
  0x28   :  { %1896 = vmatpush3.bf16.msra.mxu0 %v2099_v46  ;;  %v2151_v46 = vld [vmem:[%s2702_s1 + $0x220] sm:$0xff]  }
  0x29   :  { %1924 = vmatpush3.bf16.msra.mxu1 %v2100_v47  ;;  %1897 = vmatprep.subr.bf16.mxu0 %v2101_v48  ;;  %v2152_v47 = vld [vmem:[%s2702_s1 + $0x2a0] sm:$0xff]   ;;  %v2153_v48 = vld [vmem:[%s2702_s1 + $0x268] sm:$0xff]  }
  0x2a   :  { %1925 = vmatprep.subr.bf16.mxu1 %v2102_v49  ;;  %v2154_v49 = vld [vmem:[%s2702_s1 + $0x2e8] sm:$0xff]  }
  0x2b   :  { %1243 = vmatmul.mubr.bf16.gmra.mrb[4].mxu0 %v1681_v1  ;;  %v31_v1 = vld [vmem:[%s2703_s0 + $0x68] sm:$0xff] }
  0x2c   :  { %1898 = vmatpush3.bf16.msra.mxu0 %v2103_v50  ;;  %1291 = vmatmul.mubr.bf16.gmra.mrb[4].mxu1 %v1683_v5  ;;  %v2155_v50 = vld [vmem:[%s2702_s1 + $0x228] sm:$0xff]   ;;  %v1676_v3 = vcombine.high %v23_v62, %v31_v1  ;;  %v2166_v5 = vld [vmem:[%s2702_s1 + $0x3c0] sm:$0xff]  }
  0x2d   :  { %1926 = vmatpush3.bf16.msra.mxu1 %v2104_v51  ;;  %1899 = vmatprep.subr.bf16.mxu0 %v2105_v52  ;;  %v2156_v51 = vld [vmem:[%s2702_s1 + $0x2a8] sm:$0xff]   ;;  %v2157_v52 = vld [vmem:[%s2702_s1 + $0x270] sm:$0xff]  }
  0x2e   :  { %1927 = vmatprep.subr.bf16.mxu1 %v2106_v53  ;;  %1330 = vmatprep.mubr.bf16.mxu0 %v1670_v18  ;;  %v2158_v53 = vld [vmem:[%s2702_s1 + $0x2f0] sm:$0xff]  }
  0x2f   :  { %1378 = vmatprep.mubr.bf16.mxu1 %v1672_v21  ;;  %v2179_v21 = vld [vmem:[%s2702_s1 + $0x390] sm:$0xff]  }
  0x30   :  { %1900 = vmatpush3.bf16.msra.mxu0 %v2107_v54  ;;  %v2159_v54 = vld [vmem:[%s2702_s1 + $0x230] sm:$0xff]  }
  0x31   :  { %1928 = vmatpush3.bf16.msra.mxu1 %v2108_v55  ;;  %1901 = vmatprep.subr.bf16.mxu0 %v2109_v56  ;;  %v2160_v55 = vld [vmem:[%s2702_s1 + $0x2b0] sm:$0xff]   ;;  %v2161_v56 = vld [vmem:[%s2702_s1 + $0x278] sm:$0xff]  }
  0x32   :  { %1929 = vmatprep.subr.bf16.mxu1 %v2110_v57  ;;  %v2162_v57 = vld [vmem:[%s2702_s1 + $0x2f8] sm:$0xff]  }
  0x34   :  { %1902 = vmatpush3.bf16.msra.mxu0 %v2111_v58  ;;  %v2163_v58 = vld [vmem:[%s2702_s1 + $0x238] sm:$0xff]  }
  0x35   :  { %1930 = vmatpush3.bf16.msra.mxu1 %v2112_v59  ;;  %1903 = vmatprep.subr.bf16.mxu0 %v2113_v60  ;;  %v2164_v59 = vld [vmem:[%s2702_s1 + $0x2b8] sm:$0xff]   ;;  %v22_v60 = vld [vmem:[%s2703_s0 + $0x20] sm:$0xff] }
  0x36   :  { %1931 = vmatprep.subr.bf16.mxu1 %v2114_v61  ;;  %v30_v61 = vld [vmem:[%s2703_s0 + $0x60] sm:$0xff] }
  0x37   :  { %v1673_v63 = vcombine.low %v22_v60, %v30_v61 }
  0x38   :  { %1904 = vmatpush3.bf16.msra.mxu0 %v2116_v0  ;;  %v1674_v0 = vcombine.high %v22_v60, %v30_v61 }
  0x39   :  { %1932 = vmatpush3.bf16.msra.mxu1 %v2117_v2  ;;  %1905 = vmatprep.subr.bf16.mxu0 %v2121_v6  ;;  %v1675_v2 = vcombine.low %v23_v62, %v31_v1  ;;  %v2167_v6 = vld [vmem:[%s2702_s1 + $0x300] sm:$0xff]  }
  0x3a   :  { %1933 = vmatprep.subr.bf16.mxu1 %v2122_v7  ;;  %v2168_v7 = vld [vmem:[%s2702_s1 + $0x380] sm:$0xff]  }
  0x3c   :  { %1906 = vmatpush3.bf16.msra.mxu0 %v2123_v8  ;;  %v2169_v8 = vld [vmem:[%s2702_s1 + $0x348] sm:$0xff]  }
  0x3d   :  { %1934 = vmatpush3.bf16.msra.mxu1 %v2124_v9  ;;  %1907 = vmatprep.subr.bf16.mxu0 %v2125_v10  ;;  %v2170_v9 = vld [vmem:[%s2702_s1 + $0x3c8] sm:$0xff]  }
  0x3e   :  { %1935 = vmatprep.subr.bf16.mxu1 %v2126_v11  ;;  %v2171_v10 = vld [vmem:[%s2702_s1 + $0x308] sm:$0xff]  }
  0x3f   :  { %v2172_v11 = vld [vmem:[%s2702_s1 + $0x388] sm:$0xff]  }
  0x40   :  { %1908 = vmatpush3.bf16.msra.mxu0 %v2127_v12  ;;  %v38_v12 = vld [vmem:[%s2703_s0 + $0xa0] sm:$0x11] }
  0x41   :  { %1936 = vmatpush3.bf16.msra.mxu1 %v2128_v13  ;;  %1949 = vmatprep.subr.bf16.mxu0 %v2129_v22  ;;  %v1690_v13 = vcombine.high %v38_v12, %v38_v12  ;;  %v1689_v14 = vcombine.low %v38_v12, %v38_v12  ;;  %v2181_v22 = vld [vmem:[%s2702_s1 + $0x358] sm:$0xff]  }
  0x42   :  { %1977 = vmatprep.subr.bf16.mxu1 %v2130_v23  ;;  %v2182_v23 = vld [vmem:[%s2702_s1 + $0x3d8] sm:$0xff]  }
  0x43   :  { %1331 = vmatmul.mubr.bf16.vlgmr.msra.gmra.mrb[8].mxu0 %v1669_v17  ;;  %v39_v17 = vld [vmem:[%s2703_s0 + $0xa8] sm:$0x11] }
  0x44   :  { %1379 = vmatmul.mubr.bf16.vlgmr.msra.gmra.mrb[8].mxu1 %v1671_v20  ;;  %1950 = vmatpush3.bf16.msra.mxu0 %v2131_v24  ;;  %v1692_v18 = vcombine.high %v39_v17, %v39_v17  ;;  %v1691_v20 = vcombine.low %v39_v17, %v39_v17  ;;  %v2183_v24 = vld [vmem:[%s2702_s1 + $0x318] sm:$0xff]  }
  0x45   :  { %1978 = vmatpush3.bf16.msra.mxu1 %v2132_v25  ;;  %1951 = vmatprep.subr.bf16.mxu0 %v2133_v26  ;;  %v2184_v25 = vld [vmem:[%s2702_s1 + $0x398] sm:$0xff]   ;;  %v2185_v26 = vld [vmem:[%s2702_s1 + $0x360] sm:$0xff]  }
  0x46   :  { %1979 = vmatprep.subr.bf16.mxu1 %v2134_v27  ;;  %1338 = vmatprep.mubr.bf16.mxu0 %v1686_v31  ;;  %v2186_v27 = vld [vmem:[%s2702_s1 + $0x3e0] sm:$0xff]   ;;  %v2190_v31 = vld [vmem:[%s2702_s1 + $0x3e8] sm:$0xff]  }
  0x47   :  { %1386 = vmatprep.mubr.bf16.mxu1 %v1688_v36  ;;  %v2195_v36 = vld [vmem:[%s2702_s1 + $0x330] sm:$0xff]  }
  0x48   :  { %1952 = vmatpush3.bf16.msra.mxu0 %v2135_v28  ;;  %v2187_v28 = vld [vmem:[%s2702_s1 + $0x320] sm:$0xff]  }
  0x49   :  { %1980 = vmatpush3.bf16.msra.mxu1 %v2136_v29  ;;  %1953 = vmatprep.subr.bf16.mxu0 %v2139_v33  ;;  %v2188_v29 = vld [vmem:[%s2702_s1 + $0x3a0] sm:$0xff]   ;;  %v2192_v33 = vld [vmem:[%s2702_s1 + $0x3a8] sm:$0xff]  }
  0x4a   :  { %1981 = vmatprep.subr.bf16.mxu1 %v2140_v34  ;;  %v2193_v34 = vld [vmem:[%s2702_s1 + $0x370] sm:$0xff]  }
  0x4b   :  { %1339 = vmatmul.mubr.bf16.gmra.mrb[12].mxu0 %v1685_v32  ;;  %v2191_v32 = vld [vmem:[%s2702_s1 + $0x328] sm:$0xff]  }
  0x4c   :  { %1954 = vmatpush3.bf16.msra.mxu0 %v2142_v37  ;;  %1387 = vmatmul.mubr.bf16.gmra.mrb[12].mxu1 %v1687_v38  ;;  %v2196_v37 = vld [vmem:[%s2702_s1 + $0x3b0] sm:$0xff]   ;;  %v2197_v38 = vld [vmem:[%s2702_s1 + $0x378] sm:$0xff]  }
  0x4d   :  { %1982 = vmatpush3.bf16.msra.mxu1 %v2143_v39  ;;  %1955 = vmatprep.subr.bf16.mxu0 %v2145_v40  ;;  %v2198_v39 = vld [vmem:[%s2702_s1 + $0x3f8] sm:$0xff]  }
  0x4e   :  { %1983 = vmatprep.subr.bf16.mxu1 %v2146_v41  ;;  %1426 = vmatprep.mubr.bf16.mxu0 %v1674_v0  ;;  %v2199_v40 = vld [vmem:[%s2702_s1 + $0x338] sm:$0xff]  }
  0x4f   :  { %1474 = vmatprep.mubr.bf16.mxu1 %v1676_v3  ;;  %v2200_v41 = vld [vmem:[%s2702_s1 + $0x3b8] sm:$0xff]  }
  0x50   :  { %1956 = vmatpush3.bf16.msra.mxu0 %v2147_v42  ;;  %v24_v42 = vld [vmem:[%s2703_s0 + $0x30] sm:$0xff] }
  0x51   :  { %1984 = vmatpush3.bf16.msra.mxu1 %v2148_v43  ;;  %1957 = vmatprep.subr.bf16.mxu0 %v2149_v44  ;;  %v32_v43 = vld [vmem:[%s2703_s0 + $0x70] sm:$0xff]  ;;  %v25_v44 = vld [vmem:[%s2703_s0 + $0x38] sm:$0xff] }
  0x52   :  { %1985 = vmatprep.subr.bf16.mxu1 %v2150_v45  ;;  %v1677_v45 = vcombine.low %v24_v42, %v32_v43 }
  0x54   :  { %1958 = vmatpush3.bf16.msra.mxu0 %v2151_v46  ;;  %v1678_v46 = vcombine.high %v24_v42, %v32_v43 }
  0x55   :  { %1986 = vmatpush3.bf16.msra.mxu1 %v2152_v47  ;;  %1959 = vmatprep.subr.bf16.mxu0 %v2153_v48  ;;  %v33_v47 = vld [vmem:[%s2703_s0 + $0x78] sm:$0xff]  ;;  %v40_v48 = vld [vmem:[%s2703_s0 + $0xb0] sm:$0x11] }
  0x56   :  { %1987 = vmatprep.subr.bf16.mxu1 %v2154_v49  ;;  %v41_v49 = vld [vmem:[%s2703_s0 + $0xb8] sm:$0x11] }
  0x58   :  { %1960 = vmatpush3.bf16.msra.mxu0 %v2155_v50  ;;  %v1679_v50 = vcombine.low %v25_v44, %v33_v47 }
  0x59   :  { %1988 = vmatpush3.bf16.msra.mxu1 %v2156_v51  ;;  %1961 = vmatprep.subr.bf16.mxu0 %v2157_v52  ;;  %v1680_v51 = vcombine.high %v25_v44, %v33_v47  ;;  %v1694_v52 = vcombine.high %v40_v48, %v40_v48 }
  0x5a   :  { %1989 = vmatprep.subr.bf16.mxu1 %v2158_v53  ;;  %v1696_v53 = vcombine.high %v41_v49, %v41_v49 }
  0x5c   :  { %1962 = vmatpush3.bf16.msra.mxu0 %v2159_v54  ;;  %v1693_v54 = vcombine.low %v40_v48, %v40_v48 }
  0x5d   :  { %1990 = vmatpush3.bf16.msra.mxu1 %v2160_v55  ;;  %1963 = vmatprep.subr.bf16.mxu0 %v2161_v56  ;;  %v1695_v55 = vcombine.low %v41_v49, %v41_v49 }
  0x5e   :  { %1991 = vmatprep.subr.bf16.mxu1 %v2162_v57 }
  0x60   :  { %1964 = vmatpush3.bf16.msra.mxu0 %v2163_v58 }
  0x61   :  { %1992 = vmatpush3.bf16.msra.mxu1 %v2164_v59  ;;  %2005 = vmatprep.subr.bf16.mxu0 %v2165_v4 }
  0x62   :  { %2033 = vmatprep.subr.bf16.mxu1 %v2166_v5 }
  0x63   :  { %1427 = vmatmul.mubr.bf16.vlgmr.msra.gmra.mrb[16].mxu0 %v1673_v63 }
  0x64   :  { %1475 = vmatmul.mubr.bf16.vlgmr.msra.gmra.mrb[16].mxu1 %v1675_v2  ;;  %2006 = vmatpush3.bf16.msra.mxu0 %v2167_v6 }
  0x65   :  { %2034 = vmatpush3.bf16.msra.mxu1 %v2168_v7  ;;  %2007 = vmatprep.subr.bf16.mxu0 %v2169_v8 }
  0x66   :  { %2035 = vmatprep.subr.bf16.mxu1 %v2170_v9  ;;  %1434 = vmatprep.mubr.bf16.mxu0 %v1690_v13 }
  0x67   :  { %1482 = vmatprep.mubr.bf16.mxu1 %v1692_v18 }
  0x68   :  { %2008 = vmatpush3.bf16.msra.mxu0 %v2171_v10 }
  0x69   :  { %2036 = vmatpush3.bf16.msra.mxu1 %v2172_v11  ;;  %2009 = vmatprep.subr.bf16.mxu0 %v2175_v15 }
  0x6a   :  { %2037 = vmatprep.subr.bf16.mxu1 %v2176_v16 }
  0x6b   :  { %1435 = vmatmul.mubr.bf16.gmra.mrb[20].mxu0 %v1689_v14 }
  0x6c   :  { %2010 = vmatpush3.bf16.msra.mxu0 %v2178_v19  ;;  %1483 = vmatmul.mubr.bf16.gmra.mrb[20].mxu1 %v1691_v20 }
  0x6d   :  { %2038 = vmatpush3.bf16.msra.mxu1 %v2179_v21  ;;  %2011 = vmatprep.subr.bf16.mxu0 %v2181_v22 }
  0x6e   :  { %2039 = vmatprep.subr.bf16.mxu1 %v2182_v23  ;;  %1522 = vmatprep.mubr.bf16.mxu0 %v1678_v46 }
  0x6f   :  { %1570 = vmatprep.mubr.bf16.mxu1 %v1680_v51 }
  0x70   :  { %2012 = vmatpush3.bf16.msra.mxu0 %v2183_v24 }
  0x71   :  { %2040 = vmatpush3.bf16.msra.mxu1 %v2184_v25  ;;  %2013 = vmatprep.subr.bf16.mxu0 %v2185_v26 }
  0x72   :  { %2041 = vmatprep.subr.bf16.mxu1 %v2186_v27 }
  0x74   :  { %2014 = vmatpush3.bf16.msra.mxu0 %v2187_v28 }
  0x75   :  { %2042 = vmatpush3.bf16.msra.mxu1 %v2188_v29  ;;  %2015 = vmatprep.subr.bf16.mxu0 %v2189_v30 }
  0x76   :  { %2043 = vmatprep.subr.bf16.mxu1 %v2190_v31 }
  0x78   :  { %2016 = vmatpush3.bf16.msra.mxu0 %v2191_v32 }
  0x79   :  { %2044 = vmatpush3.bf16.msra.mxu1 %v2192_v33  ;;  %2017 = vmatprep.subr.bf16.mxu0 %v2193_v34 }
  0x7a   :  { %2045 = vmatprep.subr.bf16.mxu1 %v2194_v35 }
  0x7c   :  { %2018 = vmatpush3.bf16.msra.mxu0 %v2195_v36 }
  0x7d   :  { %2046 = vmatpush3.bf16.msra.mxu1 %v2196_v37  ;;  %2019 = vmatprep.subr.bf16.mxu0 %v2197_v38 }
  0x7e   :  { %2047 = vmatprep.subr.bf16.mxu1 %v2198_v39 }
  0x80   :  { %2020 = vmatpush3.bf16.msra.mxu0 %v2199_v40 }
  0x81   :  { %2048 = vmatpush3.bf16.msra.mxu1 %v2200_v41 }
  0x83   :  { %1523 = vmatmul.mubr.bf16.vlgmr.msra.gmra.mrb[24].mxu0 %v1677_v45 }
  0x84   :  { %1571 = vmatmul.mubr.bf16.vlgmr.msra.gmra.mrb[24].mxu1 %v1679_v50  ;;  %1530 = vmatprep.mubr.bf16.mxu0 %v1694_v52 }
  0x85   :  { %1578 = vmatprep.mubr.bf16.mxu1 %v1696_v53 }
  0x8b   :  { %1531 = vmatmul.mubr.bf16.gmra.mrb[28].mxu0 %v1693_v54 }
  0x8c   :  { %1579 = vmatmul.mubr.bf16.gmra.mrb[28].mxu1 %v1695_v55 }
  0xf6   :  { %v1853_v56 = vpop.f32.mrb[0].mxu0 }
  0xf7   :  { %v1881_v57 = vpop.f32.mrb[0].mxu1  ;;  %v1854_v58 = vpop.f32.mrb[1].mxu0 }
  0xf8   :  { %v1855_v59 = vadd.f32 %v1854_v58, %v1853_v56  ;;  %v1882_v60 = vpop.f32.mrb[1].mxu1  ;;  %v1856_v61 = vpop.f32.mrb[2].mxu0 }
  0xf9   :  { %v1883_v62 = vadd.f32 %v1882_v60, %v1881_v57  ;;  %v1884_v63 = vpop.f32.mrb[2].mxu1  ;;  %v1857_v0 = vpop.f32.mrb[3].mxu0 }
  0xfa   :  { %v1858_v1 = vadd.f32 %v1857_v0, %v1856_v61  ;;  %v1885_v2 = vpop.f32.mrb[3].mxu1 }
  0xfb   :  { %v1285_v3 = vadd.f32 %v1883_v62, %v1855_v59  ;;  %v1886_v4 = vadd.f32 %v1885_v2, %v1884_v63 }
  0xfd   :  { %v1288_v5 = vadd.f32 %v1886_v4, %v1858_v1 }
  0xfe   :  { %v1859_v6 = vpop.f32.mrb[4].mxu0 }
  0xff   :  { %v1860_v7 = vpop.f32.mrb[5].mxu0  ;;  %v1887_v10 = vpop.f32.mrb[4].mxu1 }
 0x100   :  { %v1861_v8 = vadd.f32 %v1860_v7, %v1859_v6  ;;  %v1862_v9 = vpop.f32.mrb[6].mxu0  ;;  %v1888_v12 = vpop.f32.mrb[5].mxu1 }
 0x101   :  { %v1863_v11 = vpop.f32.mrb[7].mxu0  ;;  %v1889_v13 = vadd.f32 %v1888_v12, %v1887_v10  ;;  %v1890_v14 = vpop.f32.mrb[6].mxu1 }
 0x102   :  { %v1891_v15 = vpop.f32.mrb[7].mxu1 }
 0x103   :  { %v1293_v16 = vadd.f32 %v1889_v13, %v1861_v8 }
 0x116   :  { %v1909_v17 = vpop.f32.mrb[8].mxu0 }
 0x117   :  { %v1937_v18 = vpop.f32.mrb[8].mxu1  ;;  %v1910_v19 = vpop.f32.mrb[9].mxu0 }
 0x118   :  { %v1911_v20 = vadd.f32 %v1910_v19, %v1909_v17  ;;  %v1938_v21 = vpop.f32.mrb[9].mxu1  ;;  %v1912_v22 = vpop.f32.mrb[10].mxu0 }
 0x119   :  { %v1939_v23 = vadd.f32 %v1938_v21, %v1937_v18  ;;  %v1940_v24 = vpop.f32.mrb[10].mxu1  ;;  %v1913_v25 = vpop.f32.mrb[11].mxu0 }
 0x11a   :  { %v1333_v26 = vadd.f32 %v1911_v20, %v1285_v3  ;;  %v1914_v27 = vadd.f32 %v1913_v25, %v1912_v22  ;;  %v1941_v28 = vpop.f32.mrb[11].mxu1 }
 0x11b   :  { %v1942_v29 = vadd.f32 %v1941_v28, %v1940_v24 }
 0x11c   :  { %v1381_v30 = vadd.f32 %v1939_v23, %v1333_v26  ;;  %v1336_v31 = vadd.f32 %v1914_v27, %v1288_v5 }
 0x11e   :  { %v1384_v32 = vadd.f32 %v1942_v29, %v1336_v31  ;;  %v1915_v33 = vpop.f32.mrb[12].mxu0 }
 0x11f   :  { %v1916_v34 = vpop.f32.mrb[13].mxu0  ;;  %v1943_v37 = vpop.f32.mrb[12].mxu1 }
 0x120   :  { %v1917_v35 = vadd.f32 %v1916_v34, %v1915_v33  ;;  %v1918_v36 = vpop.f32.mrb[14].mxu0  ;;  %v1944_v40 = vpop.f32.mrb[13].mxu1 }
 0x121   :  { %v1919_v38 = vpop.f32.mrb[15].mxu0  ;;  %v1945_v41 = vadd.f32 %v1944_v40, %v1943_v37  ;;  %v1946_v42 = vpop.f32.mrb[14].mxu1 }
 0x122   :  { %v1341_v39 = vadd.f32 %v1917_v35, %v1293_v16  ;;  %v1947_v43 = vpop.f32.mrb[15].mxu1 }
 0x124   :  { %v1389_v44 = vadd.f32 %v1945_v41, %v1341_v39 }
 0x136   :  { %v1965_v45 = vpop.f32.mrb[16].mxu0 }
 0x137   :  { %v1993_v46 = vpop.f32.mrb[16].mxu1  ;;  %v1966_v47 = vpop.f32.mrb[17].mxu0 }
 0x138   :  { %v1967_v48 = vadd.f32 %v1966_v47, %v1965_v45  ;;  %v1994_v49 = vpop.f32.mrb[17].mxu1  ;;  %v1968_v50 = vpop.f32.mrb[18].mxu0 }
 0x139   :  { %v1995_v51 = vadd.f32 %v1994_v49, %v1993_v46  ;;  %v1996_v52 = vpop.f32.mrb[18].mxu1  ;;  %v1969_v53 = vpop.f32.mrb[19].mxu0 }
 0x13a   :  { %v1429_v54 = vadd.f32 %v1967_v48, %v1381_v30  ;;  %v1970_v55 = vadd.f32 %v1969_v53, %v1968_v50  ;;  %v1997_v56 = vpop.f32.mrb[19].mxu1 }
 0x13b   :  { %v1998_v57 = vadd.f32 %v1997_v56, %v1996_v52 }
 0x13c   :  { %v1477_v58 = vadd.f32 %v1995_v51, %v1429_v54  ;;  %v1432_v59 = vadd.f32 %v1970_v55, %v1384_v32 }
 0x13e   :  { %v1480_v60 = vadd.f32 %v1998_v57, %v1432_v59  ;;  %v1971_v61 = vpop.f32.mrb[20].mxu0 }
 0x13f   :  { %v1972_v62 = vpop.f32.mrb[21].mxu0  ;;  %v1999_v1 = vpop.f32.mrb[20].mxu1 }
 0x140   :  { %v1973_v63 = vadd.f32 %v1972_v62, %v1971_v61  ;;  %v1974_v0 = vpop.f32.mrb[22].mxu0  ;;  %v2000_v4 = vpop.f32.mrb[21].mxu1 }
 0x141   :  { %v1975_v2 = vpop.f32.mrb[23].mxu0  ;;  %v2001_v5 = vadd.f32 %v2000_v4, %v1999_v1  ;;  %v2002_v6 = vpop.f32.mrb[22].mxu1  ;;  %v1618_v0 = vlaneseq }
 0x142   :  { %v1437_v3 = vadd.f32 %v1973_v63, %v1389_v44  ;;  %v2003_v7 = vpop.f32.mrb[23].mxu1  ;;  %v1613_v2 = vld [vmem:[%s2704_s2] sm:$0x1] }
 0x143   :  { %v1619_v1 = vshrl.u32 %v1618_v0, 7  ;;  %v1825_v7 = vld [vmem:[%s2705_s3] ss:$0 sm:$0xff] }
 0x144   :  { %v1485_v8 = vadd.f32 %v2001_v5, %v1437_v3 }
 0x145   :  { %v1620_v3 = vsub.s32 0, %v1619_v1 }
 0x156   :  { %v2021_v9 = vpop.f32.mrb[24].mxu0 }
 0x157   :  { %v2049_v10 = vpop.f32.mrb[24].mxu1  ;;  %v2022_v11 = vpop.f32.mrb[25].mxu0 }
 0x158   :  { %v2023_v12 = vadd.f32 %v2022_v11, %v2021_v9  ;;  %v2050_v13 = vpop.f32.mrb[25].mxu1  ;;  %v2024_v14 = vpop.f32.mrb[26].mxu0 }
 0x159   :  { %v2051_v15 = vadd.f32 %v2050_v13, %v2049_v10  ;;  %v2052_v16 = vpop.f32.mrb[26].mxu1  ;;  %v2025_v17 = vpop.f32.mrb[27].mxu0 }
 0x15a   :  { %v1525_v18 = vadd.f32 %v2023_v12, %v1477_v58  ;;  %v2026_v19 = vadd.f32 %v2025_v17, %v2024_v14  ;;  %v2053_v20 = vpop.f32.mrb[27].mxu1 }
 0x15b   :  { %v2054_v21 = vadd.f32 %v2053_v20, %v2052_v16 }
 0x15c   :  { %v1573_v22 = vadd.f32 %v2051_v15, %v1525_v18  ;;  %v1528_v23 = vadd.f32 %v2026_v19, %v1480_v60 }
 0x15e   :  { %v1576_v24 = vadd.f32 %v2054_v21, %v1528_v23  ;;  %v2027_v25 = vpop.f32.mrb[28].mxu0 }
 0x15f   :  { %v2055_v26 = vpop.f32.mrb[28].mxu1  ;;  %v2028_v27 = vpop.f32.mrb[29].mxu0 }
 0x160   :  { %v1586_v28 = vadd.f32 %v1576_v24, %v1573_v22  ;;  %v2029_v29 = vadd.f32 %v2028_v27, %v2027_v25  ;;  %v2056_v30 = vpop.f32.mrb[29].mxu1  ;;  %v2030_v31 = vpop.f32.mrb[30].mxu0 }
 0x161   :  { %v2057_v32 = vadd.f32 %v2056_v30, %v2055_v26  ;;  %v2058_v33 = vpop.f32.mrb[30].mxu1  ;;  %v2031_v34 = vpop.f32.mrb[31].mxu0 }
 0x162   :  { %v1533_v35 = vadd.f32 %v2029_v29, %v1485_v8  ;;  %v2059_v36 = vpop.f32.mrb[31].mxu1 }
 0x164   :  { %v1581_v37 = vadd.f32 %v2057_v32, %v1533_v35 }
 0x166   :  { %v1588_v38 = vsel %vm1587_vm0, %v1581_v37, 0.0 }
 0x167   :  { %v1589_v39 = vadd.f32 %v1588_v38, %v1586_v28 }
 0x169   :  { %v1590_v40 = vrot.slane %v1589_v39, 4 }
 0x16b   :  { %v1591_v41 = vadd.f32 %v1590_v40, %v1589_v39 }
 0x16d   :  { %v1592_v42 = vrot.slane %v1591_v41, 2 }
 0x16f   :  { %v1593_v43 = vadd.f32 %v1592_v42, %v1591_v41 }
 0x171   :  { %v1594_v44 = vrot.slane %v1593_v43, 1 }
 0x173   :  { %v1595_v45 = vadd.f32 %v1594_v44, %v1593_v43 }
 0x175   :  { %v1596_v46 = vmul.f32 0.055555556, %v1595_v45 }
 0x177   :  { %v1597_v47 = vsub.f32 %v1573_v22, %v1596_v46  ;;  %v1598_v48 = vsub.f32 %v1576_v24, %v1596_v46  ;;  %v1599_v49 = vsub.f32 %v1581_v37, %v1596_v46 }
 0x179   :  { %v1600_v50 = vmul.f32 %v1597_v47, %v1597_v47  ;;  %v1601_v51 = vmul.f32 %v1598_v48, %v1598_v48  ;;  %v1602_v52 = vmul.f32 %v1599_v49, %v1599_v49 }
 0x17b   :  { %v1603_v53 = vadd.f32 %v1601_v51, %v1600_v50  ;;  %v1604_v54 = vsel %vm1587_vm0, %v1602_v52, 0.0 }
 0x17d   :  { %v1605_v55 = vadd.f32 %v1604_v54, %v1603_v53 }
 0x17f   :  { %v1606_v56 = vrot.slane %v1605_v55, 4 }
 0x181   :  { %v1607_v57 = vadd.f32 %v1606_v56, %v1605_v55 }
 0x183   :  { %v1608_v58 = vrot.slane %v1607_v57, 2 }
 0x185   :  { %v1609_v59 = vadd.f32 %v1608_v58, %v1607_v57 }
 0x187   :  { %v1610_v60 = vrot.slane %v1609_v59, 1 }
 0x189   :  { %v1611_v61 = vadd.f32 %v1610_v60, %v1609_v59 }
 0x18b   :  { %v1612_v62 = vmul.f32 0.055555556, %v1611_v61 }
 0x18d   :  { %v1614_v63 = vadd.f32 1e-05, %v1612_v62 }
 0x18f   :  { %2205 = vrsqrt.f32 %v1614_v63 }
 0x199   :  { %v2206_v4 = vpop.eup %2205 }
 0x19a   :  { %v1616_v5 = vmul.f32 %v2206_v4, %v1613_v2 }
 0x19c   :  { %v1621_v6 = vrot.slane %v1616_v5, %v1620_v3 }
 0x19e   :  { %v1623_v8 = vmul.f32 %v1621_v6, %v1597_v47  ;;  %v1624_v9 = vmul.f32 %v1621_v6, %v1598_v48  ;;  %v1625_v10 = vmul.f32 %v1621_v6, %v1599_v49 }
 0x1a0   :  { %v1633_v11 = vadd.f32 %v1825_v7, %v1623_v8  ;;  %v1634_v12 = vadd.f32 %v1825_v7, %v1624_v9  ;;  %v1635_v13 = vadd.f32 %v1825_v7, %v1625_v10 }
 0x1a2   :  { %vm1636_vm1 = vcmp.ge.f32.partialorder %v1633_v11, 0.0  ;;  %vm1637_vm2 = vcmp.ge.f32.partialorder %v1634_v12, 0.0  ;;  %vm1638_vm3 = vcmp.ge.f32.partialorder %v1635_v13, 0.0  ;;  %v1639_v14 = vmul.f32 0.2, %v1633_v11 }
 0x1a3   :  { %v1640_v15 = vmul.f32 0.2, %v1634_v12  ;;  %v1641_v16 = vmul.f32 0.2, %v1635_v13 }
 0x1a4   :  { %v1642_v17 = vsel %vm1636_vm1, %v1633_v11, %v1639_v14 }
 0x1a5   :  { %v1643_v18 = vsel %vm1637_vm2, %v1634_v12, %v1640_v15  ;;  %v1644_v19 = vsel %vm1638_vm3, %v1635_v13, %v1641_v16 }
 0x1a6   :  { %v1831_v20 = vpack.c.bf16 %v1644_v19, %v1644_v19  ;;  %v1835_v21 = vpack.c.bf16 %v1643_v18, %v1642_v17 }
 0x1a8   :  { %1836 = vst [vmem:[%s2706_s4] sm:$0xff] %v1835_v21   ;;  %1660 = vst [vmem:[%s2706_s4 + $0x8] sm:$0x1] %v1831_v20 }

// kernel: _lambda_.9
= control target key start
LH: loop header
LB: loop body
LE: loop exit
PB: predicated region body
PF: predicated region fallthrough
CT: control target
= control target key end

     0   :  { %s2345_s1 = inlined_call_operand.vmem [shape: bf16[2048,128], index: 1, kind: input, shape index: {}]   ;;  %s2346_s0 = inlined_call_operand.vmem [shape: bf16[8,2048], index: 0, kind: input, shape index: {}]   ;;  %s2347_s2 = inlined_call_operand.vmem [shape: f32[1,128], index: 2, kind: input, shape index: {}]   ;;  %s2348_s3 = inlined_call_operand.vmem [shape: f32[8,128], index: 3, kind: output, shape index: {}]  }
   0x1   :  { %v1763_v0 = vld [vmem:[%s2345_s1 + $0x40] sm:$0xff]   ;;  %v1767_v4 = vld [vmem:[%s2345_s1 + $0x48] sm:$0xff]   ;;  %v1771_v8 = vld [vmem:[%s2345_s1 + $0x50] sm:$0xff]  }
   0x2   :  { %v1764_v1 = vld [vmem:[%s2345_s1 + $0xc0] sm:$0xff]   ;;  %1587 = vmatprep.subr.bf16.mxu0 %v1763_v0  ;;  %v1768_v5 = vld [vmem:[%s2345_s1 + $0xc8] sm:$0xff]   ;;  %v1772_v9 = vld [vmem:[%s2345_s1 + $0xd0] sm:$0xff]  }
   0x3   :  { %v1765_v2 = vld [vmem:[%s2345_s1] sm:$0xff]   ;;  %1609 = vmatprep.subr.bf16.mxu1 %v1764_v1  ;;  %v1769_v6 = vld [vmem:[%s2345_s1 + $0x8] sm:$0xff]   ;;  %v1773_v10 = vld [vmem:[%s2345_s1 + $0x10] sm:$0xff]  }
   0x4   :  { %v1766_v3 = vld [vmem:[%s2345_s1 + $0x80] sm:$0xff]   ;;  %1588 = vmatpush3.bf16.msra.mxu0 %v1765_v2  ;;  %v1770_v7 = vld [vmem:[%s2345_s1 + $0x88] sm:$0xff]   ;;  %v1774_v11 = vld [vmem:[%s2345_s1 + $0x90] sm:$0xff]  }
   0x5   :  { %1610 = vmatpush3.bf16.msra.mxu1 %v1766_v3  ;;  %1589 = vmatprep.subr.bf16.mxu0 %v1767_v4  ;;  %v1775_v12 = vld [vmem:[%s2345_s1 + $0x58] sm:$0xff]   ;;  %v1779_v16 = vld [vmem:[%s2345_s1 + $0x60] sm:$0xff]   ;;  %v1783_v20 = vld [vmem:[%s2345_s1 + $0x68] sm:$0xff]  }
   0x6   :  { %1611 = vmatprep.subr.bf16.mxu1 %v1768_v5  ;;  %v1776_v13 = vld [vmem:[%s2345_s1 + $0xd8] sm:$0xff]   ;;  %v1780_v17 = vld [vmem:[%s2345_s1 + $0xe0] sm:$0xff]   ;;  %v1784_v21 = vld [vmem:[%s2345_s1 + $0xe8] sm:$0xff]  }
   0x7   :  { %v1777_v14 = vld [vmem:[%s2345_s1 + $0x18] sm:$0xff]   ;;  %v1781_v18 = vld [vmem:[%s2345_s1 + $0x20] sm:$0xff]   ;;  %v1785_v22 = vld [vmem:[%s2345_s1 + $0x28] sm:$0xff]  }
   0x8   :  { %1590 = vmatpush3.bf16.msra.mxu0 %v1769_v6  ;;  %v1778_v15 = vld [vmem:[%s2345_s1 + $0x98] sm:$0xff]   ;;  %v1782_v19 = vld [vmem:[%s2345_s1 + $0xa0] sm:$0xff]   ;;  %v1786_v23 = vld [vmem:[%s2345_s1 + $0xa8] sm:$0xff]  }
   0x9   :  { %1612 = vmatpush3.bf16.msra.mxu1 %v1770_v7  ;;  %1591 = vmatprep.subr.bf16.mxu0 %v1771_v8  ;;  %v1787_v24 = vld [vmem:[%s2345_s1 + $0x70] sm:$0xff]   ;;  %v1791_v28 = vld [vmem:[%s2345_s1 + $0x78] sm:$0xff]   ;;  %v15_v32 = vld [vmem:[%s2346_s0] sm:$0xff] }
   0xa   :  { %1613 = vmatprep.subr.bf16.mxu1 %v1772_v9  ;;  %v1788_v25 = vld [vmem:[%s2345_s1 + $0xf0] sm:$0xff]   ;;  %v1792_v29 = vld [vmem:[%s2345_s1 + $0xf8] sm:$0xff]   ;;  %v16_v33 = vld [vmem:[%s2346_s0 + $0x8] sm:$0xff]  ;;  %v1442_v34 = vcombine.low %v15_v32, %v15_v32  ;;  %v1443_v35 = vcombine.high %v15_v32, %v15_v32 }
   0xb   :  { %v1789_v26 = vld [vmem:[%s2345_s1 + $0x30] sm:$0xff]   ;;  %v1793_v30 = vld [vmem:[%s2345_s1 + $0x38] sm:$0xff]   ;;  %v1444_v36 = vcombine.low %v16_v33, %v16_v33  ;;  %v1445_v37 = vcombine.high %v16_v33, %v16_v33  ;;  %v1799_v38 = vld [vmem:[%s2345_s1 + $0x140] sm:$0xff]  }
   0xc   :  { %1592 = vmatpush3.bf16.msra.mxu0 %v1773_v10  ;;  %v1790_v27 = vld [vmem:[%s2345_s1 + $0xb0] sm:$0xff]   ;;  %v1794_v31 = vld [vmem:[%s2345_s1 + $0xb8] sm:$0xff]   ;;  %v1800_v39 = vld [vmem:[%s2345_s1 + $0x1c0] sm:$0xff]   ;;  %1142 = vmatprep.mubr.bf16.mxu0 %v1443_v35 }
   0xd   :  { %1614 = vmatpush3.bf16.msra.mxu1 %v1774_v11  ;;  %1593 = vmatprep.subr.bf16.mxu0 %v1775_v12  ;;  %v1801_v40 = vld [vmem:[%s2345_s1 + $0x100] sm:$0xff]   ;;  %v1803_v42 = vld [vmem:[%s2345_s1 + $0x148] sm:$0xff]   ;;  %v1807_v46 = vld [vmem:[%s2345_s1 + $0x150] sm:$0xff]  }
   0xe   :  { %1615 = vmatprep.subr.bf16.mxu1 %v1776_v13  ;;  %1182 = vmatprep.mubr.bf16.mxu1 %v1445_v37  ;;  %v1802_v41 = vld [vmem:[%s2345_s1 + $0x180] sm:$0xff]   ;;  %v1804_v43 = vld [vmem:[%s2345_s1 + $0x1c8] sm:$0xff]   ;;  %v1808_v47 = vld [vmem:[%s2345_s1 + $0x1d0] sm:$0xff]  }
   0xf   :  { %v1805_v44 = vld [vmem:[%s2345_s1 + $0x108] sm:$0xff]   ;;  %v1809_v48 = vld [vmem:[%s2345_s1 + $0x110] sm:$0xff]   ;;  %v1811_v50 = vld [vmem:[%s2345_s1 + $0x158] sm:$0xff]  }
  0x10   :  { %1594 = vmatpush3.bf16.msra.mxu0 %v1777_v14  ;;  %v1806_v45 = vld [vmem:[%s2345_s1 + $0x188] sm:$0xff]   ;;  %v1810_v49 = vld [vmem:[%s2345_s1 + $0x190] sm:$0xff]   ;;  %v1812_v51 = vld [vmem:[%s2345_s1 + $0x1d8] sm:$0xff]  }
  0x11   :  { %1616 = vmatpush3.bf16.msra.mxu1 %v1778_v15  ;;  %1595 = vmatprep.subr.bf16.mxu0 %v1779_v16  ;;  %v1813_v52 = vld [vmem:[%s2345_s1 + $0x118] sm:$0xff]   ;;  %v1815_v54 = vld [vmem:[%s2345_s1 + $0x160] sm:$0xff]   ;;  %v1819_v58 = vld [vmem:[%s2345_s1 + $0x168] sm:$0xff]  }
  0x12   :  { %1617 = vmatprep.subr.bf16.mxu1 %v1780_v17  ;;  %v1814_v53 = vld [vmem:[%s2345_s1 + $0x198] sm:$0xff]   ;;  %v1816_v55 = vld [vmem:[%s2345_s1 + $0x1e0] sm:$0xff]   ;;  %v1820_v59 = vld [vmem:[%s2345_s1 + $0x1e8] sm:$0xff]  }
  0x13   :  { %v1817_v56 = vld [vmem:[%s2345_s1 + $0x120] sm:$0xff]   ;;  %v1821_v60 = vld [vmem:[%s2345_s1 + $0x128] sm:$0xff]   ;;  %v1823_v62 = vld [vmem:[%s2345_s1 + $0x170] sm:$0xff]  }
  0x14   :  { %1596 = vmatpush3.bf16.msra.mxu0 %v1781_v18  ;;  %v1818_v57 = vld [vmem:[%s2345_s1 + $0x1a0] sm:$0xff]   ;;  %v1822_v61 = vld [vmem:[%s2345_s1 + $0x1a8] sm:$0xff]   ;;  %v1824_v63 = vld [vmem:[%s2345_s1 + $0x1f0] sm:$0xff]  }
  0x15   :  { %1618 = vmatpush3.bf16.msra.mxu1 %v1782_v19  ;;  %1597 = vmatprep.subr.bf16.mxu0 %v1783_v20  ;;  %v1825_v0 = vld [vmem:[%s2345_s1 + $0x130] sm:$0xff]   ;;  %v1827_v2 = vld [vmem:[%s2345_s1 + $0x178] sm:$0xff]   ;;  %v1835_v12 = vld [vmem:[%s2345_s1 + $0x240] sm:$0xff]  }
  0x16   :  { %1619 = vmatprep.subr.bf16.mxu1 %v1784_v21  ;;  %v1826_v1 = vld [vmem:[%s2345_s1 + $0x1b0] sm:$0xff]   ;;  %v1828_v3 = vld [vmem:[%s2345_s1 + $0x1f8] sm:$0xff]   ;;  %v1836_v13 = vld [vmem:[%s2345_s1 + $0x2c0] sm:$0xff]  }
  0x17   :  { %v1829_v4 = vld [vmem:[%s2345_s1 + $0x138] sm:$0xff]   ;;  %v17_v6 = vld [vmem:[%s2346_s0 + $0x10] sm:$0xff]  ;;  %v1837_v14 = vld [vmem:[%s2345_s1 + $0x200] sm:$0xff]  }
  0x18   :  { %1598 = vmatpush3.bf16.msra.mxu0 %v1785_v22  ;;  %v1830_v5 = vld [vmem:[%s2345_s1 + $0x1b8] sm:$0xff]   ;;  %v1446_v7 = vcombine.low %v17_v6, %v17_v6  ;;  %v1447_v8 = vcombine.high %v17_v6, %v17_v6  ;;  %v1838_v15 = vld [vmem:[%s2345_s1 + $0x280] sm:$0xff]   ;;  %v1839_v16 = vld [vmem:[%s2345_s1 + $0x248] sm:$0xff]  }
  0x19   :  { %1620 = vmatpush3.bf16.msra.mxu1 %v1786_v23  ;;  %1599 = vmatprep.subr.bf16.mxu0 %v1787_v24  ;;  %v18_v9 = vld [vmem:[%s2346_s0 + $0x18] sm:$0xff]  ;;  %v1840_v17 = vld [vmem:[%s2345_s1 + $0x2c8] sm:$0xff]   ;;  %v1843_v20 = vld [vmem:[%s2345_s1 + $0x250] sm:$0xff]  }
  0x1a   :  { %1621 = vmatprep.subr.bf16.mxu1 %v1788_v25  ;;  %v1448_v10 = vcombine.low %v18_v9, %v18_v9  ;;  %v1449_v11 = vcombine.high %v18_v9, %v18_v9  ;;  %v1841_v18 = vld [vmem:[%s2345_s1 + $0x208] sm:$0xff]   ;;  %v1844_v21 = vld [vmem:[%s2345_s1 + $0x2d0] sm:$0xff]   ;;  %v1847_v24 = vld [vmem:[%s2345_s1 + $0x258] sm:$0xff]  }
  0x1b   :  { %v1842_v19 = vld [vmem:[%s2345_s1 + $0x288] sm:$0xff]   ;;  %v1845_v22 = vld [vmem:[%s2345_s1 + $0x210] sm:$0xff]   ;;  %v1848_v25 = vld [vmem:[%s2345_s1 + $0x2d8] sm:$0xff]  }
  0x1c   :  { %1600 = vmatpush3.bf16.msra.mxu0 %v1789_v26  ;;  %v1846_v23 = vld [vmem:[%s2345_s1 + $0x290] sm:$0xff]   ;;  %v1849_v26 = vld [vmem:[%s2345_s1 + $0x218] sm:$0xff]   ;;  %v1855_v32 = vld [vmem:[%s2345_s1 + $0x268] sm:$0xff]  }
  0x1d   :  { %1622 = vmatpush3.bf16.msra.mxu1 %v1790_v27  ;;  %1601 = vmatprep.subr.bf16.mxu0 %v1791_v28  ;;  %v1850_v27 = vld [vmem:[%s2345_s1 + $0x298] sm:$0xff]   ;;  %v1851_v28 = vld [vmem:[%s2345_s1 + $0x260] sm:$0xff]   ;;  %v1856_v33 = vld [vmem:[%s2345_s1 + $0x2e8] sm:$0xff]  }
  0x1e   :  { %1623 = vmatprep.subr.bf16.mxu1 %v1792_v29  ;;  %v1852_v29 = vld [vmem:[%s2345_s1 + $0x2e0] sm:$0xff]   ;;  %v1858_v35 = vld [vmem:[%s2345_s1 + $0x2a8] sm:$0xff]   ;;  %v1860_v37 = vld [vmem:[%s2345_s1 + $0x2f0] sm:$0xff]  }
  0x1f   :  { %v1891_v6 = vld [vmem:[%s2345_s1 + $0x368] sm:$0xff]  }
  0x20   :  { %1602 = vmatpush3.bf16.msra.mxu0 %v1793_v30  ;;  %v1853_v30 = vld [vmem:[%s2345_s1 + $0x220] sm:$0xff]   ;;  %v1894_v9 = vld [vmem:[%s2345_s1 + $0x3a8] sm:$0xff]  }
  0x21   :  { %1624 = vmatpush3.bf16.msra.mxu1 %v1794_v31  ;;  %1631 = vmatprep.subr.bf16.mxu0 %v1799_v38  ;;  %v1854_v31 = vld [vmem:[%s2345_s1 + $0x2a0] sm:$0xff]   ;;  %v1861_v38 = vld [vmem:[%s2345_s1 + $0x230] sm:$0xff]  }
  0x22   :  { %1653 = vmatprep.subr.bf16.mxu1 %v1800_v39  ;;  %v1862_v39 = vld [vmem:[%s2345_s1 + $0x2b0] sm:$0xff]  }
  0x23   :  { %1143 = vmatmul.mubr.bf16.vlgmr.msra.gmra.mrb[0].mxu0 %v1442_v34  ;;  %v1857_v34 = vld [vmem:[%s2345_s1 + $0x228] sm:$0xff]  }
  0x24   :  { %1183 = vmatmul.mubr.bf16.vlgmr.msra.gmra.mrb[0].mxu1 %v1444_v36  ;;  %1632 = vmatpush3.bf16.msra.mxu0 %v1801_v40  ;;  %v1859_v36 = vld [vmem:[%s2345_s1 + $0x270] sm:$0xff]   ;;  %v1863_v40 = vld [vmem:[%s2345_s1 + $0x278] sm:$0xff]  }
  0x25   :  { %1654 = vmatpush3.bf16.msra.mxu1 %v1802_v41  ;;  %1633 = vmatprep.subr.bf16.mxu0 %v1803_v42  ;;  %v1864_v41 = vld [vmem:[%s2345_s1 + $0x2f8] sm:$0xff]  }
  0x26   :  { %1655 = vmatprep.subr.bf16.mxu1 %v1804_v43  ;;  %1222 = vmatprep.mubr.bf16.mxu0 %v1447_v8  ;;  %v1865_v42 = vld [vmem:[%s2345_s1 + $0x238] sm:$0xff]   ;;  %v1893_v8 = vld [vmem:[%s2345_s1 + $0x328] sm:$0xff]  }
  0x27   :  { %1262 = vmatprep.mubr.bf16.mxu1 %v1449_v11  ;;  %v1866_v43 = vld [vmem:[%s2345_s1 + $0x2b8] sm:$0xff]   ;;  %v1896_v11 = vld [vmem:[%s2345_s1 + $0x3f0] sm:$0xff]  }
  0x28   :  { %1634 = vmatpush3.bf16.msra.mxu0 %v1805_v44  ;;  %v19_v44 = vld [vmem:[%s2346_s0 + $0x20] sm:$0xff] }
  0x29   :  { %1656 = vmatpush3.bf16.msra.mxu1 %v1806_v45  ;;  %1635 = vmatprep.subr.bf16.mxu0 %v1807_v46  ;;  %v20_v45 = vld [vmem:[%s2346_s0 + $0x28] sm:$0xff]  ;;  %v1450_v46 = vcombine.low %v19_v44, %v19_v44 }
  0x2a   :  { %1657 = vmatprep.subr.bf16.mxu1 %v1808_v47  ;;  %v1451_v47 = vcombine.high %v19_v44, %v19_v44 }
  0x2c   :  { %1636 = vmatpush3.bf16.msra.mxu0 %v1809_v48  ;;  %v1452_v48 = vcombine.low %v20_v45, %v20_v45 }
  0x2d   :  { %1658 = vmatpush3.bf16.msra.mxu1 %v1810_v49  ;;  %1637 = vmatprep.subr.bf16.mxu0 %v1811_v50  ;;  %v1453_v49 = vcombine.high %v20_v45, %v20_v45  ;;  %v1871_v50 = vld [vmem:[%s2345_s1 + $0x340] sm:$0xff]  }
  0x2e   :  { %1659 = vmatprep.subr.bf16.mxu1 %v1812_v51  ;;  %v1872_v51 = vld [vmem:[%s2345_s1 + $0x3c0] sm:$0xff]  }
  0x30   :  { %1638 = vmatpush3.bf16.msra.mxu0 %v1813_v52  ;;  %v1873_v52 = vld [vmem:[%s2345_s1 + $0x300] sm:$0xff]  }
  0x31   :  { %1660 = vmatpush3.bf16.msra.mxu1 %v1814_v53  ;;  %1639 = vmatprep.subr.bf16.mxu0 %v1815_v54  ;;  %v1874_v53 = vld [vmem:[%s2345_s1 + $0x380] sm:$0xff]   ;;  %v1875_v54 = vld [vmem:[%s2345_s1 + $0x348] sm:$0xff]  }
  0x32   :  { %1661 = vmatprep.subr.bf16.mxu1 %v1816_v55  ;;  %v1876_v55 = vld [vmem:[%s2345_s1 + $0x3c8] sm:$0xff]  }
  0x34   :  { %1640 = vmatpush3.bf16.msra.mxu0 %v1817_v56  ;;  %v1877_v56 = vld [vmem:[%s2345_s1 + $0x308] sm:$0xff]  }
  0x35   :  { %1662 = vmatpush3.bf16.msra.mxu1 %v1818_v57  ;;  %1641 = vmatprep.subr.bf16.mxu0 %v1819_v58  ;;  %v1878_v57 = vld [vmem:[%s2345_s1 + $0x388] sm:$0xff]   ;;  %v1879_v58 = vld [vmem:[%s2345_s1 + $0x350] sm:$0xff]  }
  0x36   :  { %1663 = vmatprep.subr.bf16.mxu1 %v1820_v59  ;;  %v1880_v59 = vld [vmem:[%s2345_s1 + $0x3d0] sm:$0xff]  }
  0x38   :  { %1642 = vmatpush3.bf16.msra.mxu0 %v1821_v60  ;;  %v1881_v60 = vld [vmem:[%s2345_s1 + $0x310] sm:$0xff]  }
  0x39   :  { %1664 = vmatpush3.bf16.msra.mxu1 %v1822_v61  ;;  %1643 = vmatprep.subr.bf16.mxu0 %v1823_v62  ;;  %v1882_v61 = vld [vmem:[%s2345_s1 + $0x390] sm:$0xff]   ;;  %v1883_v62 = vld [vmem:[%s2345_s1 + $0x358] sm:$0xff]  }
  0x3a   :  { %1665 = vmatprep.subr.bf16.mxu1 %v1824_v63  ;;  %v1884_v63 = vld [vmem:[%s2345_s1 + $0x3d8] sm:$0xff]  }
  0x3c   :  { %1644 = vmatpush3.bf16.msra.mxu0 %v1825_v0  ;;  %v1885_v0 = vld [vmem:[%s2345_s1 + $0x318] sm:$0xff]  }
  0x3d   :  { %1666 = vmatpush3.bf16.msra.mxu1 %v1826_v1  ;;  %1645 = vmatprep.subr.bf16.mxu0 %v1827_v2  ;;  %v1886_v1 = vld [vmem:[%s2345_s1 + $0x398] sm:$0xff]   ;;  %v1887_v2 = vld [vmem:[%s2345_s1 + $0x360] sm:$0xff]  }
  0x3e   :  { %1667 = vmatprep.subr.bf16.mxu1 %v1828_v3  ;;  %v1888_v3 = vld [vmem:[%s2345_s1 + $0x3e0] sm:$0xff]  }
  0x40   :  { %1646 = vmatpush3.bf16.msra.mxu0 %v1829_v4  ;;  %v1889_v4 = vld [vmem:[%s2345_s1 + $0x320] sm:$0xff]  }
  0x41   :  { %1668 = vmatpush3.bf16.msra.mxu1 %v1830_v5  ;;  %1675 = vmatprep.subr.bf16.mxu0 %v1835_v12  ;;  %v1890_v5 = vld [vmem:[%s2345_s1 + $0x3a0] sm:$0xff]   ;;  %v1897_v12 = vld [vmem:[%s2345_s1 + $0x330] sm:$0xff]  }
  0x42   :  { %1697 = vmatprep.subr.bf16.mxu1 %v1836_v13  ;;  %v1898_v13 = vld [vmem:[%s2345_s1 + $0x3b0] sm:$0xff]  }
  0x43   :  { %1223 = vmatmul.mubr.bf16.vlgmr.msra.gmra.mrb[4].mxu0 %v1446_v7  ;;  %v1892_v7 = vld [vmem:[%s2345_s1 + $0x3e8] sm:$0xff]  }
  0x44   :  { %1263 = vmatmul.mubr.bf16.vlgmr.msra.gmra.mrb[4].mxu1 %v1448_v10  ;;  %1676 = vmatpush3.bf16.msra.mxu0 %v1837_v14  ;;  %v1895_v10 = vld [vmem:[%s2345_s1 + $0x370] sm:$0xff]   ;;  %v1899_v14 = vld [vmem:[%s2345_s1 + $0x378] sm:$0xff]  }
  0x45   :  { %1698 = vmatpush3.bf16.msra.mxu1 %v1838_v15  ;;  %1677 = vmatprep.subr.bf16.mxu0 %v1839_v16  ;;  %v1900_v15 = vld [vmem:[%s2345_s1 + $0x3f8] sm:$0xff]  }
  0x46   :  { %1699 = vmatprep.subr.bf16.mxu1 %v1840_v17  ;;  %1302 = vmatprep.mubr.bf16.mxu0 %v1451_v47  ;;  %v1901_v16 = vld [vmem:[%s2345_s1 + $0x338] sm:$0xff]  }
  0x47   :  { %1342 = vmatprep.mubr.bf16.mxu1 %v1453_v49  ;;  %v1902_v17 = vld [vmem:[%s2345_s1 + $0x3b8] sm:$0xff]  }
  0x48   :  { %1678 = vmatpush3.bf16.msra.mxu0 %v1841_v18  ;;  %v21_v18 = vld [vmem:[%s2346_s0 + $0x30] sm:$0xff] }
  0x49   :  { %1700 = vmatpush3.bf16.msra.mxu1 %v1842_v19  ;;  %1679 = vmatprep.subr.bf16.mxu0 %v1843_v20  ;;  %v22_v19 = vld [vmem:[%s2346_s0 + $0x38] sm:$0xff]  ;;  %v1454_v20 = vcombine.low %v21_v18, %v21_v18 }
  0x4a   :  { %1701 = vmatprep.subr.bf16.mxu1 %v1844_v21  ;;  %v1455_v21 = vcombine.high %v21_v18, %v21_v18 }
  0x4c   :  { %1680 = vmatpush3.bf16.msra.mxu0 %v1845_v22  ;;  %v1456_v22 = vcombine.low %v22_v19, %v22_v19 }
  0x4d   :  { %1702 = vmatpush3.bf16.msra.mxu1 %v1846_v23  ;;  %1681 = vmatprep.subr.bf16.mxu0 %v1847_v24  ;;  %v1457_v23 = vcombine.high %v22_v19, %v22_v19 }
  0x4e   :  { %1703 = vmatprep.subr.bf16.mxu1 %v1848_v25 }
  0x50   :  { %1682 = vmatpush3.bf16.msra.mxu0 %v1849_v26  ;;  %v1441_v26 = vld [vmem:[%s2347_s2] ss:$0 sm:$0xff] }
  0x51   :  { %1704 = vmatpush3.bf16.msra.mxu1 %v1850_v27  ;;  %1683 = vmatprep.subr.bf16.mxu0 %v1851_v28 }
  0x52   :  { %1705 = vmatprep.subr.bf16.mxu1 %v1852_v29 }
  0x54   :  { %1684 = vmatpush3.bf16.msra.mxu0 %v1853_v30 }
  0x55   :  { %1706 = vmatpush3.bf16.msra.mxu1 %v1854_v31  ;;  %1685 = vmatprep.subr.bf16.mxu0 %v1855_v32 }
  0x56   :  { %1707 = vmatprep.subr.bf16.mxu1 %v1856_v33 }
  0x58   :  { %1686 = vmatpush3.bf16.msra.mxu0 %v1857_v34 }
  0x59   :  { %1708 = vmatpush3.bf16.msra.mxu1 %v1858_v35  ;;  %1687 = vmatprep.subr.bf16.mxu0 %v1859_v36 }
  0x5a   :  { %1709 = vmatprep.subr.bf16.mxu1 %v1860_v37 }
  0x5c   :  { %1688 = vmatpush3.bf16.msra.mxu0 %v1861_v38 }
  0x5d   :  { %1710 = vmatpush3.bf16.msra.mxu1 %v1862_v39  ;;  %1689 = vmatprep.subr.bf16.mxu0 %v1863_v40 }
  0x5e   :  { %1711 = vmatprep.subr.bf16.mxu1 %v1864_v41 }
  0x60   :  { %1690 = vmatpush3.bf16.msra.mxu0 %v1865_v42 }
  0x61   :  { %1712 = vmatpush3.bf16.msra.mxu1 %v1866_v43  ;;  %1719 = vmatprep.subr.bf16.mxu0 %v1871_v50 }
  0x62   :  { %1741 = vmatprep.subr.bf16.mxu1 %v1872_v51 }
  0x63   :  { %1303 = vmatmul.mubr.bf16.vlgmr.msra.gmra.mrb[8].mxu0 %v1450_v46 }
  0x64   :  { %1343 = vmatmul.mubr.bf16.vlgmr.msra.gmra.mrb[8].mxu1 %v1452_v48  ;;  %1720 = vmatpush3.bf16.msra.mxu0 %v1873_v52 }
  0x65   :  { %1742 = vmatpush3.bf16.msra.mxu1 %v1874_v53  ;;  %1721 = vmatprep.subr.bf16.mxu0 %v1875_v54 }
  0x66   :  { %1743 = vmatprep.subr.bf16.mxu1 %v1876_v55  ;;  %1382 = vmatprep.mubr.bf16.mxu0 %v1455_v21 }
  0x67   :  { %1422 = vmatprep.mubr.bf16.mxu1 %v1457_v23 }
  0x68   :  { %1722 = vmatpush3.bf16.msra.mxu0 %v1877_v56 }
  0x69   :  { %1744 = vmatpush3.bf16.msra.mxu1 %v1878_v57  ;;  %1723 = vmatprep.subr.bf16.mxu0 %v1879_v58 }
  0x6a   :  { %1745 = vmatprep.subr.bf16.mxu1 %v1880_v59 }
  0x6c   :  { %1724 = vmatpush3.bf16.msra.mxu0 %v1881_v60 }
  0x6d   :  { %1746 = vmatpush3.bf16.msra.mxu1 %v1882_v61  ;;  %1725 = vmatprep.subr.bf16.mxu0 %v1883_v62 }
  0x6e   :  { %1747 = vmatprep.subr.bf16.mxu1 %v1884_v63 }
  0x70   :  { %1726 = vmatpush3.bf16.msra.mxu0 %v1885_v0 }
  0x71   :  { %1748 = vmatpush3.bf16.msra.mxu1 %v1886_v1  ;;  %1727 = vmatprep.subr.bf16.mxu0 %v1887_v2 }
  0x72   :  { %1749 = vmatprep.subr.bf16.mxu1 %v1888_v3 }
  0x74   :  { %1728 = vmatpush3.bf16.msra.mxu0 %v1889_v4 }
  0x75   :  { %1750 = vmatpush3.bf16.msra.mxu1 %v1890_v5  ;;  %1729 = vmatprep.subr.bf16.mxu0 %v1891_v6 }
  0x76   :  { %1751 = vmatprep.subr.bf16.mxu1 %v1892_v7 }
  0x78   :  { %1730 = vmatpush3.bf16.msra.mxu0 %v1893_v8 }
  0x79   :  { %1752 = vmatpush3.bf16.msra.mxu1 %v1894_v9  ;;  %1731 = vmatprep.subr.bf16.mxu0 %v1895_v10 }
  0x7a   :  { %1753 = vmatprep.subr.bf16.mxu1 %v1896_v11 }
  0x7c   :  { %1732 = vmatpush3.bf16.msra.mxu0 %v1897_v12 }
  0x7d   :  { %1754 = vmatpush3.bf16.msra.mxu1 %v1898_v13  ;;  %1733 = vmatprep.subr.bf16.mxu0 %v1899_v14 }
  0x7e   :  { %1755 = vmatprep.subr.bf16.mxu1 %v1900_v15 }
  0x80   :  { %1734 = vmatpush3.bf16.msra.mxu0 %v1901_v16 }
  0x81   :  { %1756 = vmatpush3.bf16.msra.mxu1 %v1902_v17 }
  0x83   :  { %1383 = vmatmul.mubr.bf16.vlgmr.msra.gmra.mrb[12].mxu0 %v1454_v20 }
  0x84   :  { %1423 = vmatmul.mubr.bf16.vlgmr.msra.gmra.mrb[12].mxu1 %v1456_v22 }
  0xf6   :  { %v1603_v24 = vpop.f32.mrb[0].mxu0 }
  0xf7   :  { %v1625_v25 = vpop.f32.mrb[0].mxu1  ;;  %v1604_v27 = vpop.f32.mrb[1].mxu0 }
  0xf8   :  { %v1626_v28 = vpop.f32.mrb[1].mxu1  ;;  %v1605_v29 = vadd.f32 %v1604_v27, %v1603_v24  ;;  %v1606_v31 = vpop.f32.mrb[2].mxu0 }
  0xf9   :  { %v1627_v30 = vadd.f32 %v1626_v28, %v1625_v25  ;;  %v1628_v32 = vpop.f32.mrb[2].mxu1  ;;  %v1607_v33 = vpop.f32.mrb[3].mxu0 }
  0xfa   :  { %v1629_v34 = vpop.f32.mrb[3].mxu1  ;;  %v1145_v35 = vadd.f32 %v1605_v29, %v1441_v26 }
  0xfc   :  { %v1185_v36 = vadd.f32 %v1627_v30, %v1145_v35 }
 0x116   :  { %v1647_v37 = vpop.f32.mrb[4].mxu0 }
 0x117   :  { %v1669_v38 = vpop.f32.mrb[4].mxu1  ;;  %v1648_v39 = vpop.f32.mrb[5].mxu0 }
 0x118   :  { %v1670_v40 = vpop.f32.mrb[5].mxu1  ;;  %v1649_v41 = vadd.f32 %v1648_v39, %v1647_v37  ;;  %v1650_v43 = vpop.f32.mrb[6].mxu0 }
 0x119   :  { %v1671_v42 = vadd.f32 %v1670_v40, %v1669_v38  ;;  %v1672_v44 = vpop.f32.mrb[6].mxu1  ;;  %v1651_v45 = vpop.f32.mrb[7].mxu0 }
 0x11a   :  { %v1673_v46 = vpop.f32.mrb[7].mxu1  ;;  %v1225_v47 = vadd.f32 %v1649_v41, %v1185_v36 }
 0x11c   :  { %v1265_v48 = vadd.f32 %v1671_v42, %v1225_v47 }
 0x136   :  { %v1691_v49 = vpop.f32.mrb[8].mxu0 }
 0x137   :  { %v1713_v50 = vpop.f32.mrb[8].mxu1  ;;  %v1692_v51 = vpop.f32.mrb[9].mxu0 }
 0x138   :  { %v1693_v52 = vadd.f32 %v1692_v51, %v1691_v49  ;;  %v1714_v53 = vpop.f32.mrb[9].mxu1  ;;  %v1694_v54 = vpop.f32.mrb[10].mxu0 }
 0x139   :  { %v1715_v55 = vadd.f32 %v1714_v53, %v1713_v50  ;;  %v1716_v56 = vpop.f32.mrb[10].mxu1  ;;  %v1695_v57 = vpop.f32.mrb[11].mxu0 }
 0x13a   :  { %v1305_v58 = vadd.f32 %v1693_v52, %v1265_v48  ;;  %v1717_v59 = vpop.f32.mrb[11].mxu1 }
 0x13c   :  { %v1345_v60 = vadd.f32 %v1715_v55, %v1305_v58 }
 0x156   :  { %v1735_v61 = vpop.f32.mrb[12].mxu0 }
 0x157   :  { %v1757_v62 = vpop.f32.mrb[12].mxu1  ;;  %v1736_v63 = vpop.f32.mrb[13].mxu0 }
 0x158   :  { %v1737_v0 = vadd.f32 %v1736_v63, %v1735_v61  ;;  %v1758_v1 = vpop.f32.mrb[13].mxu1  ;;  %v1738_v2 = vpop.f32.mrb[14].mxu0 }
 0x159   :  { %v1759_v3 = vadd.f32 %v1758_v1, %v1757_v62  ;;  %v1760_v4 = vpop.f32.mrb[14].mxu1  ;;  %v1739_v5 = vpop.f32.mrb[15].mxu0 }
 0x15a   :  { %v1385_v6 = vadd.f32 %v1737_v0, %v1345_v60  ;;  %v1761_v7 = vpop.f32.mrb[15].mxu1 }
 0x15c   :  { %v1425_v8 = vadd.f32 %v1759_v3, %v1385_v6 }
 0x15e   :  { %v1586_v9 = vmul.f32 -1.442695, %v1425_v8 }
 0x160   :  { %1907 = vpow2.f32 %v1586_v9 }
 0x16a   :  { %v1908_v10 = vpop.eup %1907 }
 0x16b   :  { %v1433_v11 = vadd.f32 1.0, %v1908_v10 }
 0x16d   :  { %1909 = vrcp.f32 %v1433_v11 }
 0x177   :  { %v1910_v12 = vpop.eup %1909 }
 0x178   :  { %1436 = vst [vmem:[%s2348_s3] sm:$0xff] %v1910_v12 }

</bundles_post_ra>
